<compile_context>
chip_gen: v6e
topology: v6e:2x2x1
jax: 0.10.0
libtpu: 0.0.40
codegen_flags: <defaults>
</compile_context>

<pallas_src>
import jax
import jax.numpy as jnp
from jax.experimental import pallas as pl
from jax.experimental.pallas import tpu as pltpu


def _pconv3x3_kernel(w_ref, x_ref, o_ref):
    # w_ref: SMEM (Cout*Cin*9,) f32  -- OIHW conv weights, flattened.
    # x_ref: VMEM (1, Cin, H, W)     -- full-image conv channel slice (one batch).
    # o_ref: VMEM (1, Cout, TH, W)   -- one row tile of the conv output.
    _, cin, H, W = x_ref.shape
    _, cout, TH, _ = o_ref.shape

    r0 = pl.multiple_of(pl.program_id(1) * TH, TH)

    accs = [jnp.zeros((TH, W), jnp.float32) for _ in range(cout)]
    zcol = jnp.zeros((TH, 1), jnp.float32)

    for ci in range(cin):
        # Row windows with halo; SAME (zero) padding applied at the image edge.
        center = x_ref[0, ci, pl.ds(r0, TH), :]                        # rows [r0, r0+TH)
        top = x_ref[0, ci, pl.ds(jnp.maximum(r0 - 1, 0), 1), :]        # row r0-1
        bot = x_ref[0, ci, pl.ds(jnp.minimum(r0 + TH, H - 1), 1), :]   # row r0+TH
        top = jnp.where(r0 > 0, top, jnp.zeros_like(top))
        bot = jnp.where(r0 + TH < H, bot, jnp.zeros_like(bot))

        rows = (
            jnp.concatenate([top, center[:TH - 1, :]], axis=0),   # ky=0: in[y-1]
            center,                                               # ky=1: in[y]
            jnp.concatenate([center[1:, :], bot], axis=0),        # ky=2: in[y+1]
        )
        for ky in range(3):
            rwin = rows[ky]
            taps = (
                jnp.concatenate([zcol, rwin[:, :W - 1]], axis=1),  # kx=0: in[x-1]
                rwin,                                              # kx=1: in[x]
                jnp.concatenate([rwin[:, 1:], zcol], axis=1),      # kx=2: in[x+1]
            )
            for kx in range(3):
                t = taps[kx]
                for co in range(cout):
                    wv = w_ref[(co * cin + ci) * 9 + ky * 3 + kx]  # SMEM scalar
                    accs[co] = accs[co] + wv * t

    for co in range(cout):
        o_ref[0, co, :, :] = accs[co].astype(o_ref.dtype)


def _pick_row_tile(h):
    for th in (256, 128, 64, 32, 16, 8):
        if h % th == 0:
            return th
    return h


def pconv3_3(x, w, n_div=3):
    """PConv3_3.forward. x: (N, dim, H, W) NCHW; w: (dim_conv, dim_conv, 3, 3) OIHW."""
    n, dim, h, wd = x.shape
    if dim % n_div != 0:
        raise ValueError(f"dim={dim} must be divisible by n_div={n_div}")
    dc = dim // n_div
    cout, cin, kh, kwd = w.shape
    if (cout, cin, kh, kwd) != (dc, dc, 3, 3) or dim != 3 * dc:
        raise ValueError("weight shape must be (dim//3, dim//3, 3, 3)")

    th = _pick_row_tile(h)
    grid = (n, h // th)
    conv_block_idx = 2            # third chunk: channels [2*dc, 3*dc)

    w_flat = jnp.asarray(w, jnp.float32).reshape(-1)

    flops = 2 * n * h * wd * 9 * dc * dc
    bytes_accessed = 2 * n * dc * h * wd * x.dtype.itemsize + w_flat.size * 4

    y3 = pl.pallas_call(
        _pconv3x3_kernel,
        out_shape=jax.ShapeDtypeStruct((n, dc, h, wd), x.dtype),
        grid=grid,
        in_specs=[
            pl.BlockSpec(memory_space=pltpu.MemorySpace.SMEM),   # weights (scalars)
            pl.BlockSpec((1, dc, h, wd),
                         lambda b, r: (b, conv_block_idx, 0, 0)),
        ],
        out_specs=pl.BlockSpec((1, dc, th, wd), lambda b, r: (b, 0, r, 0)),
        compiler_params=pltpu.CompilerParams(
            dimension_semantics=("parallel", "parallel")),
        cost_estimate=pl.CostEstimate(
            flops=flops, transcendentals=0, bytes_accessed=bytes_accessed),
    )(w_flat, x)

    # First 2/3 of channels pass straight through; under jit XLA can perform
    # this update in place (equivalent to input_output_aliases donation).
    return jax.lax.dynamic_update_slice(x, y3, (0, 2 * dc, 0, 0))


if __name__ == "__main__":
    key = jax.random.PRNGKey(0)
    key_x, key_w = jax.random.split(key)

    # Small shapes consistent with the module: dim divisible by n_div=3.
    N, dim, H, W = 2, 12, 16, 16
    dc = dim // 3
    ksize = 3

    x = jax.random.normal(key_x, (N, dim, H, W), dtype=jnp.float32)
    fan_in = dc * ksize * ksize
    bound = 1.0 / (fan_in ** 0.5)
    w = jax.random.uniform(key_w, (dc, dc, ksize, ksize),
                           dtype=jnp.float32, minval=-bound, maxval=bound)

    out = jax.block_until_ready(jax.jit(pconv3_3)(x, w))

    # Cross-check the conv hot path against XLA's reference conv.
    ref_conv = jax.lax.conv_general_dilated(
        x[:, 2 * dc:3 * dc], w, (1, 1), "SAME",
        dimension_numbers=("NCHW", "OIHW", "NCHW"))
    ref = jnp.concatenate([x[:, :2 * dc], ref_conv], axis=1)

    assert out.shape == (N, dim, H, W)
    assert jnp.allclose(out, ref, atol=1e-4, rtol=1e-4)

    print("KERNEL_OK")
</pallas_src>

<mosaic_0001>
module attributes {stable_mosaic.version = 11 : i64} {
  func.func @_pconv3x3_kernel(%arg0: i32, %arg1: i32, %arg2: memref<144xf32, #tpu.memory_space<smem>>, %arg3: memref<1x4x16x16xf32, #tpu.memory_space<vmem>>, %arg4: memref<1x4x16x16xf32, #tpu.memory_space<vmem>>) attributes {dimension_semantics = [#tpu.dimension_semantics<parallel>, #tpu.dimension_semantics<parallel>], iteration_bounds = array<i64: 2, 1>, scalar_prefetch = 0 : i64, scratch_operands = 0 : i64, tpu.core_type = #tpu.core_type<tc>, window_params = [{transform_indices = @transform_0, window_bounds = array<i64: 144>}, {transform_indices = @transform_1, window_bounds = array<i64: 1, 4, 16, 16>}, {transform_indices = @transform_2, window_bounds = array<i64: 1, 4, 16, 16>}]} {
    %c16_i32 = arith.constant 16 : i32
    %0 = arith.muli %arg1, %c16_i32 : i32
    %1 = tpu.assume_multiple %0, 16 : i32
    %cst = arith.constant 0.000000e+00 : f32
    %2 = vector.broadcast %cst : f32 to vector<16x16xf32>
    %cst_0 = arith.constant 0.000000e+00 : f32
    %3 = vector.broadcast %cst_0 : f32 to vector<16x16xf32>
    %cst_1 = arith.constant 0.000000e+00 : f32
    %4 = vector.broadcast %cst_1 : f32 to vector<16x16xf32>
    %cst_2 = arith.constant 0.000000e+00 : f32
    %5 = vector.broadcast %cst_2 : f32 to vector<16x16xf32>
    %cst_3 = arith.constant 0.000000e+00 : f32
    %6 = vector.broadcast %cst_3 : f32 to vector<16x1xf32>
    %c0 = arith.constant 0 : index
    %c0_4 = arith.constant 0 : index
    %7 = arith.index_cast %1 : i32 to index
    %c0_5 = arith.constant 0 : index
    %8 = vector.load %arg3[%c0, %c0_4, %7, %c0_5] : memref<1x4x16x16xf32, #tpu.memory_space<vmem>>, vector<1x1x16x16xf32>
    %9 = vector.shape_cast %8 : vector<1x1x16x16xf32> to vector<16x16xf32>
    %c1_i32 = arith.constant 1 : i32
    %10 = arith.subi %1, %c1_i32 : i32
    %c0_i32 = arith.constant 0 : i32
    %11 = arith.maxsi %10, %c0_i32 : i32
    %c0_6 = arith.constant 0 : index
    %c0_7 = arith.constant 0 : index
    %12 = arith.index_cast %11 : i32 to index
    %c0_8 = arith.constant 0 : index
    %13 = vector.load %arg3[%c0_6, %c0_7, %12, %c0_8] : memref<1x4x16x16xf32, #tpu.memory_space<vmem>>, vector<1x1x1x16xf32>
    %14 = vector.shape_cast %13 : vector<1x1x1x16xf32> to vector<1x16xf32>
    %c16_i32_9 = arith.constant 16 : i32
    %15 = arith.addi %1, %c16_i32_9 : i32
    %c15_i32 = arith.constant 15 : i32
    %16 = arith.minsi %15, %c15_i32 : i32
    %c0_10 = arith.constant 0 : index
    %c0_11 = arith.constant 0 : index
    %17 = arith.index_cast %16 : i32 to index
    %c0_12 = arith.constant 0 : index
    %18 = vector.load %arg3[%c0_10, %c0_11, %17, %c0_12] : memref<1x4x16x16xf32, #tpu.memory_space<vmem>>, vector<1x1x1x16xf32>
    %19 = vector.shape_cast %18 : vector<1x1x1x16xf32> to vector<1x16xf32>
    %c0_i32_13 = arith.constant 0 : i32
    %20 = arith.cmpi sgt, %1, %c0_i32_13 : i32
    %cst_14 = arith.constant 0.000000e+00 : f32
    %21 = vector.broadcast %cst_14 : f32 to vector<1x16xf32>
    %22 = arith.select %20, %14, %21 : vector<1x16xf32>
    %c16_i32_15 = arith.constant 16 : i32
    %23 = arith.addi %1, %c16_i32_15 : i32
    %c16_i32_16 = arith.constant 16 : i32
    %24 = arith.cmpi slt, %23, %c16_i32_16 : i32
    %cst_17 = arith.constant 0.000000e+00 : f32
    %25 = vector.broadcast %cst_17 : f32 to vector<1x16xf32>
    %26 = arith.select %24, %19, %25 : vector<1x16xf32>
    %27 = vector.extract_strided_slice %9 {offsets = [0, 0], sizes = [15, 16], strides = [1, 1]} : vector<16x16xf32> to vector<15x16xf32>
    %28 = tpu.concatenate %22, %27 in 0 : vector<1x16xf32>, vector<15x16xf32> -> vector<16x16xf32>
    %29 = vector.extract_strided_slice %9 {offsets = [1, 0], sizes = [15, 16], strides = [1, 1]} : vector<16x16xf32> to vector<15x16xf32>
    %30 = tpu.concatenate %29, %26 in 0 : vector<15x16xf32>, vector<1x16xf32> -> vector<16x16xf32>
    %31 = vector.extract_strided_slice %28 {offsets = [0, 0], sizes = [16, 15], strides = [1, 1]} : vector<16x16xf32> to vector<16x15xf32>
    %32 = tpu.concatenate %6, %31 in 1 : vector<16x1xf32>, vector<16x15xf32> -> vector<16x16xf32>
    %33 = vector.extract_strided_slice %28 {offsets = [0, 1], sizes = [16, 15], strides = [1, 1]} : vector<16x16xf32> to vector<16x15xf32>
    %34 = tpu.concatenate %33, %6 in 1 : vector<16x15xf32>, vector<16x1xf32> -> vector<16x16xf32>
    %c0_18 = arith.constant 0 : index
    %35 = memref.load %arg2[%c0_18] : memref<144xf32, #tpu.memory_space<smem>>
    %36 = vector.broadcast %35 : f32 to vector<16x16xf32>
    %37 = arith.mulf %36, %32 : vector<16x16xf32>
    %38 = arith.addf %2, %37 : vector<16x16xf32>
    %c36 = arith.constant 36 : index
    %39 = memref.load %arg2[%c36] : memref<144xf32, #tpu.memory_space<smem>>
    %40 = vector.broadcast %39 : f32 to vector<16x16xf32>
    %41 = arith.mulf %40, %32 : vector<16x16xf32>
    %42 = arith.addf %3, %41 : vector<16x16xf32>
    %c72 = arith.constant 72 : index
    %43 = memref.load %arg2[%c72] : memref<144xf32, #tpu.memory_space<smem>>
    %44 = vector.broadcast %43 : f32 to vector<16x16xf32>
    %45 = arith.mulf %44, %32 : vector<16x16xf32>
    %46 = arith.addf %4, %45 : vector<16x16xf32>
    %c108 = arith.constant 108 : index
    %47 = memref.load %arg2[%c108] : memref<144xf32, #tpu.memory_space<smem>>
    %48 = vector.broadcast %47 : f32 to vector<16x16xf32>
    %49 = arith.mulf %48, %32 : vector<16x16xf32>
    %50 = arith.addf %5, %49 : vector<16x16xf32>
    %c1 = arith.constant 1 : index
    %51 = memref.load %arg2[%c1] : memref<144xf32, #tpu.memory_space<smem>>
    %52 = vector.broadcast %51 : f32 to vector<16x16xf32>
    %53 = arith.mulf %52, %28 : vector<16x16xf32>
    %54 = arith.addf %38, %53 : vector<16x16xf32>
    %c37 = arith.constant 37 : index
    %55 = memref.load %arg2[%c37] : memref<144xf32, #tpu.memory_space<smem>>
    %56 = vector.broadcast %55 : f32 to vector<16x16xf32>
    %57 = arith.mulf %56, %28 : vector<16x16xf32>
    %58 = arith.addf %42, %57 : vector<16x16xf32>
    %c73 = arith.constant 73 : index
    %59 = memref.load %arg2[%c73] : memref<144xf32, #tpu.memory_space<smem>>
    %60 = vector.broadcast %59 : f32 to vector<16x16xf32>
    %61 = arith.mulf %60, %28 : vector<16x16xf32>
    %62 = arith.addf %46, %61 : vector<16x16xf32>
    %c109 = arith.constant 109 : index
    %63 = memref.load %arg2[%c109] : memref<144xf32, #tpu.memory_space<smem>>
    %64 = vector.broadcast %63 : f32 to vector<16x16xf32>
    %65 = arith.mulf %64, %28 : vector<16x16xf32>
    %66 = arith.addf %50, %65 : vector<16x16xf32>
    %c2 = arith.constant 2 : index
    %67 = memref.load %arg2[%c2] : memref<144xf32, #tpu.memory_space<smem>>
    %68 = vector.broadcast %67 : f32 to vector<16x16xf32>
    %69 = arith.mulf %68, %34 : vector<16x16xf32>
    %70 = arith.addf %54, %69 : vector<16x16xf32>
    %c38 = arith.constant 38 : index
    %71 = memref.load %arg2[%c38] : memref<144xf32, #tpu.memory_space<smem>>
    %72 = vector.broadcast %71 : f32 to vector<16x16xf32>
    %73 = arith.mulf %72, %34 : vector<16x16xf32>
    %74 = arith.addf %58, %73 : vector<16x16xf32>
    %c74 = arith.constant 74 : index
    %75 = memref.load %arg2[%c74] : memref<144xf32, #tpu.memory_space<smem>>
    %76 = vector.broadcast %75 : f32 to vector<16x16xf32>
    %77 = arith.mulf %76, %34 : vector<16x16xf32>
    %78 = arith.addf %62, %77 : vector<16x16xf32>
    %c110 = arith.constant 110 : index
    %79 = memref.load %arg2[%c110] : memref<144xf32, #tpu.memory_space<smem>>
    %80 = vector.broadcast %79 : f32 to vector<16x16xf32>
    %81 = arith.mulf %80, %34 : vector<16x16xf32>
    %82 = arith.addf %66, %81 : vector<16x16xf32>
    %83 = vector.extract_strided_slice %9 {offsets = [0, 0], sizes = [16, 15], strides = [1, 1]} : vector<16x16xf32> to vector<16x15xf32>
    %84 = tpu.concatenate %6, %83 in 1 : vector<16x1xf32>, vector<16x15xf32> -> vector<16x16xf32>
    %85 = vector.extract_strided_slice %9 {offsets = [0, 1], sizes = [16, 15], strides = [1, 1]} : vector<16x16xf32> to vector<16x15xf32>
    %86 = tpu.concatenate %85, %6 in 1 : vector<16x15xf32>, vector<16x1xf32> -> vector<16x16xf32>
    %c3 = arith.constant 3 : index
    %87 = memref.load %arg2[%c3] : memref<144xf32, #tpu.memory_space<smem>>
    %88 = vector.broadcast %87 : f32 to vector<16x16xf32>
    %89 = arith.mulf %88, %84 : vector<16x16xf32>
    %90 = arith.addf %70, %89 : vector<16x16xf32>
    %c39 = arith.constant 39 : index
    %91 = memref.load %arg2[%c39] : memref<144xf32, #tpu.memory_space<smem>>
    %92 = vector.broadcast %91 : f32 to vector<16x16xf32>
    %93 = arith.mulf %92, %84 : vector<16x16xf32>
    %94 = arith.addf %74, %93 : vector<16x16xf32>
    %c75 = arith.constant 75 : index
    %95 = memref.load %arg2[%c75] : memref<144xf32, #tpu.memory_space<smem>>
    %96 = vector.broadcast %95 : f32 to vector<16x16xf32>
    %97 = arith.mulf %96, %84 : vector<16x16xf32>
    %98 = arith.addf %78, %97 : vector<16x16xf32>
    %c111 = arith.constant 111 : index
    %99 = memref.load %arg2[%c111] : memref<144xf32, #tpu.memory_space<smem>>
    %100 = vector.broadcast %99 : f32 to vector<16x16xf32>
    %101 = arith.mulf %100, %84 : vector<16x16xf32>
    %102 = arith.addf %82, %101 : vector<16x16xf32>
    %c4 = arith.constant 4 : index
    %103 = memref.load %arg2[%c4] : memref<144xf32, #tpu.memory_space<smem>>
    %104 = vector.broadcast %103 : f32 to vector<16x16xf32>
    %105 = arith.mulf %104, %9 : vector<16x16xf32>
    %106 = arith.addf %90, %105 : vector<16x16xf32>
    %c40 = arith.constant 40 : index
    %107 = memref.load %arg2[%c40] : memref<144xf32, #tpu.memory_space<smem>>
    %108 = vector.broadcast %107 : f32 to vector<16x16xf32>
    %109 = arith.mulf %108, %9 : vector<16x16xf32>
    %110 = arith.addf %94, %109 : vector<16x16xf32>
    %c76 = arith.constant 76 : index
    %111 = memref.load %arg2[%c76] : memref<144xf32, #tpu.memory_space<smem>>
    %112 = vector.broadcast %111 : f32 to vector<16x16xf32>
    %113 = arith.mulf %112, %9 : vector<16x16xf32>
    %114 = arith.addf %98, %113 : vector<16x16xf32>
    %c112 = arith.constant 112 : index
    %115 = memref.load %arg2[%c112] : memref<144xf32, #tpu.memory_space<smem>>
    %116 = vector.broadcast %115 : f32 to vector<16x16xf32>
    %117 = arith.mulf %116, %9 : vector<16x16xf32>
    %118 = arith.addf %102, %117 : vector<16x16xf32>
    %c5 = arith.constant 5 : index
    %119 = memref.load %arg2[%c5] : memref<144xf32, #tpu.memory_space<smem>>
    %120 = vector.broadcast %119 : f32 to vector<16x16xf32>
    %121 = arith.mulf %120, %86 : vector<16x16xf32>
    %122 = arith.addf %106, %121 : vector<16x16xf32>
    %c41 = arith.constant 41 : index
    %123 = memref.load %arg2[%c41] : memref<144xf32, #tpu.memory_space<smem>>
    %124 = vector.broadcast %123 : f32 to vector<16x16xf32>
    %125 = arith.mulf %124, %86 : vector<16x16xf32>
    %126 = arith.addf %110, %125 : vector<16x16xf32>
    %c77 = arith.constant 77 : index
    %127 = memref.load %arg2[%c77] : memref<144xf32, #tpu.memory_space<smem>>
    %128 = vector.broadcast %127 : f32 to vector<16x16xf32>
    %129 = arith.mulf %128, %86 : vector<16x16xf32>
    %130 = arith.addf %114, %129 : vector<16x16xf32>
    %c113 = arith.constant 113 : index
    %131 = memref.load %arg2[%c113] : memref<144xf32, #tpu.memory_space<smem>>
    %132 = vector.broadcast %131 : f32 to vector<16x16xf32>
    %133 = arith.mulf %132, %86 : vector<16x16xf32>
    %134 = arith.addf %118, %133 : vector<16x16xf32>
    %135 = vector.extract_strided_slice %30 {offsets = [0, 0], sizes = [16, 15], strides = [1, 1]} : vector<16x16xf32> to vector<16x15xf32>
    %136 = tpu.concatenate %6, %135 in 1 : vector<16x1xf32>, vector<16x15xf32> -> vector<16x16xf32>
    %137 = vector.extract_strided_slice %30 {offsets = [0, 1], sizes = [16, 15], strides = [1, 1]} : vector<16x16xf32> to vector<16x15xf32>
    %138 = tpu.concatenate %137, %6 in 1 : vector<16x15xf32>, vector<16x1xf32> -> vector<16x16xf32>
    %c6 = arith.constant 6 : index
    %139 = memref.load %arg2[%c6] : memref<144xf32, #tpu.memory_space<smem>>
    %140 = vector.broadcast %139 : f32 to vector<16x16xf32>
    %141 = arith.mulf %140, %136 : vector<16x16xf32>
    %142 = arith.addf %122, %141 : vector<16x16xf32>
    %c42 = arith.constant 42 : index
    %143 = memref.load %arg2[%c42] : memref<144xf32, #tpu.memory_space<smem>>
    %144 = vector.broadcast %143 : f32 to vector<16x16xf32>
    %145 = arith.mulf %144, %136 : vector<16x16xf32>
    %146 = arith.addf %126, %145 : vector<16x16xf32>
    %c78 = arith.constant 78 : index
    %147 = memref.load %arg2[%c78] : memref<144xf32, #tpu.memory_space<smem>>
    %148 = vector.broadcast %147 : f32 to vector<16x16xf32>
    %149 = arith.mulf %148, %136 : vector<16x16xf32>
    %150 = arith.addf %130, %149 : vector<16x16xf32>
    %c114 = arith.constant 114 : index
    %151 = memref.load %arg2[%c114] : memref<144xf32, #tpu.memory_space<smem>>
    %152 = vector.broadcast %151 : f32 to vector<16x16xf32>
    %153 = arith.mulf %152, %136 : vector<16x16xf32>
    %154 = arith.addf %134, %153 : vector<16x16xf32>
    %c7 = arith.constant 7 : index
    %155 = memref.load %arg2[%c7] : memref<144xf32, #tpu.memory_space<smem>>
    %156 = vector.broadcast %155 : f32 to vector<16x16xf32>
    %157 = arith.mulf %156, %30 : vector<16x16xf32>
    %158 = arith.addf %142, %157 : vector<16x16xf32>
    %c43 = arith.constant 43 : index
    %159 = memref.load %arg2[%c43] : memref<144xf32, #tpu.memory_space<smem>>
    %160 = vector.broadcast %159 : f32 to vector<16x16xf32>
    %161 = arith.mulf %160, %30 : vector<16x16xf32>
    %162 = arith.addf %146, %161 : vector<16x16xf32>
    %c79 = arith.constant 79 : index
    %163 = memref.load %arg2[%c79] : memref<144xf32, #tpu.memory_space<smem>>
    %164 = vector.broadcast %163 : f32 to vector<16x16xf32>
    %165 = arith.mulf %164, %30 : vector<16x16xf32>
    %166 = arith.addf %150, %165 : vector<16x16xf32>
    %c115 = arith.constant 115 : index
    %167 = memref.load %arg2[%c115] : memref<144xf32, #tpu.memory_space<smem>>
    %168 = vector.broadcast %167 : f32 to vector<16x16xf32>
    %169 = arith.mulf %168, %30 : vector<16x16xf32>
    %170 = arith.addf %154, %169 : vector<16x16xf32>
    %c8 = arith.constant 8 : index
    %171 = memref.load %arg2[%c8] : memref<144xf32, #tpu.memory_space<smem>>
    %172 = vector.broadcast %171 : f32 to vector<16x16xf32>
    %173 = arith.mulf %172, %138 : vector<16x16xf32>
    %174 = arith.addf %158, %173 : vector<16x16xf32>
    %c44 = arith.constant 44 : index
    %175 = memref.load %arg2[%c44] : memref<144xf32, #tpu.memory_space<smem>>
    %176 = vector.broadcast %175 : f32 to vector<16x16xf32>
    %177 = arith.mulf %176, %138 : vector<16x16xf32>
    %178 = arith.addf %162, %177 : vector<16x16xf32>
    %c80 = arith.constant 80 : index
    %179 = memref.load %arg2[%c80] : memref<144xf32, #tpu.memory_space<smem>>
    %180 = vector.broadcast %179 : f32 to vector<16x16xf32>
    %181 = arith.mulf %180, %138 : vector<16x16xf32>
    %182 = arith.addf %166, %181 : vector<16x16xf32>
    %c116 = arith.constant 116 : index
    %183 = memref.load %arg2[%c116] : memref<144xf32, #tpu.memory_space<smem>>
    %184 = vector.broadcast %183 : f32 to vector<16x16xf32>
    %185 = arith.mulf %184, %138 : vector<16x16xf32>
    %186 = arith.addf %170, %185 : vector<16x16xf32>
    %c0_19 = arith.constant 0 : index
    %c1_20 = arith.constant 1 : index
    %187 = arith.index_cast %1 : i32 to index
    %c0_21 = arith.constant 0 : index
    %188 = vector.load %arg3[%c0_19, %c1_20, %187, %c0_21] : memref<1x4x16x16xf32, #tpu.memory_space<vmem>>, vector<1x1x16x16xf32>
    %189 = vector.shape_cast %188 : vector<1x1x16x16xf32> to vector<16x16xf32>
    %c1_i32_22 = arith.constant 1 : i32
    %190 = arith.subi %1, %c1_i32_22 : i32
    %c0_i32_23 = arith.constant 0 : i32
    %191 = arith.maxsi %190, %c0_i32_23 : i32
    %c0_24 = arith.constant 0 : index
    %c1_25 = arith.constant 1 : index
    %192 = arith.index_cast %191 : i32 to index
    %c0_26 = arith.constant 0 : index
    %193 = vector.load %arg3[%c0_24, %c1_25, %192, %c0_26] : memref<1x4x16x16xf32, #tpu.memory_space<vmem>>, vector<1x1x1x16xf32>
    %194 = vector.shape_cast %193 : vector<1x1x1x16xf32> to vector<1x16xf32>
    %c16_i32_27 = arith.constant 16 : i32
    %195 = arith.addi %1, %c16_i32_27 : i32
    %c15_i32_28 = arith.constant 15 : i32
    %196 = arith.minsi %195, %c15_i32_28 : i32
    %c0_29 = arith.constant 0 : index
    %c1_30 = arith.constant 1 : index
    %197 = arith.index_cast %196 : i32 to index
    %c0_31 = arith.constant 0 : index
    %198 = vector.load %arg3[%c0_29, %c1_30, %197, %c0_31] : memref<1x4x16x16xf32, #tpu.memory_space<vmem>>, vector<1x1x1x16xf32>
    %199 = vector.shape_cast %198 : vector<1x1x1x16xf32> to vector<1x16xf32>
    %c0_i32_32 = arith.constant 0 : i32
    %200 = arith.cmpi sgt, %1, %c0_i32_32 : i32
    %cst_33 = arith.constant 0.000000e+00 : f32
    %201 = vector.broadcast %cst_33 : f32 to vector<1x16xf32>
    %202 = arith.select %200, %194, %201 : vector<1x16xf32>
    %c16_i32_34 = arith.constant 16 : i32
    %203 = arith.addi %1, %c16_i32_34 : i32
    %c16_i32_35 = arith.constant 16 : i32
    %204 = arith.cmpi slt, %203, %c16_i32_35 : i32
    %cst_36 = arith.constant 0.000000e+00 : f32
    %205 = vector.broadcast %cst_36 : f32 to vector<1x16xf32>
    %206 = arith.select %204, %199, %205 : vector<1x16xf32>
    %207 = vector.extract_strided_slice %189 {offsets = [0, 0], sizes = [15, 16], strides = [1, 1]} : vector<16x16xf32> to vector<15x16xf32>
    %208 = tpu.concatenate %202, %207 in 0 : vector<1x16xf32>, vector<15x16xf32> -> vector<16x16xf32>
    %209 = vector.extract_strided_slice %189 {offsets = [1, 0], sizes = [15, 16], strides = [1, 1]} : vector<16x16xf32> to vector<15x16xf32>
    %210 = tpu.concatenate %209, %206 in 0 : vector<15x16xf32>, vector<1x16xf32> -> vector<16x16xf32>
    %211 = vector.extract_strided_slice %208 {offsets = [0, 0], sizes = [16, 15], strides = [1, 1]} : vector<16x16xf32> to vector<16x15xf32>
    %212 = tpu.concatenate %6, %211 in 1 : vector<16x1xf32>, vector<16x15xf32> -> vector<16x16xf32>
    %213 = vector.extract_strided_slice %208 {offsets = [0, 1], sizes = [16, 15], strides = [1, 1]} : vector<16x16xf32> to vector<16x15xf32>
    %214 = tpu.concatenate %213, %6 in 1 : vector<16x15xf32>, vector<16x1xf32> -> vector<16x16xf32>
    %c9 = arith.constant 9 : index
    %215 = memref.load %arg2[%c9] : memref<144xf32, #tpu.memory_space<smem>>
    %216 = vector.broadcast %215 : f32 to vector<16x16xf32>
    %217 = arith.mulf %216, %212 : vector<16x16xf32>
    %218 = arith.addf %174, %217 : vector<16x16xf32>
    %c45 = arith.constant 45 : index
    %219 = memref.load %arg2[%c45] : memref<144xf32, #tpu.memory_space<smem>>
    %220 = vector.broadcast %219 : f32 to vector<16x16xf32>
    %221 = arith.mulf %220, %212 : vector<16x16xf32>
    %222 = arith.addf %178, %221 : vector<16x16xf32>
    %c81 = arith.constant 81 : index
    %223 = memref.load %arg2[%c81] : memref<144xf32, #tpu.memory_space<smem>>
    %224 = vector.broadcast %223 : f32 to vector<16x16xf32>
    %225 = arith.mulf %224, %212 : vector<16x16xf32>
    %226 = arith.addf %182, %225 : vector<16x16xf32>
    %c117 = arith.constant 117 : index
    %227 = memref.load %arg2[%c117] : memref<144xf32, #tpu.memory_space<smem>>
    %228 = vector.broadcast %227 : f32 to vector<16x16xf32>
    %229 = arith.mulf %228, %212 : vector<16x16xf32>
    %230 = arith.addf %186, %229 : vector<16x16xf32>
    %c10 = arith.constant 10 : index
    %231 = memref.load %arg2[%c10] : memref<144xf32, #tpu.memory_space<smem>>
    %232 = vector.broadcast %231 : f32 to vector<16x16xf32>
    %233 = arith.mulf %232, %208 : vector<16x16xf32>
    %234 = arith.addf %218, %233 : vector<16x16xf32>
    %c46 = arith.constant 46 : index
    %235 = memref.load %arg2[%c46] : memref<144xf32, #tpu.memory_space<smem>>
    %236 = vector.broadcast %235 : f32 to vector<16x16xf32>
    %237 = arith.mulf %236, %208 : vector<16x16xf32>
    %238 = arith.addf %222, %237 : vector<16x16xf32>
    %c82 = arith.constant 82 : index
    %239 = memref.load %arg2[%c82] : memref<144xf32, #tpu.memory_space<smem>>
    %240 = vector.broadcast %239 : f32 to vector<16x16xf32>
    %241 = arith.mulf %240, %208 : vector<16x16xf32>
    %242 = arith.addf %226, %241 : vector<16x16xf32>
    %c118 = arith.constant 118 : index
    %243 = memref.load %arg2[%c118] : memref<144xf32, #tpu.memory_space<smem>>
    %244 = vector.broadcast %243 : f32 to vector<16x16xf32>
    %245 = arith.mulf %244, %208 : vector<16x16xf32>
    %246 = arith.addf %230, %245 : vector<16x16xf32>
    %c11 = arith.constant 11 : index
    %247 = memref.load %arg2[%c11] : memref<144xf32, #tpu.memory_space<smem>>
    %248 = vector.broadcast %247 : f32 to vector<16x16xf32>
    %249 = arith.mulf %248, %214 : vector<16x16xf32>
    %250 = arith.addf %234, %249 : vector<16x16xf32>
    %c47 = arith.constant 47 : index
    %251 = memref.load %arg2[%c47] : memref<144xf32, #tpu.memory_space<smem>>
    %252 = vector.broadcast %251 : f32 to vector<16x16xf32>
    %253 = arith.mulf %252, %214 : vector<16x16xf32>
    %254 = arith.addf %238, %253 : vector<16x16xf32>
    %c83 = arith.constant 83 : index
    %255 = memref.load %arg2[%c83] : memref<144xf32, #tpu.memory_space<smem>>
    %256 = vector.broadcast %255 : f32 to vector<16x16xf32>
    %257 = arith.mulf %256, %214 : vector<16x16xf32>
    %258 = arith.addf %242, %257 : vector<16x16xf32>
    %c119 = arith.constant 119 : index
    %259 = memref.load %arg2[%c119] : memref<144xf32, #tpu.memory_space<smem>>
    %260 = vector.broadcast %259 : f32 to vector<16x16xf32>
    %261 = arith.mulf %260, %214 : vector<16x16xf32>
    %262 = arith.addf %246, %261 : vector<16x16xf32>
    %263 = vector.extract_strided_slice %189 {offsets = [0, 0], sizes = [16, 15], strides = [1, 1]} : vector<16x16xf32> to vector<16x15xf32>
    %264 = tpu.concatenate %6, %263 in 1 : vector<16x1xf32>, vector<16x15xf32> -> vector<16x16xf32>
    %265 = vector.extract_strided_slice %189 {offsets = [0, 1], sizes = [16, 15], strides = [1, 1]} : vector<16x16xf32> to vector<16x15xf32>
    %266 = tpu.concatenate %265, %6 in 1 : vector<16x15xf32>, vector<16x1xf32> -> vector<16x16xf32>
    %c12 = arith.constant 12 : index
    %267 = memref.load %arg2[%c12] : memref<144xf32, #tpu.memory_space<smem>>
    %268 = vector.broadcast %267 : f32 to vector<16x16xf32>
    %269 = arith.mulf %268, %264 : vector<16x16xf32>
    %270 = arith.addf %250, %269 : vector<16x16xf32>
    %c48 = arith.constant 48 : index
    %271 = memref.load %arg2[%c48] : memref<144xf32, #tpu.memory_space<smem>>
    %272 = vector.broadcast %271 : f32 to vector<16x16xf32>
    %273 = arith.mulf %272, %264 : vector<16x16xf32>
    %274 = arith.addf %254, %273 : vector<16x16xf32>
    %c84 = arith.constant 84 : index
    %275 = memref.load %arg2[%c84] : memref<144xf32, #tpu.memory_space<smem>>
    %276 = vector.broadcast %275 : f32 to vector<16x16xf32>
    %277 = arith.mulf %276, %264 : vector<16x16xf32>
    %278 = arith.addf %258, %277 : vector<16x16xf32>
    %c120 = arith.constant 120 : index
    %279 = memref.load %arg2[%c120] : memref<144xf32, #tpu.memory_space<smem>>
    %280 = vector.broadcast %279 : f32 to vector<16x16xf32>
    %281 = arith.mulf %280, %264 : vector<16x16xf32>
    %282 = arith.addf %262, %281 : vector<16x16xf32>
    %c13 = arith.constant 13 : index
    %283 = memref.load %arg2[%c13] : memref<144xf32, #tpu.memory_space<smem>>
    %284 = vector.broadcast %283 : f32 to vector<16x16xf32>
    %285 = arith.mulf %284, %189 : vector<16x16xf32>
    %286 = arith.addf %270, %285 : vector<16x16xf32>
    %c49 = arith.constant 49 : index
    %287 = memref.load %arg2[%c49] : memref<144xf32, #tpu.memory_space<smem>>
    %288 = vector.broadcast %287 : f32 to vector<16x16xf32>
    %289 = arith.mulf %288, %189 : vector<16x16xf32>
    %290 = arith.addf %274, %289 : vector<16x16xf32>
    %c85 = arith.constant 85 : index
    %291 = memref.load %arg2[%c85] : memref<144xf32, #tpu.memory_space<smem>>
    %292 = vector.broadcast %291 : f32 to vector<16x16xf32>
    %293 = arith.mulf %292, %189 : vector<16x16xf32>
    %294 = arith.addf %278, %293 : vector<16x16xf32>
    %c121 = arith.constant 121 : index
    %295 = memref.load %arg2[%c121] : memref<144xf32, #tpu.memory_space<smem>>
    %296 = vector.broadcast %295 : f32 to vector<16x16xf32>
    %297 = arith.mulf %296, %189 : vector<16x16xf32>
    %298 = arith.addf %282, %297 : vector<16x16xf32>
    %c14 = arith.constant 14 : index
    %299 = memref.load %arg2[%c14] : memref<144xf32, #tpu.memory_space<smem>>
    %300 = vector.broadcast %299 : f32 to vector<16x16xf32>
    %301 = arith.mulf %300, %266 : vector<16x16xf32>
    %302 = arith.addf %286, %301 : vector<16x16xf32>
    %c50 = arith.constant 50 : index
    %303 = memref.load %arg2[%c50] : memref<144xf32, #tpu.memory_space<smem>>
    %304 = vector.broadcast %303 : f32 to vector<16x16xf32>
    %305 = arith.mulf %304, %266 : vector<16x16xf32>
    %306 = arith.addf %290, %305 : vector<16x16xf32>
    %c86 = arith.constant 86 : index
    %307 = memref.load %arg2[%c86] : memref<144xf32, #tpu.memory_space<smem>>
    %308 = vector.broadcast %307 : f32 to vector<16x16xf32>
    %309 = arith.mulf %308, %266 : vector<16x16xf32>
    %310 = arith.addf %294, %309 : vector<16x16xf32>
    %c122 = arith.constant 122 : index
    %311 = memref.load %arg2[%c122] : memref<144xf32, #tpu.memory_space<smem>>
    %312 = vector.broadcast %311 : f32 to vector<16x16xf32>
    %313 = arith.mulf %312, %266 : vector<16x16xf32>
    %314 = arith.addf %298, %313 : vector<16x16xf32>
    %315 = vector.extract_strided_slice %210 {offsets = [0, 0], sizes = [16, 15], strides = [1, 1]} : vector<16x16xf32> to vector<16x15xf32>
    %316 = tpu.concatenate %6, %315 in 1 : vector<16x1xf32>, vector<16x15xf32> -> vector<16x16xf32>
    %317 = vector.extract_strided_slice %210 {offsets = [0, 1], sizes = [16, 15], strides = [1, 1]} : vector<16x16xf32> to vector<16x15xf32>
    %318 = tpu.concatenate %317, %6 in 1 : vector<16x15xf32>, vector<16x1xf32> -> vector<16x16xf32>
    %c15 = arith.constant 15 : index
    %319 = memref.load %arg2[%c15] : memref<144xf32, #tpu.memory_space<smem>>
    %320 = vector.broadcast %319 : f32 to vector<16x16xf32>
    %321 = arith.mulf %320, %316 : vector<16x16xf32>
    %322 = arith.addf %302, %321 : vector<16x16xf32>
    %c51 = arith.constant 51 : index
    %323 = memref.load %arg2[%c51] : memref<144xf32, #tpu.memory_space<smem>>
    %324 = vector.broadcast %323 : f32 to vector<16x16xf32>
    %325 = arith.mulf %324, %316 : vector<16x16xf32>
    %326 = arith.addf %306, %325 : vector<16x16xf32>
    %c87 = arith.constant 87 : index
    %327 = memref.load %arg2[%c87] : memref<144xf32, #tpu.memory_space<smem>>
    %328 = vector.broadcast %327 : f32 to vector<16x16xf32>
    %329 = arith.mulf %328, %316 : vector<16x16xf32>
    %330 = arith.addf %310, %329 : vector<16x16xf32>
    %c123 = arith.constant 123 : index
    %331 = memref.load %arg2[%c123] : memref<144xf32, #tpu.memory_space<smem>>
    %332 = vector.broadcast %331 : f32 to vector<16x16xf32>
    %333 = arith.mulf %332, %316 : vector<16x16xf32>
    %334 = arith.addf %314, %333 : vector<16x16xf32>
    %c16 = arith.constant 16 : index
    %335 = memref.load %arg2[%c16] : memref<144xf32, #tpu.memory_space<smem>>
    %336 = vector.broadcast %335 : f32 to vector<16x16xf32>
    %337 = arith.mulf %336, %210 : vector<16x16xf32>
    %338 = arith.addf %322, %337 : vector<16x16xf32>
    %c52 = arith.constant 52 : index
    %339 = memref.load %arg2[%c52] : memref<144xf32, #tpu.memory_space<smem>>
    %340 = vector.broadcast %339 : f32 to vector<16x16xf32>
    %341 = arith.mulf %340, %210 : vector<16x16xf32>
    %342 = arith.addf %326, %341 : vector<16x16xf32>
    %c88 = arith.constant 88 : index
    %343 = memref.load %arg2[%c88] : memref<144xf32, #tpu.memory_space<smem>>
    %344 = vector.broadcast %343 : f32 to vector<16x16xf32>
    %345 = arith.mulf %344, %210 : vector<16x16xf32>
    %346 = arith.addf %330, %345 : vector<16x16xf32>
    %c124 = arith.constant 124 : index
    %347 = memref.load %arg2[%c124] : memref<144xf32, #tpu.memory_space<smem>>
    %348 = vector.broadcast %347 : f32 to vector<16x16xf32>
    %349 = arith.mulf %348, %210 : vector<16x16xf32>
    %350 = arith.addf %334, %349 : vector<16x16xf32>
    %c17 = arith.constant 17 : index
    %351 = memref.load %arg2[%c17] : memref<144xf32, #tpu.memory_space<smem>>
    %352 = vector.broadcast %351 : f32 to vector<16x16xf32>
    %353 = arith.mulf %352, %318 : vector<16x16xf32>
    %354 = arith.addf %338, %353 : vector<16x16xf32>
    %c53 = arith.constant 53 : index
    %355 = memref.load %arg2[%c53] : memref<144xf32, #tpu.memory_space<smem>>
    %356 = vector.broadcast %355 : f32 to vector<16x16xf32>
    %357 = arith.mulf %356, %318 : vector<16x16xf32>
    %358 = arith.addf %342, %357 : vector<16x16xf32>
    %c89 = arith.constant 89 : index
    %359 = memref.load %arg2[%c89] : memref<144xf32, #tpu.memory_space<smem>>
    %360 = vector.broadcast %359 : f32 to vector<16x16xf32>
    %361 = arith.mulf %360, %318 : vector<16x16xf32>
    %362 = arith.addf %346, %361 : vector<16x16xf32>
    %c125 = arith.constant 125 : index
    %363 = memref.load %arg2[%c125] : memref<144xf32, #tpu.memory_space<smem>>
    %364 = vector.broadcast %363 : f32 to vector<16x16xf32>
    %365 = arith.mulf %364, %318 : vector<16x16xf32>
    %366 = arith.addf %350, %365 : vector<16x16xf32>
    %c0_37 = arith.constant 0 : index
    %c2_38 = arith.constant 2 : index
    %367 = arith.index_cast %1 : i32 to index
    %c0_39 = arith.constant 0 : index
    %368 = vector.load %arg3[%c0_37, %c2_38, %367, %c0_39] : memref<1x4x16x16xf32, #tpu.memory_space<vmem>>, vector<1x1x16x16xf32>
    %369 = vector.shape_cast %368 : vector<1x1x16x16xf32> to vector<16x16xf32>
    %c1_i32_40 = arith.constant 1 : i32
    %370 = arith.subi %1, %c1_i32_40 : i32
    %c0_i32_41 = arith.constant 0 : i32
    %371 = arith.maxsi %370, %c0_i32_41 : i32
    %c0_42 = arith.constant 0 : index
    %c2_43 = arith.constant 2 : index
    %372 = arith.index_cast %371 : i32 to index
    %c0_44 = arith.constant 0 : index
    %373 = vector.load %arg3[%c0_42, %c2_43, %372, %c0_44] : memref<1x4x16x16xf32, #tpu.memory_space<vmem>>, vector<1x1x1x16xf32>
    %374 = vector.shape_cast %373 : vector<1x1x1x16xf32> to vector<1x16xf32>
    %c16_i32_45 = arith.constant 16 : i32
    %375 = arith.addi %1, %c16_i32_45 : i32
    %c15_i32_46 = arith.constant 15 : i32
    %376 = arith.minsi %375, %c15_i32_46 : i32
    %c0_47 = arith.constant 0 : index
    %c2_48 = arith.constant 2 : index
    %377 = arith.index_cast %376 : i32 to index
    %c0_49 = arith.constant 0 : index
    %378 = vector.load %arg3[%c0_47, %c2_48, %377, %c0_49] : memref<1x4x16x16xf32, #tpu.memory_space<vmem>>, vector<1x1x1x16xf32>
    %379 = vector.shape_cast %378 : vector<1x1x1x16xf32> to vector<1x16xf32>
    %c0_i32_50 = arith.constant 0 : i32
    %380 = arith.cmpi sgt, %1, %c0_i32_50 : i32
    %cst_51 = arith.constant 0.000000e+00 : f32
    %381 = vector.broadcast %cst_51 : f32 to vector<1x16xf32>
    %382 = arith.select %380, %374, %381 : vector<1x16xf32>
    %c16_i32_52 = arith.constant 16 : i32
    %383 = arith.addi %1, %c16_i32_52 : i32
    %c16_i32_53 = arith.constant 16 : i32
    %384 = arith.cmpi slt, %383, %c16_i32_53 : i32
    %cst_54 = arith.constant 0.000000e+00 : f32
    %385 = vector.broadcast %cst_54 : f32 to vector<1x16xf32>
    %386 = arith.select %384, %379, %385 : vector<1x16xf32>
    %387 = vector.extract_strided_slice %369 {offsets = [0, 0], sizes = [15, 16], strides = [1, 1]} : vector<16x16xf32> to vector<15x16xf32>
    %388 = tpu.concatenate %382, %387 in 0 : vector<1x16xf32>, vector<15x16xf32> -> vector<16x16xf32>
    %389 = vector.extract_strided_slice %369 {offsets = [1, 0], sizes = [15, 16], strides = [1, 1]} : vector<16x16xf32> to vector<15x16xf32>
    %390 = tpu.concatenate %389, %386 in 0 : vector<15x16xf32>, vector<1x16xf32> -> vector<16x16xf32>
    %391 = vector.extract_strided_slice %388 {offsets = [0, 0], sizes = [16, 15], strides = [1, 1]} : vector<16x16xf32> to vector<16x15xf32>
    %392 = tpu.concatenate %6, %391 in 1 : vector<16x1xf32>, vector<16x15xf32> -> vector<16x16xf32>
    %393 = vector.extract_strided_slice %388 {offsets = [0, 1], sizes = [16, 15], strides = [1, 1]} : vector<16x16xf32> to vector<16x15xf32>
    %394 = tpu.concatenate %393, %6 in 1 : vector<16x15xf32>, vector<16x1xf32> -> vector<16x16xf32>
    %c18 = arith.constant 18 : index
    %395 = memref.load %arg2[%c18] : memref<144xf32, #tpu.memory_space<smem>>
    %396 = vector.broadcast %395 : f32 to vector<16x16xf32>
    %397 = arith.mulf %396, %392 : vector<16x16xf32>
    %398 = arith.addf %354, %397 : vector<16x16xf32>
    %c54 = arith.constant 54 : index
    %399 = memref.load %arg2[%c54] : memref<144xf32, #tpu.memory_space<smem>>
    %400 = vector.broadcast %399 : f32 to vector<16x16xf32>
    %401 = arith.mulf %400, %392 : vector<16x16xf32>
    %402 = arith.addf %358, %401 : vector<16x16xf32>
    %c90 = arith.constant 90 : index
    %403 = memref.load %arg2[%c90] : memref<144xf32, #tpu.memory_space<smem>>
    %404 = vector.broadcast %403 : f32 to vector<16x16xf32>
    %405 = arith.mulf %404, %392 : vector<16x16xf32>
    %406 = arith.addf %362, %405 : vector<16x16xf32>
    %c126 = arith.constant 126 : index
    %407 = memref.load %arg2[%c126] : memref<144xf32, #tpu.memory_space<smem>>
    %408 = vector.broadcast %407 : f32 to vector<16x16xf32>
    %409 = arith.mulf %408, %392 : vector<16x16xf32>
    %410 = arith.addf %366, %409 : vector<16x16xf32>
    %c19 = arith.constant 19 : index
    %411 = memref.load %arg2[%c19] : memref<144xf32, #tpu.memory_space<smem>>
    %412 = vector.broadcast %411 : f32 to vector<16x16xf32>
    %413 = arith.mulf %412, %388 : vector<16x16xf32>
    %414 = arith.addf %398, %413 : vector<16x16xf32>
    %c55 = arith.constant 55 : index
    %415 = memref.load %arg2[%c55] : memref<144xf32, #tpu.memory_space<smem>>
    %416 = vector.broadcast %415 : f32 to vector<16x16xf32>
    %417 = arith.mulf %416, %388 : vector<16x16xf32>
    %418 = arith.addf %402, %417 : vector<16x16xf32>
    %c91 = arith.constant 91 : index
    %419 = memref.load %arg2[%c91] : memref<144xf32, #tpu.memory_space<smem>>
    %420 = vector.broadcast %419 : f32 to vector<16x16xf32>
    %421 = arith.mulf %420, %388 : vector<16x16xf32>
    %422 = arith.addf %406, %421 : vector<16x16xf32>
    %c127 = arith.constant 127 : index
    %423 = memref.load %arg2[%c127] : memref<144xf32, #tpu.memory_space<smem>>
    %424 = vector.broadcast %423 : f32 to vector<16x16xf32>
    %425 = arith.mulf %424, %388 : vector<16x16xf32>
    %426 = arith.addf %410, %425 : vector<16x16xf32>
    %c20 = arith.constant 20 : index
    %427 = memref.load %arg2[%c20] : memref<144xf32, #tpu.memory_space<smem>>
    %428 = vector.broadcast %427 : f32 to vector<16x16xf32>
    %429 = arith.mulf %428, %394 : vector<16x16xf32>
    %430 = arith.addf %414, %429 : vector<16x16xf32>
    %c56 = arith.constant 56 : index
    %431 = memref.load %arg2[%c56] : memref<144xf32, #tpu.memory_space<smem>>
    %432 = vector.broadcast %431 : f32 to vector<16x16xf32>
    %433 = arith.mulf %432, %394 : vector<16x16xf32>
    %434 = arith.addf %418, %433 : vector<16x16xf32>
    %c92 = arith.constant 92 : index
    %435 = memref.load %arg2[%c92] : memref<144xf32, #tpu.memory_space<smem>>
    %436 = vector.broadcast %435 : f32 to vector<16x16xf32>
    %437 = arith.mulf %436, %394 : vector<16x16xf32>
    %438 = arith.addf %422, %437 : vector<16x16xf32>
    %c128 = arith.constant 128 : index
    %439 = memref.load %arg2[%c128] : memref<144xf32, #tpu.memory_space<smem>>
    %440 = vector.broadcast %439 : f32 to vector<16x16xf32>
    %441 = arith.mulf %440, %394 : vector<16x16xf32>
    %442 = arith.addf %426, %441 : vector<16x16xf32>
    %443 = vector.extract_strided_slice %369 {offsets = [0, 0], sizes = [16, 15], strides = [1, 1]} : vector<16x16xf32> to vector<16x15xf32>
    %444 = tpu.concatenate %6, %443 in 1 : vector<16x1xf32>, vector<16x15xf32> -> vector<16x16xf32>
    %445 = vector.extract_strided_slice %369 {offsets = [0, 1], sizes = [16, 15], strides = [1, 1]} : vector<16x16xf32> to vector<16x15xf32>
    %446 = tpu.concatenate %445, %6 in 1 : vector<16x15xf32>, vector<16x1xf32> -> vector<16x16xf32>
    %c21 = arith.constant 21 : index
    %447 = memref.load %arg2[%c21] : memref<144xf32, #tpu.memory_space<smem>>
    %448 = vector.broadcast %447 : f32 to vector<16x16xf32>
    %449 = arith.mulf %448, %444 : vector<16x16xf32>
    %450 = arith.addf %430, %449 : vector<16x16xf32>
    %c57 = arith.constant 57 : index
    %451 = memref.load %arg2[%c57] : memref<144xf32, #tpu.memory_space<smem>>
    %452 = vector.broadcast %451 : f32 to vector<16x16xf32>
    %453 = arith.mulf %452, %444 : vector<16x16xf32>
    %454 = arith.addf %434, %453 : vector<16x16xf32>
    %c93 = arith.constant 93 : index
    %455 = memref.load %arg2[%c93] : memref<144xf32, #tpu.memory_space<smem>>
    %456 = vector.broadcast %455 : f32 to vector<16x16xf32>
    %457 = arith.mulf %456, %444 : vector<16x16xf32>
    %458 = arith.addf %438, %457 : vector<16x16xf32>
    %c129 = arith.constant 129 : index
    %459 = memref.load %arg2[%c129] : memref<144xf32, #tpu.memory_space<smem>>
    %460 = vector.broadcast %459 : f32 to vector<16x16xf32>
    %461 = arith.mulf %460, %444 : vector<16x16xf32>
    %462 = arith.addf %442, %461 : vector<16x16xf32>
    %c22 = arith.constant 22 : index
    %463 = memref.load %arg2[%c22] : memref<144xf32, #tpu.memory_space<smem>>
    %464 = vector.broadcast %463 : f32 to vector<16x16xf32>
    %465 = arith.mulf %464, %369 : vector<16x16xf32>
    %466 = arith.addf %450, %465 : vector<16x16xf32>
    %c58 = arith.constant 58 : index
    %467 = memref.load %arg2[%c58] : memref<144xf32, #tpu.memory_space<smem>>
    %468 = vector.broadcast %467 : f32 to vector<16x16xf32>
    %469 = arith.mulf %468, %369 : vector<16x16xf32>
    %470 = arith.addf %454, %469 : vector<16x16xf32>
    %c94 = arith.constant 94 : index
    %471 = memref.load %arg2[%c94] : memref<144xf32, #tpu.memory_space<smem>>
    %472 = vector.broadcast %471 : f32 to vector<16x16xf32>
    %473 = arith.mulf %472, %369 : vector<16x16xf32>
    %474 = arith.addf %458, %473 : vector<16x16xf32>
    %c130 = arith.constant 130 : index
    %475 = memref.load %arg2[%c130] : memref<144xf32, #tpu.memory_space<smem>>
    %476 = vector.broadcast %475 : f32 to vector<16x16xf32>
    %477 = arith.mulf %476, %369 : vector<16x16xf32>
    %478 = arith.addf %462, %477 : vector<16x16xf32>
    %c23 = arith.constant 23 : index
    %479 = memref.load %arg2[%c23] : memref<144xf32, #tpu.memory_space<smem>>
    %480 = vector.broadcast %479 : f32 to vector<16x16xf32>
    %481 = arith.mulf %480, %446 : vector<16x16xf32>
    %482 = arith.addf %466, %481 : vector<16x16xf32>
    %c59 = arith.constant 59 : index
    %483 = memref.load %arg2[%c59] : memref<144xf32, #tpu.memory_space<smem>>
    %484 = vector.broadcast %483 : f32 to vector<16x16xf32>
    %485 = arith.mulf %484, %446 : vector<16x16xf32>
    %486 = arith.addf %470, %485 : vector<16x16xf32>
    %c95 = arith.constant 95 : index
    %487 = memref.load %arg2[%c95] : memref<144xf32, #tpu.memory_space<smem>>
    %488 = vector.broadcast %487 : f32 to vector<16x16xf32>
    %489 = arith.mulf %488, %446 : vector<16x16xf32>
    %490 = arith.addf %474, %489 : vector<16x16xf32>
    %c131 = arith.constant 131 : index
    %491 = memref.load %arg2[%c131] : memref<144xf32, #tpu.memory_space<smem>>
    %492 = vector.broadcast %491 : f32 to vector<16x16xf32>
    %493 = arith.mulf %492, %446 : vector<16x16xf32>
    %494 = arith.addf %478, %493 : vector<16x16xf32>
    %495 = vector.extract_strided_slice %390 {offsets = [0, 0], sizes = [16, 15], strides = [1, 1]} : vector<16x16xf32> to vector<16x15xf32>
    %496 = tpu.concatenate %6, %495 in 1 : vector<16x1xf32>, vector<16x15xf32> -> vector<16x16xf32>
    %497 = vector.extract_strided_slice %390 {offsets = [0, 1], sizes = [16, 15], strides = [1, 1]} : vector<16x16xf32> to vector<16x15xf32>
    %498 = tpu.concatenate %497, %6 in 1 : vector<16x15xf32>, vector<16x1xf32> -> vector<16x16xf32>
    %c24 = arith.constant 24 : index
    %499 = memref.load %arg2[%c24] : memref<144xf32, #tpu.memory_space<smem>>
    %500 = vector.broadcast %499 : f32 to vector<16x16xf32>
    %501 = arith.mulf %500, %496 : vector<16x16xf32>
    %502 = arith.addf %482, %501 : vector<16x16xf32>
    %c60 = arith.constant 60 : index
    %503 = memref.load %arg2[%c60] : memref<144xf32, #tpu.memory_space<smem>>
    %504 = vector.broadcast %503 : f32 to vector<16x16xf32>
    %505 = arith.mulf %504, %496 : vector<16x16xf32>
    %506 = arith.addf %486, %505 : vector<16x16xf32>
    %c96 = arith.constant 96 : index
    %507 = memref.load %arg2[%c96] : memref<144xf32, #tpu.memory_space<smem>>
    %508 = vector.broadcast %507 : f32 to vector<16x16xf32>
    %509 = arith.mulf %508, %496 : vector<16x16xf32>
    %510 = arith.addf %490, %509 : vector<16x16xf32>
    %c132 = arith.constant 132 : index
    %511 = memref.load %arg2[%c132] : memref<144xf32, #tpu.memory_space<smem>>
    %512 = vector.broadcast %511 : f32 to vector<16x16xf32>
    %513 = arith.mulf %512, %496 : vector<16x16xf32>
    %514 = arith.addf %494, %513 : vector<16x16xf32>
    %c25 = arith.constant 25 : index
    %515 = memref.load %arg2[%c25] : memref<144xf32, #tpu.memory_space<smem>>
    %516 = vector.broadcast %515 : f32 to vector<16x16xf32>
    %517 = arith.mulf %516, %390 : vector<16x16xf32>
    %518 = arith.addf %502, %517 : vector<16x16xf32>
    %c61 = arith.constant 61 : index
    %519 = memref.load %arg2[%c61] : memref<144xf32, #tpu.memory_space<smem>>
    %520 = vector.broadcast %519 : f32 to vector<16x16xf32>
    %521 = arith.mulf %520, %390 : vector<16x16xf32>
    %522 = arith.addf %506, %521 : vector<16x16xf32>
    %c97 = arith.constant 97 : index
    %523 = memref.load %arg2[%c97] : memref<144xf32, #tpu.memory_space<smem>>
    %524 = vector.broadcast %523 : f32 to vector<16x16xf32>
    %525 = arith.mulf %524, %390 : vector<16x16xf32>
    %526 = arith.addf %510, %525 : vector<16x16xf32>
    %c133 = arith.constant 133 : index
    %527 = memref.load %arg2[%c133] : memref<144xf32, #tpu.memory_space<smem>>
    %528 = vector.broadcast %527 : f32 to vector<16x16xf32>
    %529 = arith.mulf %528, %390 : vector<16x16xf32>
    %530 = arith.addf %514, %529 : vector<16x16xf32>
    %c26 = arith.constant 26 : index
    %531 = memref.load %arg2[%c26] : memref<144xf32, #tpu.memory_space<smem>>
    %532 = vector.broadcast %531 : f32 to vector<16x16xf32>
    %533 = arith.mulf %532, %498 : vector<16x16xf32>
    %534 = arith.addf %518, %533 : vector<16x16xf32>
    %c62 = arith.constant 62 : index
    %535 = memref.load %arg2[%c62] : memref<144xf32, #tpu.memory_space<smem>>
    %536 = vector.broadcast %535 : f32 to vector<16x16xf32>
    %537 = arith.mulf %536, %498 : vector<16x16xf32>
    %538 = arith.addf %522, %537 : vector<16x16xf32>
    %c98 = arith.constant 98 : index
    %539 = memref.load %arg2[%c98] : memref<144xf32, #tpu.memory_space<smem>>
    %540 = vector.broadcast %539 : f32 to vector<16x16xf32>
    %541 = arith.mulf %540, %498 : vector<16x16xf32>
    %542 = arith.addf %526, %541 : vector<16x16xf32>
    %c134 = arith.constant 134 : index
    %543 = memref.load %arg2[%c134] : memref<144xf32, #tpu.memory_space<smem>>
    %544 = vector.broadcast %543 : f32 to vector<16x16xf32>
    %545 = arith.mulf %544, %498 : vector<16x16xf32>
    %546 = arith.addf %530, %545 : vector<16x16xf32>
    %c0_55 = arith.constant 0 : index
    %c3_56 = arith.constant 3 : index
    %547 = arith.index_cast %1 : i32 to index
    %c0_57 = arith.constant 0 : index
    %548 = vector.load %arg3[%c0_55, %c3_56, %547, %c0_57] : memref<1x4x16x16xf32, #tpu.memory_space<vmem>>, vector<1x1x16x16xf32>
    %549 = vector.shape_cast %548 : vector<1x1x16x16xf32> to vector<16x16xf32>
    %c1_i32_58 = arith.constant 1 : i32
    %550 = arith.subi %1, %c1_i32_58 : i32
    %c0_i32_59 = arith.constant 0 : i32
    %551 = arith.maxsi %550, %c0_i32_59 : i32
    %c0_60 = arith.constant 0 : index
    %c3_61 = arith.constant 3 : index
    %552 = arith.index_cast %551 : i32 to index
    %c0_62 = arith.constant 0 : index
    %553 = vector.load %arg3[%c0_60, %c3_61, %552, %c0_62] : memref<1x4x16x16xf32, #tpu.memory_space<vmem>>, vector<1x1x1x16xf32>
    %554 = vector.shape_cast %553 : vector<1x1x1x16xf32> to vector<1x16xf32>
    %c16_i32_63 = arith.constant 16 : i32
    %555 = arith.addi %1, %c16_i32_63 : i32
    %c15_i32_64 = arith.constant 15 : i32
    %556 = arith.minsi %555, %c15_i32_64 : i32
    %c0_65 = arith.constant 0 : index
    %c3_66 = arith.constant 3 : index
    %557 = arith.index_cast %556 : i32 to index
    %c0_67 = arith.constant 0 : index
    %558 = vector.load %arg3[%c0_65, %c3_66, %557, %c0_67] : memref<1x4x16x16xf32, #tpu.memory_space<vmem>>, vector<1x1x1x16xf32>
    %559 = vector.shape_cast %558 : vector<1x1x1x16xf32> to vector<1x16xf32>
    %c0_i32_68 = arith.constant 0 : i32
    %560 = arith.cmpi sgt, %1, %c0_i32_68 : i32
    %cst_69 = arith.constant 0.000000e+00 : f32
    %561 = vector.broadcast %cst_69 : f32 to vector<1x16xf32>
    %562 = arith.select %560, %554, %561 : vector<1x16xf32>
    %c16_i32_70 = arith.constant 16 : i32
    %563 = arith.addi %1, %c16_i32_70 : i32
    %c16_i32_71 = arith.constant 16 : i32
    %564 = arith.cmpi slt, %563, %c16_i32_71 : i32
    %cst_72 = arith.constant 0.000000e+00 : f32
    %565 = vector.broadcast %cst_72 : f32 to vector<1x16xf32>
    %566 = arith.select %564, %559, %565 : vector<1x16xf32>
    %567 = vector.extract_strided_slice %549 {offsets = [0, 0], sizes = [15, 16], strides = [1, 1]} : vector<16x16xf32> to vector<15x16xf32>
    %568 = tpu.concatenate %562, %567 in 0 : vector<1x16xf32>, vector<15x16xf32> -> vector<16x16xf32>
    %569 = vector.extract_strided_slice %549 {offsets = [1, 0], sizes = [15, 16], strides = [1, 1]} : vector<16x16xf32> to vector<15x16xf32>
    %570 = tpu.concatenate %569, %566 in 0 : vector<15x16xf32>, vector<1x16xf32> -> vector<16x16xf32>
    %571 = vector.extract_strided_slice %568 {offsets = [0, 0], sizes = [16, 15], strides = [1, 1]} : vector<16x16xf32> to vector<16x15xf32>
    %572 = tpu.concatenate %6, %571 in 1 : vector<16x1xf32>, vector<16x15xf32> -> vector<16x16xf32>
    %573 = vector.extract_strided_slice %568 {offsets = [0, 1], sizes = [16, 15], strides = [1, 1]} : vector<16x16xf32> to vector<16x15xf32>
    %574 = tpu.concatenate %573, %6 in 1 : vector<16x15xf32>, vector<16x1xf32> -> vector<16x16xf32>
    %c27 = arith.constant 27 : index
    %575 = memref.load %arg2[%c27] : memref<144xf32, #tpu.memory_space<smem>>
    %576 = vector.broadcast %575 : f32 to vector<16x16xf32>
    %577 = arith.mulf %576, %572 : vector<16x16xf32>
    %578 = arith.addf %534, %577 : vector<16x16xf32>
    %c63 = arith.constant 63 : index
    %579 = memref.load %arg2[%c63] : memref<144xf32, #tpu.memory_space<smem>>
    %580 = vector.broadcast %579 : f32 to vector<16x16xf32>
    %581 = arith.mulf %580, %572 : vector<16x16xf32>
    %582 = arith.addf %538, %581 : vector<16x16xf32>
    %c99 = arith.constant 99 : index
    %583 = memref.load %arg2[%c99] : memref<144xf32, #tpu.memory_space<smem>>
    %584 = vector.broadcast %583 : f32 to vector<16x16xf32>
    %585 = arith.mulf %584, %572 : vector<16x16xf32>
    %586 = arith.addf %542, %585 : vector<16x16xf32>
    %c135 = arith.constant 135 : index
    %587 = memref.load %arg2[%c135] : memref<144xf32, #tpu.memory_space<smem>>
    %588 = vector.broadcast %587 : f32 to vector<16x16xf32>
    %589 = arith.mulf %588, %572 : vector<16x16xf32>
    %590 = arith.addf %546, %589 : vector<16x16xf32>
    %c28 = arith.constant 28 : index
    %591 = memref.load %arg2[%c28] : memref<144xf32, #tpu.memory_space<smem>>
    %592 = vector.broadcast %591 : f32 to vector<16x16xf32>
    %593 = arith.mulf %592, %568 : vector<16x16xf32>
    %594 = arith.addf %578, %593 : vector<16x16xf32>
    %c64 = arith.constant 64 : index
    %595 = memref.load %arg2[%c64] : memref<144xf32, #tpu.memory_space<smem>>
    %596 = vector.broadcast %595 : f32 to vector<16x16xf32>
    %597 = arith.mulf %596, %568 : vector<16x16xf32>
    %598 = arith.addf %582, %597 : vector<16x16xf32>
    %c100 = arith.constant 100 : index
    %599 = memref.load %arg2[%c100] : memref<144xf32, #tpu.memory_space<smem>>
    %600 = vector.broadcast %599 : f32 to vector<16x16xf32>
    %601 = arith.mulf %600, %568 : vector<16x16xf32>
    %602 = arith.addf %586, %601 : vector<16x16xf32>
    %c136 = arith.constant 136 : index
    %603 = memref.load %arg2[%c136] : memref<144xf32, #tpu.memory_space<smem>>
    %604 = vector.broadcast %603 : f32 to vector<16x16xf32>
    %605 = arith.mulf %604, %568 : vector<16x16xf32>
    %606 = arith.addf %590, %605 : vector<16x16xf32>
    %c29 = arith.constant 29 : index
    %607 = memref.load %arg2[%c29] : memref<144xf32, #tpu.memory_space<smem>>
    %608 = vector.broadcast %607 : f32 to vector<16x16xf32>
    %609 = arith.mulf %608, %574 : vector<16x16xf32>
    %610 = arith.addf %594, %609 : vector<16x16xf32>
    %c65 = arith.constant 65 : index
    %611 = memref.load %arg2[%c65] : memref<144xf32, #tpu.memory_space<smem>>
    %612 = vector.broadcast %611 : f32 to vector<16x16xf32>
    %613 = arith.mulf %612, %574 : vector<16x16xf32>
    %614 = arith.addf %598, %613 : vector<16x16xf32>
    %c101 = arith.constant 101 : index
    %615 = memref.load %arg2[%c101] : memref<144xf32, #tpu.memory_space<smem>>
    %616 = vector.broadcast %615 : f32 to vector<16x16xf32>
    %617 = arith.mulf %616, %574 : vector<16x16xf32>
    %618 = arith.addf %602, %617 : vector<16x16xf32>
    %c137 = arith.constant 137 : index
    %619 = memref.load %arg2[%c137] : memref<144xf32, #tpu.memory_space<smem>>
    %620 = vector.broadcast %619 : f32 to vector<16x16xf32>
    %621 = arith.mulf %620, %574 : vector<16x16xf32>
    %622 = arith.addf %606, %621 : vector<16x16xf32>
    %623 = vector.extract_strided_slice %549 {offsets = [0, 0], sizes = [16, 15], strides = [1, 1]} : vector<16x16xf32> to vector<16x15xf32>
    %624 = tpu.concatenate %6, %623 in 1 : vector<16x1xf32>, vector<16x15xf32> -> vector<16x16xf32>
    %625 = vector.extract_strided_slice %549 {offsets = [0, 1], sizes = [16, 15], strides = [1, 1]} : vector<16x16xf32> to vector<16x15xf32>
    %626 = tpu.concatenate %625, %6 in 1 : vector<16x15xf32>, vector<16x1xf32> -> vector<16x16xf32>
    %c30 = arith.constant 30 : index
    %627 = memref.load %arg2[%c30] : memref<144xf32, #tpu.memory_space<smem>>
    %628 = vector.broadcast %627 : f32 to vector<16x16xf32>
    %629 = arith.mulf %628, %624 : vector<16x16xf32>
    %630 = arith.addf %610, %629 : vector<16x16xf32>
    %c66 = arith.constant 66 : index
    %631 = memref.load %arg2[%c66] : memref<144xf32, #tpu.memory_space<smem>>
    %632 = vector.broadcast %631 : f32 to vector<16x16xf32>
    %633 = arith.mulf %632, %624 : vector<16x16xf32>
    %634 = arith.addf %614, %633 : vector<16x16xf32>
    %c102 = arith.constant 102 : index
    %635 = memref.load %arg2[%c102] : memref<144xf32, #tpu.memory_space<smem>>
    %636 = vector.broadcast %635 : f32 to vector<16x16xf32>
    %637 = arith.mulf %636, %624 : vector<16x16xf32>
    %638 = arith.addf %618, %637 : vector<16x16xf32>
    %c138 = arith.constant 138 : index
    %639 = memref.load %arg2[%c138] : memref<144xf32, #tpu.memory_space<smem>>
    %640 = vector.broadcast %639 : f32 to vector<16x16xf32>
    %641 = arith.mulf %640, %624 : vector<16x16xf32>
    %642 = arith.addf %622, %641 : vector<16x16xf32>
    %c31 = arith.constant 31 : index
    %643 = memref.load %arg2[%c31] : memref<144xf32, #tpu.memory_space<smem>>
    %644 = vector.broadcast %643 : f32 to vector<16x16xf32>
    %645 = arith.mulf %644, %549 : vector<16x16xf32>
    %646 = arith.addf %630, %645 : vector<16x16xf32>
    %c67 = arith.constant 67 : index
    %647 = memref.load %arg2[%c67] : memref<144xf32, #tpu.memory_space<smem>>
    %648 = vector.broadcast %647 : f32 to vector<16x16xf32>
    %649 = arith.mulf %648, %549 : vector<16x16xf32>
    %650 = arith.addf %634, %649 : vector<16x16xf32>
    %c103 = arith.constant 103 : index
    %651 = memref.load %arg2[%c103] : memref<144xf32, #tpu.memory_space<smem>>
    %652 = vector.broadcast %651 : f32 to vector<16x16xf32>
    %653 = arith.mulf %652, %549 : vector<16x16xf32>
    %654 = arith.addf %638, %653 : vector<16x16xf32>
    %c139 = arith.constant 139 : index
    %655 = memref.load %arg2[%c139] : memref<144xf32, #tpu.memory_space<smem>>
    %656 = vector.broadcast %655 : f32 to vector<16x16xf32>
    %657 = arith.mulf %656, %549 : vector<16x16xf32>
    %658 = arith.addf %642, %657 : vector<16x16xf32>
    %c32 = arith.constant 32 : index
    %659 = memref.load %arg2[%c32] : memref<144xf32, #tpu.memory_space<smem>>
    %660 = vector.broadcast %659 : f32 to vector<16x16xf32>
    %661 = arith.mulf %660, %626 : vector<16x16xf32>
    %662 = arith.addf %646, %661 : vector<16x16xf32>
    %c68 = arith.constant 68 : index
    %663 = memref.load %arg2[%c68] : memref<144xf32, #tpu.memory_space<smem>>
    %664 = vector.broadcast %663 : f32 to vector<16x16xf32>
    %665 = arith.mulf %664, %626 : vector<16x16xf32>
    %666 = arith.addf %650, %665 : vector<16x16xf32>
    %c104 = arith.constant 104 : index
    %667 = memref.load %arg2[%c104] : memref<144xf32, #tpu.memory_space<smem>>
    %668 = vector.broadcast %667 : f32 to vector<16x16xf32>
    %669 = arith.mulf %668, %626 : vector<16x16xf32>
    %670 = arith.addf %654, %669 : vector<16x16xf32>
    %c140 = arith.constant 140 : index
    %671 = memref.load %arg2[%c140] : memref<144xf32, #tpu.memory_space<smem>>
    %672 = vector.broadcast %671 : f32 to vector<16x16xf32>
    %673 = arith.mulf %672, %626 : vector<16x16xf32>
    %674 = arith.addf %658, %673 : vector<16x16xf32>
    %675 = vector.extract_strided_slice %570 {offsets = [0, 0], sizes = [16, 15], strides = [1, 1]} : vector<16x16xf32> to vector<16x15xf32>
    %676 = tpu.concatenate %6, %675 in 1 : vector<16x1xf32>, vector<16x15xf32> -> vector<16x16xf32>
    %677 = vector.extract_strided_slice %570 {offsets = [0, 1], sizes = [16, 15], strides = [1, 1]} : vector<16x16xf32> to vector<16x15xf32>
    %678 = tpu.concatenate %677, %6 in 1 : vector<16x15xf32>, vector<16x1xf32> -> vector<16x16xf32>
    %c33 = arith.constant 33 : index
    %679 = memref.load %arg2[%c33] : memref<144xf32, #tpu.memory_space<smem>>
    %680 = vector.broadcast %679 : f32 to vector<16x16xf32>
    %681 = arith.mulf %680, %676 : vector<16x16xf32>
    %682 = arith.addf %662, %681 : vector<16x16xf32>
    %c69 = arith.constant 69 : index
    %683 = memref.load %arg2[%c69] : memref<144xf32, #tpu.memory_space<smem>>
    %684 = vector.broadcast %683 : f32 to vector<16x16xf32>
    %685 = arith.mulf %684, %676 : vector<16x16xf32>
    %686 = arith.addf %666, %685 : vector<16x16xf32>
    %c105 = arith.constant 105 : index
    %687 = memref.load %arg2[%c105] : memref<144xf32, #tpu.memory_space<smem>>
    %688 = vector.broadcast %687 : f32 to vector<16x16xf32>
    %689 = arith.mulf %688, %676 : vector<16x16xf32>
    %690 = arith.addf %670, %689 : vector<16x16xf32>
    %c141 = arith.constant 141 : index
    %691 = memref.load %arg2[%c141] : memref<144xf32, #tpu.memory_space<smem>>
    %692 = vector.broadcast %691 : f32 to vector<16x16xf32>
    %693 = arith.mulf %692, %676 : vector<16x16xf32>
    %694 = arith.addf %674, %693 : vector<16x16xf32>
    %c34 = arith.constant 34 : index
    %695 = memref.load %arg2[%c34] : memref<144xf32, #tpu.memory_space<smem>>
    %696 = vector.broadcast %695 : f32 to vector<16x16xf32>
    %697 = arith.mulf %696, %570 : vector<16x16xf32>
    %698 = arith.addf %682, %697 : vector<16x16xf32>
    %c70 = arith.constant 70 : index
    %699 = memref.load %arg2[%c70] : memref<144xf32, #tpu.memory_space<smem>>
    %700 = vector.broadcast %699 : f32 to vector<16x16xf32>
    %701 = arith.mulf %700, %570 : vector<16x16xf32>
    %702 = arith.addf %686, %701 : vector<16x16xf32>
    %c106 = arith.constant 106 : index
    %703 = memref.load %arg2[%c106] : memref<144xf32, #tpu.memory_space<smem>>
    %704 = vector.broadcast %703 : f32 to vector<16x16xf32>
    %705 = arith.mulf %704, %570 : vector<16x16xf32>
    %706 = arith.addf %690, %705 : vector<16x16xf32>
    %c142 = arith.constant 142 : index
    %707 = memref.load %arg2[%c142] : memref<144xf32, #tpu.memory_space<smem>>
    %708 = vector.broadcast %707 : f32 to vector<16x16xf32>
    %709 = arith.mulf %708, %570 : vector<16x16xf32>
    %710 = arith.addf %694, %709 : vector<16x16xf32>
    %c35 = arith.constant 35 : index
    %711 = memref.load %arg2[%c35] : memref<144xf32, #tpu.memory_space<smem>>
    %712 = vector.broadcast %711 : f32 to vector<16x16xf32>
    %713 = arith.mulf %712, %678 : vector<16x16xf32>
    %714 = arith.addf %698, %713 : vector<16x16xf32>
    %c71 = arith.constant 71 : index
    %715 = memref.load %arg2[%c71] : memref<144xf32, #tpu.memory_space<smem>>
    %716 = vector.broadcast %715 : f32 to vector<16x16xf32>
    %717 = arith.mulf %716, %678 : vector<16x16xf32>
    %718 = arith.addf %702, %717 : vector<16x16xf32>
    %c107 = arith.constant 107 : index
    %719 = memref.load %arg2[%c107] : memref<144xf32, #tpu.memory_space<smem>>
    %720 = vector.broadcast %719 : f32 to vector<16x16xf32>
    %721 = arith.mulf %720, %678 : vector<16x16xf32>
    %722 = arith.addf %706, %721 : vector<16x16xf32>
    %c143 = arith.constant 143 : index
    %723 = memref.load %arg2[%c143] : memref<144xf32, #tpu.memory_space<smem>>
    %724 = vector.broadcast %723 : f32 to vector<16x16xf32>
    %725 = arith.mulf %724, %678 : vector<16x16xf32>
    %726 = arith.addf %710, %725 : vector<16x16xf32>
    %c0_73 = arith.constant 0 : index
    %c0_74 = arith.constant 0 : index
    %c0_75 = arith.constant 0 : index
    %c0_76 = arith.constant 0 : index
    %727 = vector.load %arg4[%c0_73, %c0_74, %c0_75, %c0_76] : memref<1x4x16x16xf32, #tpu.memory_space<vmem>>, vector<1x1x16x16xf32>
    %728 = vector.shape_cast %727 : vector<1x1x16x16xf32> to vector<16x16xf32>
    %729 = vector.shape_cast %714 : vector<16x16xf32> to vector<1x1x16x16xf32>
    tpu.vector_store %arg4[%c0_73, %c0_74, %c0_75, %c0_76], %729 {strides = array<i32>} : memref<1x4x16x16xf32, #tpu.memory_space<vmem>>, vector<1x1x16x16xf32>,
    %c0_77 = arith.constant 0 : index
    %c1_78 = arith.constant 1 : index
    %c0_79 = arith.constant 0 : index
    %c0_80 = arith.constant 0 : index
    %730 = vector.load %arg4[%c0_77, %c1_78, %c0_79, %c0_80] : memref<1x4x16x16xf32, #tpu.memory_space<vmem>>, vector<1x1x16x16xf32>
    %731 = vector.shape_cast %730 : vector<1x1x16x16xf32> to vector<16x16xf32>
    %732 = vector.shape_cast %718 : vector<16x16xf32> to vector<1x1x16x16xf32>
    tpu.vector_store %arg4[%c0_77, %c1_78, %c0_79, %c0_80], %732 {strides = array<i32>} : memref<1x4x16x16xf32, #tpu.memory_space<vmem>>, vector<1x1x16x16xf32>,
    %c0_81 = arith.constant 0 : index
    %c2_82 = arith.constant 2 : index
    %c0_83 = arith.constant 0 : index
    %c0_84 = arith.constant 0 : index
    %733 = vector.load %arg4[%c0_81, %c2_82, %c0_83, %c0_84] : memref<1x4x16x16xf32, #tpu.memory_space<vmem>>, vector<1x1x16x16xf32>
    %734 = vector.shape_cast %733 : vector<1x1x16x16xf32> to vector<16x16xf32>
    %735 = vector.shape_cast %722 : vector<16x16xf32> to vector<1x1x16x16xf32>
    tpu.vector_store %arg4[%c0_81, %c2_82, %c0_83, %c0_84], %735 {strides = array<i32>} : memref<1x4x16x16xf32, #tpu.memory_space<vmem>>, vector<1x1x16x16xf32>,
    %c0_85 = arith.constant 0 : index
    %c3_86 = arith.constant 3 : index
    %c0_87 = arith.constant 0 : index
    %c0_88 = arith.constant 0 : index
    %736 = vector.load %arg4[%c0_85, %c3_86, %c0_87, %c0_88] : memref<1x4x16x16xf32, #tpu.memory_space<vmem>>, vector<1x1x16x16xf32>
    %737 = vector.shape_cast %736 : vector<1x1x16x16xf32> to vector<16x16xf32>
    %738 = vector.shape_cast %726 : vector<16x16xf32> to vector<1x1x16x16xf32>
    tpu.vector_store %arg4[%c0_85, %c3_86, %c0_87, %c0_88], %738 {strides = array<i32>} : memref<1x4x16x16xf32, #tpu.memory_space<vmem>>, vector<1x1x16x16xf32>,
    return
  }
  func.func @transform_0(%arg0: i32, %arg1: i32) -> i32 {
    %c0_i32 = arith.constant 0 : i32
    %c0_i32_0 = arith.constant 0 : i32
    return %c0_i32 : i32
  }
  func.func @transform_1(%arg0: i32, %arg1: i32) -> (i32, i32, i32, i32) {
    %c2_i32 = arith.constant 2 : i32
    %c0_i32 = arith.constant 0 : i32
    %c0_i32_0 = arith.constant 0 : i32
    %c0_i32_1 = arith.constant 0 : i32
    return %arg0, %c2_i32, %c0_i32, %c0_i32_0 : i32, i32, i32, i32
  }
  func.func @transform_2(%arg0: i32, %arg1: i32) -> (i32, i32, i32, i32) {
    %c0_i32 = arith.constant 0 : i32
    %c0_i32_0 = arith.constant 0 : i32
    %c0_i32_1 = arith.constant 0 : i32
    return %arg0, %c0_i32, %arg1, %c0_i32_0 : i32, i32, i32, i32
  }
}

</mosaic_0001>

<bundles_post_ra>
// kernel: pconv3_3.1
= control target key start
LH: loop header
LB: loop body
LE: loop exit
PB: predicated region body
PF: predicated region fallthrough
CT: control target
= control target key end

     0   :  { %s3225_s0 = inlined_call_operand.vmem [shape: f32[144], index: 0, kind: input, shape index: {}]   ;;  %s3226_s1 = inlined_call_operand.vmem [shape: f32[2,12,16,16], index: 1, kind: input, shape index: {}]   ;;  %s3227_s2 = inlined_call_operand.vmem [shape: f32[2,4,16,16], index: 2, kind: output, shape index: {}]  }
   0x1   :  { %3345 = sst [smem:[#allocation125_spill]] %s3225_s0 }
   0x2   :  { %3346 = sst [smem:[#allocation126_spill]] %s3226_s1 }
   0x3   :  { %3347 = sst [smem:[#allocation127_spill]] %s3227_s2 }
   0x4   :  { %7 = vsyncpa [#allocation3], 0  ;;  %s1802_s9 = smov 0   ;;  %s1804_s10 = smov 0  }
   0x5   :  { %s1806_s11 = smov 0  }
   0x6 LB: > { %3348 = sst [smem:[#allocation5_spill]] %s1777_s10  ;;  %s1518_s12 = sadd.s32 4294967295, %s1781_s11   ;;  %s1781_s11 = sphi %s1806_s11, %s13_s11   ;;  %s1777_s10 = sphi %s1804_s10, %s3830_s10   ;;  %s1773_s9 = sphi %s1802_s9, %s3829_s9  }
   0x7   : > { %3349 = sst [smem:[#allocation6_spill]] %s1781_s11  ;;  %s25_s13 = sadd.s32 1, %s1777_s10 }
   0x8   : > { %p27_p0 = scmp.ge.s32.totalorder %s25_s13, 2  ;;  %p1520_p1 = scmp.ge.s32.totalorder %s1781_s11, 1 }
   0x9   : > { %p105_p2 = scmp.lt.s32.totalorder %s1781_s11, 3  ;;  %p1827_p4 = scmp.eq.s32.totalorder %s1518_s12, 0 }
   0xa   : > { %s3832_s13 = smov (%p27_p0, %s25_s13), 0  ;;  %s3353_s0 = sld [smem:[#allocation125_spill]] }
   0xb   : > { %3350 = sst [smem:[#allocation7_spill]] %s3832_s13  ;;  %p1823_p3 = pnand %p1520_p1, %p105_p2 }
   0xd   : > { %p1704_p5 = pneg %p1823_p3 }
   0xf   : > { %p1705_p6 = pnand %p1827_p4, %p1704_p5 }
  0x10   : > { %s118_s18 = sshll.u32 %s3353_s0, 4  ;;  %s119_s18 = int_to_ptr.vmem [resolvable:$true] %s118_s18 }
  0x11   : > { %s1740_s19 = scalar_lea.vmem %s119_s18, 32  ;;  %p1742_p8 = pneg %p1705_p6 }
  0x12   : > { %p1741_p7 = scmp.ne.s32.totalorder %s119_s18, %s1740_s19  ;;  %p1748_p11 = scmp.lt.s32.totalorder %s119_s18, %s119_s18 }
  0x13   : > { %p1749_p12 = scmp.lt.s32.totalorder %s1740_s19, %s1740_s19 }
  0x14   : > { %p1743_p9 = pnand %p1742_p8, %p1741_p7 }
  0x15   : > { %p1750_p13 = por %p1749_p12, %p1748_p11 }
  0x16   : > { %p1744_p10 = pneg %p1743_p9 }
  0x18   : > { %p1751_p0 = pnand %p1750_p13, %p1744_p10 }
  0x1a   : > { %1754 = shalt.err (!%p1751_p0)
}
  0x1b   : > { %s1783_s20 = smov [#allocation2]   ;;  %140 = sbr.rel (%p1823_p3) target bundleno = 456 (0x1c8), region = 28 }
  0x1c   : > { %1707 = dma.vmem_to_smem (!%p1705_p6), %s119_s18, 32, %s1783_s20, [#allocation3]  }
  0x20   : > { %1768 = dma.done.wait (%p1827_p4), [#allocation3], 32  }
  0x21   : > { %1770 = vsyncadd (%p1827_p4), [#allocation3], 4294967264 }
  0x22   : > { %146 = sfence }
  0x23   : > { %p168_p1 = scmp.lt.s32.totalorder %s1773_s9, 1  ;;  %s1849_s22 = sld [smem:[#allocation2 + $0x3]]  ;;  %vm210_vm0 = vcmask 1040384   ;;  %v1786_v7 = vmov 0.0   ;;  %vm217_vm1 = vcmask 1046528   ;;  %vm234_vm2 = vcmask 7168  }
  0x24   : > { %s1851_s23 = sld [smem:[#allocation2 + $0x27]]  ;;  %s3231_s29 = smov 1   ;;  %v1897_v8 = vrot.slane %v1786_v7, 1  ;;  %vm243_vm3 = vcmask 121856   ;;  %vm1379_vm4 = vcmask 130048  }
  0x25   : > { %s3834_s9 = smov (!%p168_p1, %s1773_s9), 1  ;;  %s3357_s1 = sld [smem:[#allocation126_spill]] }
  0x26   : > { %3354 = sst [smem:[#allocation8_spill]] %s3834_s9  ;;  %s1525_s21 = smul.u32 192, %s3834_s9 }
  0x27   : > { %s1858_s27 = sld [smem:[#allocation2 + $0x4b]]  ;;  %s3228_s6 = smov 127  }
  0x28   : > { %s1866_s28 = sld [smem:[#allocation2 + $0x6f]]  ;;  %s3374_s13 = smov 127  }
  0x29   : > { %3355 = sst [smem:[#allocation9_spill]] %s1849_s22  ;;  %s3379_s9 = smov 1  }
  0x2a   : > { %3356 = sst [smem:[#allocation10_spill]] %s1851_s23 }
  0x2b   : > { %s1856_s26 = scalar_lea.vmem %s3357_s1, %s1525_s21  ;;  %s1873_s30 = sld [smem:[#allocation2 + $0x2]] }
  0x2c   : > { %3358 = sst [smem:[#allocation11_spill]] %s1856_s26  ;;  %v1861_v0 = vld [vmem:[%s1856_s26 + $0x88] sm:$0xff]  ;;  %v1864_v1 = vld [vmem:[%s1856_s26 + $0x80] sm:$0xff]  ;;  %v1890_v5 = vld [vmem:[%s1856_s26 + $0xb8] sm:$0xff] }
  0x2d   : > { %3359 = sst [smem:[#allocation12_spill]] %s1858_s27  ;;  %320 = vrot.lane.b32.xlu1 %v1861_v0, %s3231_s29  ;;  %318 = vrot.lane.b32.xlu0 %v1864_v1, %s3231_s29  ;;  %v211_v2 = vrot.slane %v1864_v1, 7  ;;  %v212_v3 = vrot.slane %v1861_v0, 7  ;;  %v1105_v9 = vrot.slane %v1890_v5, 1  ;;  %v219_v11 = vrot.slane %v1861_v0, 1  ;;  %v1942_v15 = vld [vmem:[%s1856_s26 + $0x90] sm:$0xff] }
  0x2e   : > { %3360 = sst [smem:[#allocation13_spill]] %s1866_s28  ;;  %v218_v12 = vrot.slane %v1864_v1, 1  ;;  %v1945_v16 = vld [vmem:[%s1856_s26 + $0x98] sm:$0xff]  ;;  %v508_v17 = vrot.slane %v1942_v15, 7  ;;  %v514_v22 = vrot.slane %v1942_v15, 1  ;;  %v2037_v25 = vld [vmem:[%s1856_s26 + $0xa0] sm:$0xff] }
  0x2f   : > { %s1876_s3 = sld [smem:[#allocation2 + $0x26]]  ;;  %v1879_v4 = vsel %vm210_vm0, 0.0, %v211_v2  ;;  %v1895_v6 = vsel %vm210_vm0, %v211_v2, %v212_v3  ;;  %v1908_v10 = vsel %vm217_vm1, %v1105_v9, %v1897_v8  ;;  %v1934_v13 = vsel %vm217_vm1, %v219_v11, %v1897_v8  ;;  %v2040_v26 = vld [vmem:[%s1856_s26 + $0xa8] sm:$0xff]  ;;  %v2130_v35 = vld [vmem:[%s1856_s26 + $0xb0] sm:$0xff] }
  0x30   : > { %s1881_s4 = sld [smem:[#allocation2 + $0x4a]]  ;;  %3368 = vst [vmem:[#allocation21_spill] sm:$0xff] %v1908_v10  ;;  %v1937_v14 = vsel %vm217_vm1, %v218_v12, %v219_v11  ;;  %v509_v18 = vrot.slane %v1945_v16, 7  ;;  %v1975_v20 = vsel %vm210_vm0, 0.0, %v508_v17  ;;  %v515_v21 = vrot.slane %v1945_v16, 1 }
  0x31   : > { %3361 = sst [smem:[#allocation14_spill]] %s1873_s30  ;;  %237 = vrot.lane.b32.xlu1 %v1879_v4, %s3228_s6  ;;  %228 = vrot.lane.b32.xlu0 %v1879_v4, %s3231_s29  ;;  %v803_v27 = vrot.slane %v2037_v25, 7  ;;  %v804_v28 = vrot.slane %v2040_v26, 7  ;;  %v810_v31 = vrot.slane %v2040_v26, 1  ;;  %v809_v32 = vrot.slane %v2037_v25, 1 }
  0x32   : > { %s1883_s5 = sld [smem:[#allocation2 + $0x6e]]  ;;  %v1972_v19 = vsel %vm210_vm0, %v508_v17, %v509_v18  ;;  %v2029_v23 = vsel %vm217_vm1, %v515_v21, %v1897_v8  ;;  %v2032_v24 = vsel %vm217_vm1, %v514_v22, %v515_v21  ;;  %v1098_v36 = vrot.slane %v2130_v35, 7 }
  0x33   : > { %s1892_s7 = sld [smem:[#allocation2]]  ;;  %v2067_v29 = vsel %vm210_vm0, %v803_v27, %v804_v28  ;;  %v2070_v30 = vsel %vm210_vm0, 0.0, %v803_v27  ;;  %v2124_v33 = vsel %vm217_vm1, %v810_v31, %v1897_v8  ;;  %v2127_v34 = vsel %vm217_vm1, %v809_v32, %v810_v31 }
  0x34   : > { %s1900_s8 = sld [smem:[#allocation2 + $0x24]]  ;;  %v1099_v37 = vrot.slane %v1890_v5, 7  ;;  %v2161_v40 = vsel %vm210_vm0, 0.0, %v1098_v36  ;;  %v1104_v41 = vrot.slane %v2130_v35, 1 }
  0x35   : > { %3362 = sst [smem:[#allocation15_spill]] %s1876_s3  ;;  %239 = vrot.lane.b32.xlu1 %v1895_v6, %s3228_s6  ;;  %230 = vrot.lane.b32.xlu0 %v1895_v6, %s3231_s29  ;;  %3419 = vst [vmem:[#allocation70_spill] sm:$0xff] %v2161_v40 }
  0x36   : > { %3363 = sst [smem:[#allocation16_spill]] %s1881_s4  ;;  %v2158_v39 = vsel %vm210_vm0, %v1098_v36, %v1099_v37  ;;  %v2192_v55 = vsel %vm217_vm1, %v1104_v41, %v1105_v9 }
  0x37   : > { %s1902_s12 = sld [smem:[#allocation2 + $0x48]]  ;;  %3424 = vst [vmem:[#allocation75_spill] sm:$0xff] %v2192_v55 }
  0x38   : > { %3364 = sst [smem:[#allocation17_spill]] %s1883_s5 }
  0x39   : > { %3365 = sst [smem:[#allocation18_spill]] %s1892_s7  ;;  %328 = vrot.lane.b32.xlu1 %v1861_v0, %s3228_s6  ;;  %326 = vrot.lane.b32.xlu0 %v1864_v1, %s3228_s6 }
  0x3a   : > { %3366 = sst [smem:[#allocation19_spill]] %s1900_s8 }
  0x3b   : > { %s1910_s14 = sld [smem:[#allocation2 + $0x6c]] }
  0x3c   : > { %s1916_s15 = sld [smem:[#allocation2 + $0x1]] }
  0x3d   : > { %3367 = sst [smem:[#allocation20_spill]] %s1902_s12  ;;  %409 = vrot.lane.b32.xlu1 %v1934_v13, %s3231_s29  ;;  %407 = vrot.lane.b32.xlu0 %v1937_v14, %s3231_s29 }
  0x3e   : > { %s1920_s16 = sld [smem:[#allocation2 + $0x25]] }
  0x3f   : > { %s1922_s17 = sld [smem:[#allocation2 + $0x49]] }
  0x40   : > { %s1924_s18 = sld [smem:[#allocation2 + $0x6d]] }
  0x41   : > { %3369 = sst [smem:[#allocation22_spill]] %s1910_s14  ;;  %417 = vrot.lane.b32.xlu1 %v1934_v13, %s3374_s13  ;;  %415 = vrot.lane.b32.xlu0 %v1937_v14, %s3374_s13 }
  0x42   : > { %s1930_s19 = sld [smem:[#allocation2 + $0x4]]  ;;  %v271_v46 = vstv %s1916_s15 }
  0x43   : > { %s1939_s20 = sld [smem:[#allocation2 + $0x28]]  ;;  %v2196_v57 = vmul.f32 %v271_v46, %v1879_v4  ;;  %v2205_v60 = vmul.f32 %v271_v46, %v1895_v6 }
  0x44   : > { %s1947_s21 = sld [smem:[#allocation2 + $0x4c]]  ;;  %v277_v50 = vstv %s1920_s16 }
  0x45   : > { %s1949_s24 = sld [smem:[#allocation2 + $0x70]]  ;;  %526 = vrot.lane.b32.xlu1 %v1972_v19, %s3379_s9  ;;  %524 = vrot.lane.b32.xlu0 %v1975_v20, %s3379_s9  ;;  %v283_v53 = vstv %s1922_s17  ;;  %v2202_v59 = vmul.f32 %v277_v50, %v1879_v4  ;;  %v2208_v61 = vmul.f32 %v277_v50, %v1895_v6 }
  0x46   : > { %s1955_s25 = sld [smem:[#allocation2 + $0x5]]  ;;  %v289_v54 = vstv %s1924_s18  ;;  %v2214_v63 = vmul.f32 %v283_v53, %v1879_v4  ;;  %v2220_v3 = vmul.f32 %v283_v53, %v1895_v6 }
  0x47   : > { %s1959_s6 = sld [smem:[#allocation2 + $0x29]]  ;;  %v2217_v2 = vmul.f32 %v289_v54, %v1879_v4  ;;  %v2226_v8 = vmul.f32 %v289_v54, %v1895_v6 }
  0x48   : > { %s1961_s0 = sld [smem:[#allocation2 + $0x4d]]  ;;  %v359_v58 = vstv %s1930_s19 }
  0x49   : > { %s1963_s1 = sld [smem:[#allocation2 + $0x71]]  ;;  %534 = vrot.lane.b32.xlu1 %v1972_v19, %s3374_s13  ;;  %532 = vrot.lane.b32.xlu0 %v1975_v20, %s3374_s13  ;;  %v365_v62 = vstv %s1939_s20  ;;  %v2229_v9 = vmul.f32 %v1861_v0, %v359_v58  ;;  %v2233_v4 = vmul.f32 %v1864_v1, %v359_v58 }
  0x4a   : > { %s1969_s10 = sld [smem:[#allocation2 + $0x6]]  ;;  %v371_v7 = vstv %s1947_s21  ;;  %v2243_v12 = vmul.f32 %v1861_v0, %v365_v62  ;;  %v2249_v18 = vmul.f32 %v1864_v1, %v365_v62 }
  0x4b   : > { %s1977_s29 = sld [smem:[#allocation2 + $0x2a]]  ;;  %v377_v11 = vstv %s1949_s24  ;;  %v2246_v17 = vmul.f32 %v1861_v0, %v371_v7  ;;  %v2258_v27 = vmul.f32 %v1864_v1, %v371_v7 }
  0x4c   : > { %3370 = sst [smem:[#allocation23_spill]] %s1955_s25  ;;  %v2254_v21 = vmul.f32 %v1861_v0, %v377_v11  ;;  %v2266_v36 = vmul.f32 %v1864_v1, %v377_v11 }
  0x4d   : > { %3371 = sst [smem:[#allocation24_spill]] %s1959_s6  ;;  %614 = vrot.lane.b32.xlu1 %v1945_v16, %s3379_s9  ;;  %612 = vrot.lane.b32.xlu0 %v1942_v15, %s3379_s9 }
  0x4e   : > { %3372 = sst [smem:[#allocation25_spill]] %s1961_s0 }
  0x4f   : > { %3373 = sst [smem:[#allocation26_spill]] %s1963_s1 }
  0x50   : > { %3375 = sst [smem:[#allocation27_spill]] %s1969_s10 }
  0x51   : > { %3376 = sst [smem:[#allocation28_spill]] %s1977_s29  ;;  %622 = vrot.lane.b32.xlu1 %v1945_v16, %s3374_s13  ;;  %620 = vrot.lane.b32.xlu0 %v1942_v15, %s3374_s13 }
  0x52   : > { %s1979_s11 = sld [smem:[#allocation2 + $0x4e]] }
  0x53   : > { %s1981_s2 = sld [smem:[#allocation2 + $0x72]] }
  0x54   : > { %s1987_s1 = sld [smem:[#allocation2 + $0x7]] }
  0x55   : > { %s1989_s10 = sld [smem:[#allocation2 + $0x2b]]  ;;  %703 = vrot.lane.b32.xlu1 %v2029_v23, %s3379_s9  ;;  %701 = vrot.lane.b32.xlu0 %v2032_v24, %s3379_s9 }
  0x56   : > { %s1991_s0 = sld [smem:[#allocation2 + $0x4f]] }
  0x57   : > { %s1993_s6 = sld [smem:[#allocation2 + $0x73]] }
  0x58   : > { %3377 = sst [smem:[#allocation29_spill]] %s1979_s11 }
  0x59   : > { %3378 = sst [smem:[#allocation30_spill]] %s1981_s2  ;;  %711 = vrot.lane.b32.xlu1 %v2029_v23, %s3374_s13  ;;  %709 = vrot.lane.b32.xlu0 %v2032_v24, %s3374_s13 }
  0x5a   : > { %3380 = sst [smem:[#allocation31_spill]] %s1987_s1 }
  0x5b   : > { %3381 = sst [smem:[#allocation32_spill]] %s1989_s10 }
  0x5c   : > { %3382 = sst [smem:[#allocation33_spill]] %s1991_s0 }
  0x5d   : > { %3383 = sst [smem:[#allocation34_spill]] %s1993_s6  ;;  %821 = vrot.lane.b32.xlu1 %v2067_v29, %s3379_s9  ;;  %819 = vrot.lane.b32.xlu0 %v2070_v30, %s3379_s9 }
  0x5e   : > { %s1999_s2 = sld [smem:[#allocation2 + $0x8]] }
  0x5f   : > { %s2001_s11 = sld [smem:[#allocation2 + $0x2c]] }
  0x60   : > { %s2003_s29 = sld [smem:[#allocation2 + $0x50]] }
  0x61   : > { %s2005_s1 = sld [smem:[#allocation2 + $0x74]]  ;;  %829 = vrot.lane.b32.xlu1 %v2067_v29, %s3374_s13  ;;  %827 = vrot.lane.b32.xlu0 %v2070_v30, %s3374_s13 }
  0x62   : > { %s2011_s6 = sld [smem:[#allocation2 + $0x9]] }
  0x63   : > { %s2058_s0 = sld [smem:[#allocation2 + $0x77]] }
  0x64   : > { %3384 = sst [smem:[#allocation35_spill]] %s1999_s2 }
  0x65   : > { %3385 = sst [smem:[#allocation36_spill]] %s2001_s11  ;;  %909 = vrot.lane.b32.xlu1 %v2040_v26, %s3379_s9  ;;  %907 = vrot.lane.b32.xlu0 %v2037_v25, %s3379_s9 }
  0x66   : > { %3386 = sst [smem:[#allocation37_spill]] %s2003_s29 }
  0x67   : > { %3387 = sst [smem:[#allocation38_spill]] %s2005_s1 }
  0x68   : > { %3388 = sst [smem:[#allocation39_spill]] %s2011_s6 }
  0x69   : > { %s2015_s2 = sld [smem:[#allocation2 + $0x2d]]  ;;  %917 = vrot.lane.b32.xlu1 %v2040_v26, %s3374_s13  ;;  %915 = vrot.lane.b32.xlu0 %v2037_v25, %s3374_s13 }
  0x6a   : > { %s2017_s11 = sld [smem:[#allocation2 + $0x51]] }
  0x6b   : > { %s2019_s29 = sld [smem:[#allocation2 + $0x75]] }
  0x6c   : > { %s2025_s1 = sld [smem:[#allocation2 + $0xa]] }
  0x6d   : > { %s2050_s6 = sld [smem:[#allocation2 + $0xb]]  ;;  %998 = vrot.lane.b32.xlu1 %v2124_v33, %s3379_s9  ;;  %996 = vrot.lane.b32.xlu0 %v2127_v34, %s3379_s9 }
  0x6e   : > { %3399 = sst [smem:[#allocation50_spill]] %s2058_s0 }
  0x6f   : > { %3389 = sst [smem:[#allocation40_spill]] %s2015_s2 }
  0x70   : > { %3390 = sst [smem:[#allocation41_spill]] %s2017_s11 }
  0x71   : > { %3391 = sst [smem:[#allocation42_spill]] %s2019_s29  ;;  %1006 = vrot.lane.b32.xlu1 %v2124_v33, %s3374_s13  ;;  %1004 = vrot.lane.b32.xlu0 %v2127_v34, %s3374_s13 }
  0x72   : > { %3392 = sst [smem:[#allocation43_spill]] %s2025_s1 }
  0x73   : > { %s2034_s2 = sld [smem:[#allocation2 + $0x2e]] }
  0x74   : > { %s2042_s29 = sld [smem:[#allocation2 + $0x52]] }
  0x75   : > { %s2044_s11 = sld [smem:[#allocation2 + $0x76]]  ;;  %1116 = vrot.lane.b32.xlu1 %v2158_v39, %s3379_s9  ;;  %1114 = vrot.lane.b32.xlu0 %v2161_v40, %s3379_s9 }
  0x76   : > { %3396 = sst [smem:[#allocation47_spill]] %s2050_s6 }
  0x77   : > { %s2056_s1 = sld [smem:[#allocation2 + $0x53]] }
  0x78   : > { %s2072_s6 = sld [smem:[#allocation2 + $0x30]] }
  0x79   : > { %3393 = sst [smem:[#allocation44_spill]] %s2034_s2  ;;  %1124 = vrot.lane.b32.xlu1 %v2158_v39, %s3374_s13  ;;  %1122 = vrot.lane.b32.xlu0 %v2161_v40, %s3374_s13 }
  0x7a   : > { %3394 = sst [smem:[#allocation45_spill]] %s2042_s29 }
  0x7b   : > { %3395 = sst [smem:[#allocation46_spill]] %s2044_s11 }
  0x7c   : > { %s2054_s2 = sld [smem:[#allocation2 + $0x2f]] }
  0x7d   : > { %3398 = sst [smem:[#allocation49_spill]] %s2056_s1  ;;  %1204 = vrot.lane.b32.xlu1 %v1890_v5, %s3379_s9  ;;  %1202 = vrot.lane.b32.xlu0 %v2130_v35, %s3379_s9 }
  0x7e   : > { %s2064_s11 = sld [smem:[#allocation2 + $0xc]] }
  0x7f   : > { %3401 = sst [smem:[#allocation52_spill]] %s2072_s6 }
  0x80   : > { %s2076_s1 = sld [smem:[#allocation2 + $0x78]] }
  0x81   : > { %s2082_s0 = sld [smem:[#allocation2 + $0xd]]  ;;  %1212 = vrot.lane.b32.xlu1 %v1890_v5, %s3374_s13  ;;  %1210 = vrot.lane.b32.xlu0 %v2130_v35, %s3374_s13 }
  0x82   : > { %3397 = sst [smem:[#allocation48_spill]] %s2054_s2 }
  0x83   : > { %s2074_s2 = sld [smem:[#allocation2 + $0x54]] }
  0x84   : > { %3400 = sst [smem:[#allocation51_spill]] %s2064_s11 }
  0x85   : > { %s2084_s11 = sld [smem:[#allocation2 + $0x31]]  ;;  %1293 = vrot.lane.b32.xlu1 %v1908_v10, %s3379_s9  ;;  %1291 = vrot.lane.b32.xlu0 %v2192_v55, %s3379_s9 }
  0x86   : > { %3403 = sst [smem:[#allocation54_spill]] %s2076_s1 }
  0x87   : > { %3404 = sst [smem:[#allocation55_spill]] %s2082_s0 }
  0x88   : > { %s2086_s29 = sld [smem:[#allocation2 + $0x55]] }
  0x89   : > { %3402 = sst [smem:[#allocation53_spill]] %s2074_s2  ;;  %1301 = vrot.lane.b32.xlu1 %v1908_v10, %s3374_s13  ;;  %1299 = vrot.lane.b32.xlu0 %v2192_v55, %s3374_s13 }
  0x8a   : > { %s2088_s10 = sld [smem:[#allocation2 + $0x79]] }
  0x8b   : > { %s2094_s1 = sld [smem:[#allocation2 + $0xe]]  ;;  %v659_v53 = vstv %s2084_s11 }
  0x8c   : > { %s2096_s2 = sld [smem:[#allocation2 + $0x32]] }
  0x8d   : > { %s2098_s6 = sld [smem:[#allocation2 + $0x56]] }
  0x8e   : > { %3405 = sst [smem:[#allocation56_spill]] %s2086_s29 }
  0x8f   : > { %s2100_s0 = sld [smem:[#allocation2 + $0x7a]] }
  0x90   : > { %3406 = sst [smem:[#allocation57_spill]] %s2088_s10 }
  0x91   : > { %3407 = sst [smem:[#allocation58_spill]] %s2094_s1 }
  0x92   : > { %3408 = sst [smem:[#allocation59_spill]] %s2096_s2 }
  0x93   : > { %3409 = sst [smem:[#allocation60_spill]] %s2098_s6 }
  0x94   : > { %s2106_s10 = sld [smem:[#allocation2 + $0xf]] }
  0x95   : > { %3410 = sst [smem:[#allocation61_spill]] %s2100_s0 }
  0x96   : > { %s2110_s1 = sld [smem:[#allocation2 + $0x33]] }
  0x97   : > { %s2112_s2 = sld [smem:[#allocation2 + $0x57]] }
  0x98   : > { %s2114_s29 = sld [smem:[#allocation2 + $0x7b]] }
  0x99   : > { %s2120_s0 = sld [smem:[#allocation2 + $0x10]] }
  0x9a   : > { %3411 = sst [smem:[#allocation62_spill]] %s2106_s10 }
  0x9b   : > { %s2144_s26 = sld [smem:[#allocation2 + $0x11]] }
  0x9c   : > { %3412 = sst [smem:[#allocation63_spill]] %s2110_s1 }
  0x9d   : > { %3413 = sst [smem:[#allocation64_spill]] %s2112_s2 }
  0x9e   : > { %3414 = sst [smem:[#allocation65_spill]] %s2114_s29 }
  0x9f   : > { %s2132_s2 = sld [smem:[#allocation2 + $0x34]]  ;;  %v742_v49 = vstv %s2120_s0 }
  0xa0   : > { %s2134_s29 = sld [smem:[#allocation2 + $0x58]] }
  0xa1   : > { %s2136_s1 = sld [smem:[#allocation2 + $0x7c]] }
  0xa2   : > { %3416 = sst [smem:[#allocation67_spill]] %s2144_s26 }
  0xa3   : > { %s2146_s10 = sld [smem:[#allocation2 + $0x35]] }
  0xa4   : > { %s2151_s6 = sld [smem:[#allocation2 + $0x7d]] }
  0xa5   : > { %s2165_s22 = sld [smem:[#allocation2 + $0x12]]  ;;  %v748_v45 = vstv %s2132_s2 }
  0xa6   : > { %s2183_s23 = sld [smem:[#allocation2 + $0x7e]]  ;;  %v754_v44 = vstv %s2134_s29  ;;  %v2449_v56 = vmul.f32 %v748_v45, %v2032_v24 }
  0xa7   : > { %3415 = sst [smem:[#allocation66_spill]] %s2136_s1  ;;  %v2443_v42 = vmul.f32 %v754_v44, %v2029_v23  ;;  %v2458_v43 = vmul.f32 %v754_v44, %v2032_v24 }
  0xa8   : > { %s2148_s1 = sld [smem:[#allocation2 + $0x59]]  ;;  %3498 = vst [vmem:[#allocation91_spill] sm:$0xff] %v2449_v56 }
  0xa9   : > { %s2199_s15 = sld [smem:[#allocation2 + $0x13]]  ;;  %3496 = vst [vmem:[#allocation89_spill] sm:$0xff] %v2443_v42  ;;  %3501 = vst [vmem:[#allocation93_spill] sm:$0xff] %v2458_v43 }
  0xaa   : > { %3418 = sst [smem:[#allocation69_spill]] %s2151_s6 }
  0xab   : > { %3420 = sst [smem:[#allocation71_spill]] %s2165_s22 }
  0xac   : > { %s2171_s6 = sld [smem:[#allocation2 + $0x36]] }
  0xad   : > { %3423 = sst [smem:[#allocation74_spill]] %s2183_s23 }
  0xae   : > { %3417 = sst [smem:[#allocation68_spill]] %s2148_s1 }
  0xaf   : > { %s2177_s1 = sld [smem:[#allocation2 + $0x5a]]  ;;  %v860_v55 = vstv %s2199_s15 }
  0xb0   : > { %s2211_s16 = sld [smem:[#allocation2 + $0x37]] }
  0xb1   : > { %s2223_s17 = sld [smem:[#allocation2 + $0x5b]] }
  0xb2   : > { %3421 = sst [smem:[#allocation72_spill]] %s2171_s6 }
  0xb3   : > { %s3425_s18 = sld [smem:[#allocation31_spill]] }
  0xb4   : > { %s2235_s12 = sld [smem:[#allocation2 + $0x7f]] }
  0xb5   : > { %3422 = sst [smem:[#allocation73_spill]] %s2177_s1 }
  0xb6   : > { %s3428_s21 = sld [smem:[#allocation32_spill]] }
  0xb7   : > { %s3432_s5 = sld [smem:[#allocation33_spill]]  ;;  %v872_v56 = vstv %s2223_s17 }
  0xb8   : > { %s2251_s4 = sld [smem:[#allocation2 + $0x14]] }
  0xb9   : > { %v448_v28 = vstv %s3425_s18  ;;  %s2261_s30 = sld [smem:[#allocation2 + $0x38]] }
  0xba   : > { %s3436_s28 = sld [smem:[#allocation34_spill]]  ;;  %v2284_v54 = vmul.f32 %v448_v28, %v1934_v13  ;;  %v2287_v58 = vmul.f32 %v448_v28, %v1937_v14 }
  0xbb   : > { %s2269_s27 = sld [smem:[#allocation2 + $0x5c]] }
  0xbc   : > { %v454_v37 = vstv %s3428_s21  ;;  %s2275_s23 = sld [smem:[#allocation2 + $0x80]] }
  0xbd   : > { %v460_v50 = vstv %s3432_s5  ;;  %s3441_s18 = sld [smem:[#allocation43_spill]]  ;;  %v2292_v62 = vmul.f32 %v454_v37, %v1934_v13  ;;  %v2299_v1 = vmul.f32 %v454_v37, %v1937_v14 }
  0xbe   : > { %3433 = sst [smem:[#allocation31_spill]] %s2251_s4  ;;  %v2295_v7 = vmul.f32 %v460_v50, %v1934_v13  ;;  %v2306_v28 = vmul.f32 %v460_v50, %v1937_v14 }
  0xbf   : > { %s3444_s8 = sld [smem:[#allocation44_spill]] }
  0xc0   : > { %s3445_s24 = sld [smem:[#allocation45_spill]]  ;;  %v466_v11 = vstv %s3436_s28 }
  0xc1   : > { %3437 = sst [smem:[#allocation32_spill]] %s2269_s27  ;;  %v2322_v50 = vmul.f32 %v466_v11, %v1934_v13  ;;  %v2325_v46 = vmul.f32 %v466_v11, %v1937_v14 }
  0xc2   : > { %3440 = sst [smem:[#allocation33_spill]] %s2275_s23 }
  0xc3   : > { %s2289_s5 = sld [smem:[#allocation2 + $0x15]]  ;;  %v565_v41 = vstv %s3441_s18 }
  0xc4   : > { %s2301_s14 = sld [smem:[#allocation2 + $0x39]]  ;;  %v2334_v5 = vmul.f32 %v565_v41, %v1972_v19  ;;  %v2346_v35 = vmul.f32 %v565_v41, %v1975_v20 }
  0xc5   : > { %s2309_s23 = sld [smem:[#allocation2 + $0x5d]]  ;;  %v571_v31 = vstv %s3444_s8 }
  0xc6   : > { %s3453_s27 = sld [smem:[#allocation46_spill]]  ;;  %v577_v37 = vstv %s3445_s24  ;;  %v2340_v13 = vmul.f32 %v571_v31, %v1972_v19  ;;  %v2349_v11 = vmul.f32 %v571_v31, %v1975_v20 }
  0xc7   : > { %s2315_s28 = sld [smem:[#allocation2 + $0x81]]  ;;  %v2343_v14 = vmul.f32 %v577_v37, %v1972_v19  ;;  %v2356_v32 = vmul.f32 %v577_v37, %v1975_v20 }
  0xc8   : > { %s3457_s21 = sld [smem:[#allocation55_spill]]  ;;  %3461 = vst [vmem:[#allocation76_spill] sm:$0xff] %v2349_v11 }
  0xc9   : > { %3446 = sst [smem:[#allocation34_spill]] %s2289_s5  ;;  %3465 = vst [vmem:[#allocation77_spill] sm:$0xff] %v2356_v32 }
  0xca   : > { %3448 = sst [smem:[#allocation43_spill]] %s2301_s14 }
  0xcb   : > { %3452 = sst [smem:[#allocation44_spill]] %s2309_s23 }
  0xcc   : > { %s2329_s8 = sld [smem:[#allocation2 + $0x16]]  ;;  %v583_v6 = vstv %s3453_s27 }
  0xcd   : > { %3454 = sst [smem:[#allocation45_spill]] %s2315_s28  ;;  %v2366_v31 = vmul.f32 %v583_v6, %v1972_v19  ;;  %v2369_v41 = vmul.f32 %v583_v6, %v1975_v20  ;;  %v2390_v20 = vmul.f32 %v1945_v16, %v659_v53  ;;  %v2399_v19 = vmul.f32 %v1942_v15, %v659_v53 }
  0xce   : > { %s2337_s24 = sld [smem:[#allocation2 + $0x3a]]  ;;  %v653_v0 = vstv %s3457_s21 }
  0xcf   : > { %s3458_s20 = sld [smem:[#allocation56_spill]]  ;;  %3468 = vst [vmem:[#allocation78_spill] sm:$0xff] %v2369_v41  ;;  %v2385_v47 = vmul.f32 %v1945_v16, %v653_v0  ;;  %3474 = vst [vmem:[#allocation80_spill] sm:$0xff] %v2390_v20  ;;  %v2396_v52 = vmul.f32 %v1942_v15, %v653_v0 }
  0xd0   : > { %s2351_s27 = sld [smem:[#allocation2 + $0x5e]]  ;;  %3479 = vst [vmem:[#allocation83_spill] sm:$0xff] %v2399_v19 }
  0xd1   : > { %s3463_s3 = sld [smem:[#allocation57_spill]]  ;;  %3472 = vst [vmem:[#allocation79_spill] sm:$0xff] %v2385_v47  ;;  %3477 = vst [vmem:[#allocation82_spill] sm:$0xff] %v2396_v52 }
  0xd2   : > { %s2359_s14 = sld [smem:[#allocation2 + $0x82]] }
  0xd3   : > { %s2373_s18 = sld [smem:[#allocation2 + $0x17]] }
  0xd4   : > { %s2379_s4 = sld [smem:[#allocation2 + $0x3b]] }
  0xd5   : > { %v665_v37 = vstv %s3458_s20  ;;  %s3471_s9 = sld [smem:[#allocation59_spill]] }
  0xd6   : > { %s2387_s11 = sld [smem:[#allocation2 + $0x5f]]  ;;  %v2393_v6 = vmul.f32 %v1945_v16, %v665_v37  ;;  %v2412_v53 = vmul.f32 %v1942_v15, %v665_v37  ;;  %v2446_v37 = vmul.f32 %v742_v49, %v2032_v24 }
  0xd7   : > { %v671_v51 = vstv %s3463_s3  ;;  %s3476_s3 = sld [smem:[#allocation60_spill]] }
  0xd8   : > { %3475 = vst [vmem:[#allocation81_spill] sm:$0xff] %v2393_v6  ;;  %s3478_s20 = sld [smem:[#allocation61_spill]]  ;;  %v2408_v48 = vmul.f32 %v1945_v16, %v671_v51  ;;  %3486 = vst [vmem:[#allocation85_spill] sm:$0xff] %v2412_v53  ;;  %v2419_v22 = vmul.f32 %v1942_v15, %v671_v51  ;;  %v2435_v15 = vmul.f32 %v742_v49, %v2029_v23  ;;  %v878_v16 = vstv %s2235_s12 }
  0xd9   : > { %3469 = sst [smem:[#allocation46_spill]] %s2373_s18  ;;  %v2440_v51 = vmul.f32 %v748_v45, %v2029_v23  ;;  %3497 = vst [vmem:[#allocation90_spill] sm:$0xff] %v2446_v37  ;;  %v866_v45 = vstv %s2211_s16  ;;  %v2500_v43 = vmul.f32 %v878_v16, %v2067_v29  ;;  %v2504_v37 = vmul.f32 %v872_v56, %v2070_v30 }
  0xda   : > { %s2401_s28 = sld [smem:[#allocation2 + $0x83]]  ;;  %3483 = vst [vmem:[#allocation84_spill] sm:$0xff] %v2408_v48  ;;  %3488 = vst [vmem:[#allocation86_spill] sm:$0xff] %v2419_v22  ;;  %v2495_v49 = vmul.f32 %v866_v45, %v2070_v30 }
  0xdb   : > { %s3481_s25 = sld [smem:[#allocation66_spill]]  ;;  %3491 = vst [vmem:[#allocation87_spill] sm:$0xff] %v2435_v15  ;;  %3494 = vst [vmem:[#allocation88_spill] sm:$0xff] %v2440_v51 }
  0xdc   : > { %3473 = sst [smem:[#allocation55_spill]] %s2387_s11  ;;  %3512 = vst [vmem:[#allocation99_spill] sm:$0xff] %v2495_v49  ;;  %3514 = vst [vmem:[#allocation100_spill] sm:$0xff] %v2500_v43  ;;  %v954_v49 = vstv %s2337_s24 }
  0xdd   : > { %s2415_s11 = sld [smem:[#allocation2 + $0x18]]  ;;  %3517 = vst [vmem:[#allocation101_spill] sm:$0xff] %v2504_v37 }
  0xde   : > { %s2423_s13 = sld [smem:[#allocation2 + $0x3c]] }
  0xdf   : > { %s2429_s21 = sld [smem:[#allocation2 + $0x60]] }
  0xe0   : > { %s2437_s0 = sld [smem:[#allocation2 + $0x84]] }
  0xe1   : > { %v760_v0 = vstv %s3481_s25  ;;  %s2451_s25 = sld [smem:[#allocation2 + $0x19]] }
  0xe2   : > { %v2454_v38 = vmul.f32 %v760_v0, %v2029_v23  ;;  %s2461_s5 = sld [smem:[#allocation2 + $0x3d]]  ;;  %v2465_v10 = vmul.f32 %v760_v0, %v2032_v24  ;;  %v2481_v24 = vmul.f32 %v860_v55, %v2067_v29  ;;  %v2486_v0 = vmul.f32 %v866_v45, %v2067_v29 }
  0xe3   : > { %3487 = sst [smem:[#allocation56_spill]] %s2415_s11  ;;  %v2492_v23 = vmul.f32 %v860_v55, %v2070_v30  ;;  %v2511_v45 = vmul.f32 %v878_v16, %v2070_v30  ;;  %v2532_v16 = vmul.f32 %v2040_v26, %v954_v49  ;;  %v2541_v55 = vmul.f32 %v2037_v25, %v954_v49 }
  0xe4   : > { %3489 = sst [smem:[#allocation57_spill]] %s2423_s13  ;;  %3499 = vst [vmem:[#allocation92_spill] sm:$0xff] %v2454_v38  ;;  %3502 = vst [vmem:[#allocation94_spill] sm:$0xff] %v2465_v10  ;;  %v2489_v38 = vmul.f32 %v872_v56, %v2067_v29  ;;  %v966_v56 = vstv %s2359_s14 }
  0xe5   : > { %3490 = sst [smem:[#allocation59_spill]] %s2429_s21  ;;  %3504 = vst [vmem:[#allocation95_spill] sm:$0xff] %v2481_v24  ;;  %3506 = vst [vmem:[#allocation96_spill] sm:$0xff] %v2486_v0  ;;  %v2546_v0 = vmul.f32 %v2040_v26, %v966_v56  ;;  %v2557_v49 = vmul.f32 %v2037_v25, %v966_v56 }
  0xe6   : > { %3492 = sst [smem:[#allocation60_spill]] %s2437_s0  ;;  %3508 = vst [vmem:[#allocation97_spill] sm:$0xff] %v2489_v38  ;;  %3510 = vst [vmem:[#allocation98_spill] sm:$0xff] %v2492_v23  ;;  %v948_v38 = vstv %s2329_s8  ;;  %v960_v23 = vstv %s2351_s27 }
  0xe7   : > { %s2469_s19 = sld [smem:[#allocation2 + $0x61]]  ;;  %3520 = vst [vmem:[#allocation102_spill] sm:$0xff] %v2511_v45  ;;  %v2527_v30 = vmul.f32 %v2040_v26, %v948_v38  ;;  %3525 = vst [vmem:[#allocation104_spill] sm:$0xff] %v2532_v16  ;;  %v2535_v43 = vmul.f32 %v2040_v26, %v960_v23  ;;  %v2538_v37 = vmul.f32 %v2037_v25, %v948_v38 }
  0xe8   : > { %s2475_s26 = sld [smem:[#allocation2 + $0x85]]  ;;  %3529 = vst [vmem:[#allocation107_spill] sm:$0xff] %v2541_v55  ;;  %3531 = vst [vmem:[#allocation108_spill] sm:$0xff] %v2546_v0  ;;  %v2550_v29 = vmul.f32 %v2037_v25, %v960_v23  ;;  %v1043_v55 = vstv %s2461_s5 }
  0xe9   : > { %s2483_s15 = sld [smem:[#allocation2 + $0x1a]]  ;;  %3523 = vst [vmem:[#allocation103_spill] sm:$0xff] %v2527_v30  ;;  %3527 = vst [vmem:[#allocation105_spill] sm:$0xff] %v2535_v43  ;;  %v1037_v43 = vstv %s2451_s25  ;;  %v2578_v56 = vmul.f32 %v1043_v55, %v2124_v33 }
  0xea   : > { %s3507_s16 = sld [smem:[#allocation32_spill]]  ;;  %3528 = vst [vmem:[#allocation106_spill] sm:$0xff] %v2538_v37  ;;  %3532 = vst [vmem:[#allocation109_spill] sm:$0xff] %v2550_v29  ;;  %v2573_v25 = vmul.f32 %v1037_v43, %v2124_v33  ;;  %v2584_v44 = vmul.f32 %v1037_v43, %v2127_v34  ;;  %v2587_v29 = vmul.f32 %v1043_v55, %v2127_v34 }
  0xeb   : > { %s3509_s12 = sld [smem:[#allocation33_spill]]  ;;  %3534 = vst [vmem:[#allocation110_spill] sm:$0xff] %v2557_v49  ;;  %3536 = vst [vmem:[#allocation112_spill] sm:$0xff] %v2578_v56 }
  0xec   : > { %s3511_s17 = sld [smem:[#allocation34_spill]]  ;;  %3535 = vst [vmem:[#allocation111_spill] sm:$0xff] %v2573_v25  ;;  %3538 = vst [vmem:[#allocation114_spill] sm:$0xff] %v2584_v44 }
  0xed   : > { %s2497_s7 = sld [smem:[#allocation2 + $0x3e]]  ;;  %v1049_v37 = vstv %s2469_s19  ;;  %3539 = vst [vmem:[#allocation115_spill] sm:$0xff] %v2587_v29 }
  0xee   : > { %s3515_s1 = sld [smem:[#allocation43_spill]]  ;;  %v1055_v16 = vstv %s2475_s26  ;;  %v2581_v0 = vmul.f32 %v1049_v37, %v2124_v33  ;;  %v2596_v26 = vmul.f32 %v1049_v37, %v2127_v34  ;;  %v319_v37 = vpop.permute.xlu0 %318 }
  0xef   : > { %3505 = sst [smem:[#allocation61_spill]] %s2483_s15  ;;  %v2592_v38 = vmul.f32 %v1055_v16, %v2124_v33  ;;  %v321_v33 = vpop.permute.xlu1 %320  ;;  %v324_v44 = vsel %vm234_vm2, 0.0, %v319_v37 }
  0xf0   : > { %s3516_s6 = sld [smem:[#allocation44_spill]]  ;;  %3537 = vst [vmem:[#allocation113_spill] sm:$0xff] %v2581_v0  ;;  %3541 = vst [vmem:[#allocation117_spill] sm:$0xff] %v2596_v26  ;;  %v2599_v0 = vmul.f32 %v1055_v16, %v2127_v34  ;;  %v325_v29 = vsel %vm234_vm2, 0.0, %v321_v33 }
  0xf1   : > { %s2507_s29 = sld [smem:[#allocation2 + $0x62]]  ;;  %3540 = vst [vmem:[#allocation116_spill] sm:$0xff] %v2592_v38 }
  0xf2   : > { %s2515_s2 = sld [smem:[#allocation2 + $0x86]]  ;;  %3542 = vst [vmem:[#allocation118_spill] sm:$0xff] %v2599_v0  ;;  %v229_v10 = vpop.permute.xlu0 %228 }
  0xf3   : > { %3513 = sst [smem:[#allocation66_spill]] %s2497_s7 }
  0xf4   : > { %s2521_s23 = sld [smem:[#allocation2 + $0x1b]] }
  0xf5   : > { %s2529_s8 = sld [smem:[#allocation2 + $0x3f]] }
  0xf6   : > { %s3526_s24 = sld [smem:[#allocation55_spill]]  ;;  %v231_v11 = vpop.permute.xlu0 %230 }
  0xf7   : > { %3519 = sst [smem:[#allocation32_spill]] %s2507_s29 }
  0xf8   : > { %3521 = sst [smem:[#allocation33_spill]] %s2515_s2 }
  0xf9   : > { %s2543_s14 = sld [smem:[#allocation2 + $0x63]] }
  0xfa   : > { %3522 = sst [smem:[#allocation34_spill]] %s2521_s23 }
  0xfb   : > { %3524 = sst [smem:[#allocation43_spill]] %s2529_s8 }
  0xfc   : > { %s2553_s27 = sld [smem:[#allocation2 + $0x87]] }
  0xfd   : > { %s2561_s22 = sld [smem:[#allocation2 + $0x1c]] }
  0xfe   : > { %s2567_s18 = sld [smem:[#allocation2 + $0x40]] }
  0xff   : > { %3530 = sst [smem:[#allocation44_spill]] %s2543_s14 }
 0x100   : > { %s2575_s19 = sld [smem:[#allocation2 + $0x64]] }
 0x101   : > { %s2589_s26 = sld [smem:[#allocation2 + $0x88]] }
 0x102   : > { %3533 = sst [smem:[#allocation55_spill]] %s2553_s27 }
 0x103   : > { %s2601_s5 = sld [smem:[#allocation2 + $0x1d]]  ;;  %v1155_v0 = vstv %s2561_s22 }
 0x104   : > { %s3543_s25 = sld [smem:[#allocation9_spill]]  ;;  %v2618_v55 = vmul.f32 %v1155_v0, %v2158_v39  ;;  %v1161_v43 = vstv %s2567_s18 }
 0x105   : > { %s3544_s0 = sld [smem:[#allocation10_spill]] }
 0x106   : > { %s3545_s21 = sld [smem:[#allocation12_spill]]  ;;  %3547 = vst [vmem:[#allocation119_spill] sm:$0xff] %v2618_v55 }
 0x107   : > { %s2607_s13 = sld [smem:[#allocation2 + $0x41]] }
 0x108   : > { %s3546_s11 = sld [smem:[#allocation13_spill]] }
 0x109   : > { %s2613_s7 = sld [smem:[#allocation2 + $0x65]] }
 0x10a   : > { %s2621_s23 = sld [smem:[#allocation2 + $0x89]]  ;;  %v3548_v23 = vstv %s3543_s25 }
 0x10b   : > { %v2625_v34 = vmul.f32 %v3548_v23, %v325_v29  ;;  %v3549_v16 = vstv %s3544_s0  ;;  %s3552_s22 = sld [smem:[#allocation14_spill]]  ;;  %v3553_v25 = vmov %v3548_v23 }
 0x10c   : > { %v2629_v26 = vmul.f32 %v3549_v16, %v325_v29  ;;  %v3550_v38 = vstv %s3545_s21  ;;  %s3554_s27 = sld [smem:[#allocation15_spill]]  ;;  %v336_v55 = vmul.f32 %v3553_v25, %v324_v44  ;;  %v3555_v49 = vmov %v3549_v16 }
 0x10d   : > { %v2633_v33 = vmul.f32 %v3550_v38, %v325_v29  ;;  %s3556_s18 = sld [smem:[#allocation16_spill]]  ;;  %v342_v30 = vmul.f32 %v3555_v49, %v324_v44  ;;  %v3557_v45 = vmov %v3550_v38  ;;  %v238_v38 = vpop.permute.xlu1 %237  ;;  %v3343_v25 = vstv %s2589_s26 }
 0x10e   : > { %v3551_v56 = vstv %s3546_s11  ;;  %s3558_s14 = sld [smem:[#allocation17_spill]]  ;;  %v348_v23 = vmul.f32 %v3557_v45, %v324_v44  ;;  %v244_v49 = vsel %vm243_vm3, %v238_v38, 0.0  ;;  %v235_v45 = vsel %vm234_vm2, 0.0, %v229_v10 }
 0x10f   : > { %v2637_v37 = vmul.f32 %v3551_v56, %v325_v29  ;;  %v3559_v24 = vmov %v3551_v56  ;;  %s3560_s8 = sld [smem:[#allocation18_spill]]  ;;  %v2650_v29 = vmul.f32 %v1161_v43, %v2158_v39  ;;  %v1167_v56 = vstv %s2575_s19 }
 0x110   : > { %v2647_v16 = vmul.f32 %v3559_v24, %v324_v44  ;;  %s3561_s2 = sld [smem:[#allocation19_spill]]  ;;  %v2658_v44 = vmul.f32 %v1167_v56, %v2158_v39  ;;  %v2663_v24 = vmul.f32 %v3343_v25, %v2158_v39 }
 0x111   : > { %s3562_s29 = sld [smem:[#allocation20_spill]]  ;;  %3564 = vst [vmem:[#allocation120_spill] sm:$0xff] %v2650_v29  ;;  %v3566_v51 = vstv %s3552_s22  ;;  %v240_v32 = vpop.permute.xlu1 %239 }
 0x112   : > { %s3563_s15 = sld [smem:[#allocation22_spill]]  ;;  %3565 = vst [vmem:[#allocation121_spill] sm:$0xff] %v2658_v44  ;;  %v296_v15 = vmul.f32 %v3566_v51, %v244_v49  ;;  %v3567_v29 = vstv %s3554_s27 }
 0x113   : > { %v302_v22 = vmul.f32 %v3567_v29, %v244_v49  ;;  %v3568_v53 = vstv %s3556_s18  ;;  %v245_v29 = vsel %vm243_vm3, %v240_v32, 0.0  ;;  %s3581_s21 = sld [smem:[#allocation23_spill]] }
 0x114   : > { %v308_v19 = vmul.f32 %v3568_v53, %v244_v49  ;;  %v3569_v42 = vstv %s3558_s14  ;;  %v2685_v53 = vmul.f32 %v1155_v0, %v2161_v40  ;;  %v2694_v0 = vmul.f32 %v1161_v43, %v2161_v40  ;;  %s3582_s11 = sld [smem:[#allocation24_spill]]  ;;  %v327_v43 = vpop.permute.xlu0 %326 }
 0x115   : > { %v314_v52 = vmul.f32 %v3569_v42, %v244_v49  ;;  %v3570_v48 = vstv %s3560_s8  ;;  %v236_v49 = vsel %vm234_vm2, 0.0, %v231_v11  ;;  %v329_v25 = vpop.permute.xlu1 %328  ;;  %s3583_s0 = sld [smem:[#allocation25_spill]]  ;;  %v3584_v39 = vstv %s3560_s8 }
 0x116   : > { %v248_v38 = vmul.f32 %v3570_v48, %v235_v45  ;;  %v3571_v6 = vstv %s3561_s2  ;;  %3574 = vst [vmem:[#allocation122_spill] sm:$0xff] %v2685_v53  ;;  %3575 = vst [vmem:[#allocation123_spill] sm:$0xff] %v2694_v0  ;;  %s3585_s19 = sld [smem:[#allocation26_spill]] }
 0x117   : > { %v254_v20 = vmul.f32 %v3571_v6, %v235_v45  ;;  %v3572_v10 = vstv %s3562_s29  ;;  %s3599_s8 = sld [smem:[#allocation30_spill]] }
 0x118   : > { %v260_v47 = vmul.f32 %v3572_v10, %v235_v45  ;;  %v3573_v41 = vstv %s3563_s15  ;;  %v274_v42 = vadd.f32 %v2196_v57, %v248_v38  ;;  %v3579_v10 = vstv %s3556_s18  ;;  %s3611_s25 = sld [smem:[#allocation37_spill]] }
 0x119   : > { %v266_v44 = vmul.f32 %v3573_v41, %v235_v45  ;;  %v280_v48 = vadd.f32 %v2202_v59, %v254_v20  ;;  %v2697_v45 = vmul.f32 %v1167_v56, %v2161_v40  ;;  %v309_v32 = vmul.f32 %v3579_v10, %v245_v29  ;;  %s3612_s22 = sld [smem:[#allocation38_spill]] }
 0x11a   : > { %v286_v6 = vadd.f32 %v2214_v63, %v260_v47  ;;  %v298_v57 = vadd.f32 %v296_v15, %v274_v42  ;;  %v3577_v63 = vmov %v3566_v51  ;;  %v3580_v51 = vstv %s3558_s14  ;;  %s3608_s14 = sld [smem:[#allocation35_spill]] }
 0x11b   : > { %v292_v41 = vadd.f32 %v2217_v2, %v266_v44  ;;  %3576 = vst [vmem:[#allocation124_spill] sm:$0xff] %v2697_v45  ;;  %v304_v59 = vadd.f32 %v302_v22, %v280_v48  ;;  %v297_v38 = vmul.f32 %v3577_v63, %v245_v29  ;;  %v3578_v2 = vstv %s3554_s27  ;;  %s3610_s27 = sld [smem:[#allocation36_spill]] }
 0x11c   : > { %v310_v20 = vadd.f32 %v308_v19, %v286_v6  ;;  %v303_v44 = vmul.f32 %v3578_v2, %v245_v29  ;;  %v315_v11 = vmul.f32 %v3580_v51, %v245_v29  ;;  %v249_v56 = vmul.f32 %v3584_v39, %v236_v49  ;;  %s3617_s18 = sld [smem:[#allocation39_spill]] }
 0x11d   : > { %v316_v47 = vadd.f32 %v314_v52, %v292_v41  ;;  %v3586_v15 = vstv %s3561_s2  ;;  %v3587_v19 = vstv %s3562_s29  ;;  %v3588_v42 = vstv %s3563_s15  ;;  %s3593_s2 = sld [smem:[#allocation27_spill]] }
 0x11e   : > { %v255_v22 = vmul.f32 %v3586_v15, %v236_v49  ;;  %v261_v52 = vmul.f32 %v3587_v19, %v236_v49  ;;  %v267_v48 = vmul.f32 %v3588_v42, %v236_v49  ;;  %v333_v6 = vsel %vm243_vm3, %v329_v25, 0.0  ;;  %v410_v25 = vpop.permute.xlu1 %409  ;;  %s3595_s29 = sld [smem:[#allocation28_spill]] }
 0x11f   : > { %v338_v41 = vadd.f32 %v336_v55, %v298_v57  ;;  %v344_v63 = vadd.f32 %v342_v30, %v304_v59  ;;  %v350_v2 = vadd.f32 %v348_v23, %v310_v20  ;;  %v275_v51 = vadd.f32 %v2205_v60, %v249_v56  ;;  %v408_v55 = vpop.permute.xlu0 %407  ;;  %s3597_s15 = sld [smem:[#allocation29_spill]] }
 0x120   : > { %v281_v29 = vadd.f32 %v2208_v61, %v255_v22  ;;  %v287_v10 = vadd.f32 %v2220_v3, %v261_v52  ;;  %v293_v40 = vadd.f32 %v2226_v8, %v267_v48  ;;  %v3589_v39 = vstv %s3581_s21  ;;  %s3618_s21 = sld [smem:[#allocation40_spill]] }
 0x121   : > { %v385_v45 = vmul.f32 %v3589_v39, %v333_v6  ;;  %v3590_v15 = vstv %s3582_s11  ;;  %v3591_v19 = vstv %s3583_s0  ;;  %v3592_v49 = vstv %s3585_s19  ;;  %s3619_s11 = sld [smem:[#allocation41_spill]] }
 0x122   : > { %v391_v0 = vmul.f32 %v3590_v15, %v333_v6  ;;  %v397_v53 = vmul.f32 %v3591_v19, %v333_v6  ;;  %v403_v42 = vmul.f32 %v3592_v49, %v333_v6  ;;  %v299_v30 = vadd.f32 %v297_v38, %v275_v51  ;;  %s3620_s0 = sld [smem:[#allocation42_spill]] }
 0x123   : > { %v305_v23 = vadd.f32 %v303_v44, %v281_v29  ;;  %v311_v57 = vadd.f32 %v309_v32, %v287_v10  ;;  %v317_v60 = vadd.f32 %v315_v11, %v293_v40  ;;  %v356_v61 = vadd.f32 %v2647_v16, %v316_v47  ;;  %v416_v44 = vpop.permute.xlu0 %415  ;;  %s3629_s19 = sld [smem:[#allocation47_spill]] }
 0x124   : > { %v362_v3 = vadd.f32 %v2233_v4, %v338_v41  ;;  %v368_v8 = vadd.f32 %v2249_v18, %v344_v63  ;;  %v374_v59 = vadd.f32 %v2258_v27, %v350_v2  ;;  %v339_v20 = vadd.f32 %v2625_v34, %v299_v30  ;;  %v418_v27 = vpop.permute.xlu1 %417 }
 0x125   : > { %v345_v56 = vadd.f32 %v2629_v26, %v305_v23  ;;  %v351_v38 = vadd.f32 %v2633_v33, %v311_v57  ;;  %v357_v40 = vadd.f32 %v2637_v37, %v317_v60  ;;  %v380_v16 = vadd.f32 %v2266_v36, %v356_v61 }
 0x126   : > { %v332_v4 = vsel %vm243_vm3, %v327_v43, 0.0  ;;  %v414_v18 = vsel %vm234_vm2, 0.0, %v410_v25  ;;  %v413_v47 = vsel %vm234_vm2, 0.0, %v408_v55  ;;  %v363_v34 = vadd.f32 %v2229_v9, %v339_v20 }
 0x127   : > { %v369_v32 = vadd.f32 %v2243_v12, %v345_v56  ;;  %v375_v26 = vadd.f32 %v2246_v17, %v351_v38  ;;  %v381_v33 = vadd.f32 %v2254_v21, %v357_v40  ;;  %v3594_v37 = vmov %v3589_v39  ;;  %v525_v10 = vpop.permute.xlu0 %524 }
 0x128   : > { %v384_v36 = vmul.f32 %v3594_v37, %v332_v4  ;;  %v3596_v11 = vmov %v3590_v15  ;;  %v3598_v22 = vmov %v3591_v19  ;;  %v3600_v48 = vmov %v3592_v49  ;;  %v527_v29 = vpop.permute.xlu1 %526 }
 0x129   : > { %v390_v43 = vmul.f32 %v3596_v11, %v332_v4  ;;  %v396_v52 = vmul.f32 %v3598_v22, %v332_v4  ;;  %v402_v6 = vmul.f32 %v3600_v48, %v332_v4  ;;  %v387_v9 = vadd.f32 %v385_v45, %v363_v34 }
 0x12a   : > { %v393_v12 = vadd.f32 %v391_v0, %v369_v32  ;;  %v399_v17 = vadd.f32 %v397_v53, %v375_v26  ;;  %v405_v41 = vadd.f32 %v403_v42, %v381_v33  ;;  %v386_v21 = vadd.f32 %v384_v36, %v362_v3 }
 0x12b   : > { %v392_v63 = vadd.f32 %v390_v43, %v368_v8  ;;  %v398_v2 = vadd.f32 %v396_v52, %v374_v59  ;;  %v404_v51 = vadd.f32 %v402_v6, %v380_v16  ;;  %v3601_v39 = vstv %s3593_s2  ;;  %v533_v48 = vpop.permute.xlu0 %532  ;;  %s3630_s2 = sld [smem:[#allocation48_spill]] }
 0x12c   : > { %v426_v15 = vmul.f32 %v3601_v39, %v414_v18  ;;  %v3602_v19 = vstv %s3595_s29  ;;  %v3603_v25 = vstv %s3597_s15  ;;  %v3604_v30 = vstv %s3599_s8  ;;  %v535_v52 = vpop.permute.xlu1 %534  ;;  %s3632_s29 = sld [smem:[#allocation49_spill]] }
 0x12d   : > { %v432_v49 = vmul.f32 %v3602_v19, %v414_v18  ;;  %v438_v55 = vmul.f32 %v3603_v25, %v414_v18  ;;  %v444_v23 = vmul.f32 %v3604_v30, %v414_v18  ;;  %v3605_v45 = vmov %v3601_v39  ;;  %s3634_s15 = sld [smem:[#allocation50_spill]] }
 0x12e   : > { %v425_v57 = vmul.f32 %v3605_v45, %v413_v47  ;;  %v3606_v0 = vmov %v3602_v19  ;;  %v3607_v53 = vmov %v3603_v25  ;;  %v3609_v61 = vmov %v3604_v30  ;;  %s3643_s8 = sld [smem:[#allocation51_spill]] }
 0x12f   : > { %v431_v60 = vmul.f32 %v3606_v0, %v413_v47  ;;  %v437_v42 = vmul.f32 %v3607_v53, %v413_v47  ;;  %v443_v3 = vmul.f32 %v3609_v61, %v413_v47  ;;  %v428_v8 = vadd.f32 %v426_v15, %v387_v9 }
 0x130   : > { %v434_v59 = vadd.f32 %v432_v49, %v393_v12  ;;  %v440_v20 = vadd.f32 %v438_v55, %v399_v17  ;;  %v446_v56 = vadd.f32 %v444_v23, %v405_v41  ;;  %v427_v38 = vadd.f32 %v425_v57, %v386_v21  ;;  %v615_v53 = vpop.permute.xlu1 %614 }
 0x131   : > { %v433_v40 = vadd.f32 %v431_v60, %v392_v63  ;;  %v439_v16 = vadd.f32 %v437_v42, %v398_v2  ;;  %v445_v4 = vadd.f32 %v443_v3, %v404_v51  ;;  %v422_v18 = vsel %vm243_vm3, %v418_v27, 0.0  ;;  %v613_v42 = vpop.permute.xlu0 %612 }
 0x132   : > { %v452_v34 = vadd.f32 %v2284_v54, %v428_v8  ;;  %v458_v32 = vadd.f32 %v2292_v62, %v434_v59  ;;  %v464_v26 = vadd.f32 %v2295_v7, %v440_v20  ;;  %v470_v47 = vadd.f32 %v2322_v50, %v446_v56 }
 0x133   : > { %v3613_v33 = vstv %s3608_s14  ;;  %v3614_v36 = vstv %s3610_s27  ;;  %v3615_v43 = vstv %s3611_s25  ;;  %v3616_v27 = vstv %s3612_s22  ;;  %s3644_s14 = sld [smem:[#allocation52_spill]] }
 0x134   : > { %v474_v37 = vmul.f32 %v3613_v33, %v422_v18  ;;  %v480_v11 = vmul.f32 %v3614_v36, %v422_v18  ;;  %v486_v22 = vmul.f32 %v3615_v43, %v422_v18  ;;  %v492_v54 = vmul.f32 %v3616_v27, %v422_v18  ;;  %s3645_s27 = sld [smem:[#allocation53_spill]] }
 0x135   : > { %v451_v62 = vadd.f32 %v2287_v58, %v427_v38  ;;  %v457_v7 = vadd.f32 %v2299_v1, %v433_v40  ;;  %v463_v50 = vadd.f32 %v2306_v28, %v439_v16  ;;  %v469_v17 = vadd.f32 %v2325_v46, %v445_v4  ;;  %s3646_s25 = sld [smem:[#allocation54_spill]] }
 0x136   : > { %v476_v6 = vadd.f32 %v474_v37, %v452_v34  ;;  %v482_v9 = vadd.f32 %v480_v11, %v458_v32  ;;  %v488_v12 = vadd.f32 %v486_v22, %v464_v26  ;;  %v494_v41 = vadd.f32 %v492_v54, %v470_v47  ;;  %s3656_s22 = sld [smem:[#allocation58_spill]] }
 0x137   : > { %v421_v21 = vsel %vm243_vm3, %v416_v44, 0.0  ;;  %v531_v63 = vsel %vm234_vm2, 0.0, %v527_v29  ;;  %v530_v2 = vsel %vm234_vm2, 0.0, %v525_v10  ;;  %v3621_v58 = vmov %v3613_v33 }
 0x138   : > { %v473_v51 = vmul.f32 %v3621_v58, %v421_v21  ;;  %v3622_v39 = vmov %v3614_v36  ;;  %v3623_v15 = vmov %v3615_v43  ;;  %v3624_v28 = vmov %v3616_v27  ;;  %v3647_v58 = vld [vmem:[#allocation78_spill] sm:$0xff] }
 0x139   : > { %v479_v1 = vmul.f32 %v3622_v39, %v421_v21  ;;  %v485_v19 = vmul.f32 %v3623_v15, %v421_v21  ;;  %v491_v49 = vmul.f32 %v3624_v28, %v421_v21  ;;  %v3625_v25 = vstv %s3617_s18  ;;  %s3672_s18 = sld [smem:[#allocation62_spill]] }
 0x13a   : > { %v543_v55 = vmul.f32 %v3625_v25, %v531_v63  ;;  %v3626_v46 = vstv %s3618_s21  ;;  %v3627_v44 = vstv %s3619_s11  ;;  %v3628_v23 = vstv %s3620_s0  ;;  %s3673_s21 = sld [smem:[#allocation63_spill]] }
 0x13b   : > { %v549_v30 = vmul.f32 %v3626_v46, %v531_v63  ;;  %v555_v29 = vmul.f32 %v3627_v44, %v531_v63  ;;  %v561_v10 = vmul.f32 %v3628_v23, %v531_v63  ;;  %v475_v45 = vadd.f32 %v473_v51, %v451_v62  ;;  %s3674_s11 = sld [smem:[#allocation64_spill]] }
 0x13c   : > { %v481_v57 = vadd.f32 %v479_v1, %v457_v7  ;;  %v487_v0 = vadd.f32 %v485_v19, %v463_v50  ;;  %v493_v60 = vadd.f32 %v491_v49, %v469_v17  ;;  %v545_v61 = vadd.f32 %v543_v55, %v476_v6  ;;  %s3675_s0 = sld [smem:[#allocation65_spill]] }
 0x13d   : > { %v551_v3 = vadd.f32 %v549_v30, %v482_v9  ;;  %v557_v8 = vadd.f32 %v555_v29, %v488_v12  ;;  %v563_v59 = vadd.f32 %v561_v10, %v494_v41  ;;  %v3631_v20 = vmov %v3625_v25  ;;  %v3642_v12 = vld [vmem:[#allocation77_spill] sm:$0xff]  ;;  %v621_v41 = vpop.permute.xlu0 %620 }
 0x13e   : > { %v542_v56 = vmul.f32 %v3631_v20, %v530_v2  ;;  %v3633_v38 = vmov %v3626_v46  ;;  %v3635_v16 = vmov %v3627_v44  ;;  %v3636_v18 = vmov %v3628_v23 }
 0x13f   : > { %v548_v40 = vmul.f32 %v3633_v38, %v530_v2  ;;  %v554_v4 = vmul.f32 %v3635_v16, %v530_v2  ;;  %v560_v34 = vmul.f32 %v3636_v18, %v530_v2  ;;  %v539_v32 = vsel %vm243_vm3, %v535_v52, 0.0 }
 0x140   : > { %v569_v26 = vadd.f32 %v2334_v5, %v545_v61  ;;  %v575_v47 = vadd.f32 %v2340_v13, %v551_v3  ;;  %v581_v33 = vadd.f32 %v2343_v14, %v557_v8  ;;  %v544_v37 = vadd.f32 %v542_v56, %v475_v45  ;;  %v3641_v14 = vld [vmem:[#allocation76_spill] sm:$0xff] }
 0x141   : > { %v550_v36 = vadd.f32 %v548_v40, %v481_v57  ;;  %v556_v11 = vadd.f32 %v554_v4, %v487_v0  ;;  %v562_v43 = vadd.f32 %v560_v34, %v493_v60  ;;  %v587_v22 = vadd.f32 %v2366_v31, %v563_v59  ;;  %v623_v31 = vpop.permute.xlu1 %622  ;;  %v702_v40 = vpop.permute.xlu0 %701 }
 0x142   : > { %v3637_v27 = vstv %s3629_s19  ;;  %v3638_v62 = vstv %s3630_s2  ;;  %v3639_v50 = vstv %s3632_s29  ;;  %v3640_v52 = vstv %s3634_s15  ;;  %s3703_s19 = sld [smem:[#allocation71_spill]] }
 0x143   : > { %v591_v54 = vmul.f32 %v3637_v27, %v539_v32  ;;  %v597_v7 = vmul.f32 %v3638_v62, %v539_v32  ;;  %v603_v6 = vmul.f32 %v3639_v50, %v539_v32  ;;  %v609_v5 = vmul.f32 %v3640_v52, %v539_v32  ;;  %s3704_s2 = sld [smem:[#allocation72_spill]] }
 0x144   : > { %v568_v13 = vadd.f32 %v2346_v35, %v544_v37  ;;  %v574_v9 = vadd.f32 %v3641_v14, %v550_v36  ;;  %v580_v17 = vadd.f32 %v3642_v12, %v556_v11  ;;  %v586_v51 = vadd.f32 %v3647_v58, %v562_v43  ;;  %v3661_v36 = vld [vmem:[#allocation79_spill] sm:$0xff]  ;;  %v3662_v43 = vld [vmem:[#allocation80_spill] sm:$0xff]  ;;  %s3705_s29 = sld [smem:[#allocation73_spill]] }
 0x145   : > { %v593_v21 = vadd.f32 %v591_v54, %v569_v26  ;;  %v599_v63 = vadd.f32 %v597_v7, %v575_v47  ;;  %v605_v2 = vadd.f32 %v603_v6, %v581_v33  ;;  %v611_v39 = vadd.f32 %v609_v5, %v587_v22  ;;  %v704_v38 = vpop.permute.xlu1 %703  ;;  %s3706_s15 = sld [smem:[#allocation74_spill]] }
 0x146   : > { %v538_v1 = vsel %vm243_vm3, %v533_v48, 0.0  ;;  %v619_v35 = vsel %vm234_vm2, 0.0, %v615_v53  ;;  %v618_v15 = vsel %vm234_vm2, 0.0, %v613_v42  ;;  %v3648_v19 = vmov %v3637_v27  ;;  %v3663_v27 = vld [vmem:[#allocation81_spill] sm:$0xff] }
 0x147   : > { %v590_v28 = vmul.f32 %v3648_v19, %v538_v1  ;;  %v3649_v49 = vmov %v3638_v62  ;;  %v3650_v55 = vmov %v3639_v50  ;;  %v3651_v30 = vmov %v3640_v52  ;;  %v3664_v52 = vld [vmem:[#allocation84_spill] sm:$0xff] }
 0x148   : > { %v596_v25 = vmul.f32 %v3649_v49, %v538_v1  ;;  %v602_v46 = vmul.f32 %v3650_v55, %v538_v1  ;;  %v608_v44 = vmul.f32 %v3651_v30, %v538_v1  ;;  %v3652_v29 = vstv %s3643_s8  ;;  %v3671_v1 = vld [vmem:[#allocation85_spill] sm:$0xff]  ;;  %v3676_v49 = vld [vmem:[#allocation86_spill] sm:$0xff]  ;;  %s3732_s8 = sld [smem:[#allocation45_spill]] }
 0x149   : > { %v631_v23 = vmul.f32 %v3652_v29, %v619_v35  ;;  %v3653_v10 = vstv %s3644_s14  ;;  %v3654_v48 = vstv %s3645_s27  ;;  %v3655_v0 = vstv %s3646_s25  ;;  %v712_v55 = vpop.permute.xlu1 %711  ;;  %s3788_s14 = sld [smem:[#allocation34_spill]] }
 0x14a   : > { %v637_v45 = vmul.f32 %v3653_v10, %v619_v35  ;;  %v643_v57 = vmul.f32 %v3654_v48, %v619_v35  ;;  %v649_v60 = vmul.f32 %v3655_v0, %v619_v35  ;;  %v592_v53 = vadd.f32 %v590_v28, %v568_v13  ;;  %s3790_s27 = sld [smem:[#allocation43_spill]] }
 0x14b   : > { %v598_v42 = vadd.f32 %v596_v25, %v574_v9  ;;  %v604_v61 = vadd.f32 %v602_v46, %v580_v17  ;;  %v610_v3 = vadd.f32 %v608_v44, %v586_v51  ;;  %v633_v8 = vadd.f32 %v631_v23, %v593_v21  ;;  %v3670_v51 = vld [vmem:[#allocation83_spill] sm:$0xff]  ;;  %v710_v46 = vpop.permute.xlu0 %709  ;;  %s3792_s25 = sld [smem:[#allocation44_spill]] }
 0x14c   : > { %v639_v59 = vadd.f32 %v637_v45, %v599_v63  ;;  %v645_v20 = vadd.f32 %v643_v57, %v605_v2  ;;  %v651_v56 = vadd.f32 %v649_v60, %v611_v39  ;;  %v3657_v16 = vmov %v3652_v29  ;;  %v3669_v2 = vld [vmem:[#allocation82_spill] sm:$0xff] }
 0x14d   : > { %v630_v4 = vmul.f32 %v3657_v16, %v618_v15  ;;  %v3658_v18 = vmov %v3653_v10  ;;  %v3659_v32 = vmov %v3654_v48  ;;  %v3660_v47 = vmov %v3655_v0 }
 0x14e   : > { %v636_v34 = vmul.f32 %v3658_v18, %v618_v15  ;;  %v642_v26 = vmul.f32 %v3659_v32, %v618_v15  ;;  %v648_v33 = vmul.f32 %v3660_v47, %v618_v15  ;;  %v627_v37 = vsel %vm243_vm3, %v623_v31, 0.0 }
 0x14f   : > { %v657_v11 = vadd.f32 %v3661_v36, %v633_v8  ;;  %v663_v22 = vadd.f32 %v3662_v43, %v639_v59  ;;  %v669_v54 = vadd.f32 %v3663_v27, %v645_v20  ;;  %v632_v62 = vadd.f32 %v630_v4, %v592_v53 }
 0x150   : > { %v638_v7 = vadd.f32 %v636_v34, %v598_v42  ;;  %v644_v50 = vadd.f32 %v642_v26, %v604_v61  ;;  %v650_v6 = vadd.f32 %v648_v33, %v610_v3  ;;  %v675_v5 = vadd.f32 %v3664_v52, %v651_v56 }
 0x151   : > { %v3665_v13 = vstv %s3656_s22  ;;  %v3666_v9 = vstv %s3471_s9  ;;  %v3667_v17 = vstv %s3476_s3  ;;  %v3668_v31 = vstv %s3478_s20  ;;  %s3686_s9 = sld [smem:[#allocation67_spill]] }
 0x152   : > { %v679_v14 = vmul.f32 %v3665_v13, %v627_v37  ;;  %v685_v12 = vmul.f32 %v3666_v9, %v627_v37  ;;  %v691_v21 = vmul.f32 %v3667_v17, %v627_v37  ;;  %v697_v63 = vmul.f32 %v3668_v31, %v627_v37  ;;  %s3689_s3 = sld [smem:[#allocation68_spill]] }
 0x153   : > { %v656_v58 = vadd.f32 %v3669_v2, %v632_v62  ;;  %v662_v39 = vadd.f32 %v3670_v51, %v638_v7  ;;  %v668_v35 = vadd.f32 %v3671_v1, %v644_v50  ;;  %v674_v25 = vadd.f32 %v3676_v49, %v650_v6  ;;  %s3691_s20 = sld [smem:[#allocation69_spill]]  ;;  %v822_v62 = vpop.permute.xlu1 %821  ;;  %v820_v7 = vpop.permute.xlu0 %819  ;;  %v3692_v6 = vld [vmem:[#allocation87_spill] sm:$0xff]  ;;  %v3700_v49 = vld [vmem:[#allocation90_spill] sm:$0xff] }
 0x154   : > { %v681_v15 = vadd.f32 %v679_v14, %v657_v11  ;;  %v687_v19 = vadd.f32 %v685_v12, %v663_v22  ;;  %v693_v28 = vadd.f32 %v691_v21, %v669_v54  ;;  %v699_v30 = vadd.f32 %v697_v63, %v675_v5  ;;  %v3693_v5 = vld [vmem:[#allocation88_spill] sm:$0xff]  ;;  %v3694_v14 = vld [vmem:[#allocation89_spill] sm:$0xff]  ;;  %s3793_s22 = sld [smem:[#allocation55_spill]] }
 0x155   : > { %v626_v44 = vsel %vm243_vm3, %v621_v41, 0.0  ;;  %v708_v29 = vsel %vm234_vm2, 0.0, %v704_v38  ;;  %v707_v23 = vsel %vm234_vm2, 0.0, %v702_v40  ;;  %v3677_v10 = vmov %v3665_v13  ;;  %v3695_v63 = vld [vmem:[#allocation92_spill] sm:$0xff] }
 0x156   : > { %v678_v45 = vmul.f32 %v3677_v10, %v626_v44  ;;  %v3678_v48 = vmov %v3666_v9  ;;  %v3679_v0 = vmov %v3667_v17  ;;  %v3680_v53 = vmov %v3668_v31 }
 0x157   : > { %v684_v57 = vmul.f32 %v3678_v48, %v626_v44  ;;  %v690_v60 = vmul.f32 %v3679_v0, %v626_v44  ;;  %v696_v42 = vmul.f32 %v3680_v53, %v626_v44  ;;  %v3681_v61 = vstv %s3672_s18  ;;  %v3702_v44 = vld [vmem:[#allocation93_spill] sm:$0xff]  ;;  %v3707_v48 = vld [vmem:[#allocation94_spill] sm:$0xff]  ;;  %s3068_s18 = sld [smem:[#allocation2 + $0x1e]] }
 0x158   : > { %v720_v3 = vmul.f32 %v3681_v61, %v708_v29  ;;  %v3682_v8 = vstv %s3673_s21  ;;  %v3683_v59 = vstv %s3674_s11  ;;  %v3684_v56 = vstv %s3675_s0  ;;  %s3070_s21 = sld [smem:[#allocation2 + $0x42]] }
 0x159   : > { %v726_v41 = vmul.f32 %v3682_v8, %v708_v29  ;;  %v732_v20 = vmul.f32 %v3683_v59, %v708_v29  ;;  %v738_v38 = vmul.f32 %v3684_v56, %v708_v29  ;;  %v680_v40 = vadd.f32 %v678_v45, %v656_v58  ;;  %s3072_s11 = sld [smem:[#allocation2 + $0x66]] }
 0x15a   : > { %v686_v16 = vadd.f32 %v684_v57, %v662_v39  ;;  %v692_v4 = vadd.f32 %v690_v60, %v668_v35  ;;  %v698_v18 = vadd.f32 %v696_v42, %v674_v25  ;;  %v722_v34 = vadd.f32 %v720_v3, %v681_v15  ;;  %v828_v3 = vpop.permute.xlu0 %827  ;;  %s3082_s0 = sld [smem:[#allocation2 + $0x8a]] }
 0x15b   : > { %v728_v32 = vadd.f32 %v726_v41, %v687_v19  ;;  %v734_v26 = vadd.f32 %v732_v20, %v693_v28  ;;  %v740_v47 = vadd.f32 %v738_v38, %v699_v30  ;;  %v3685_v33 = vmov %v3681_v61  ;;  %v830_v61 = vpop.permute.xlu1 %829 }
 0x15c   : > { %v719_v37 = vmul.f32 %v3685_v33, %v707_v23  ;;  %v3687_v36 = vmov %v3682_v8  ;;  %v3688_v43 = vmov %v3683_v59  ;;  %v3690_v27 = vmov %v3684_v56 }
 0x15d   : > { %v725_v11 = vmul.f32 %v3687_v36, %v707_v23  ;;  %v731_v22 = vmul.f32 %v3688_v43, %v707_v23  ;;  %v737_v54 = vmul.f32 %v3690_v27, %v707_v23  ;;  %v716_v50 = vsel %vm243_vm3, %v712_v55, 0.0  ;;  %v3701_v55 = vld [vmem:[#allocation91_spill] sm:$0xff] }
 0x15e   : > { %v746_v52 = vadd.f32 %v3692_v6, %v722_v34  ;;  %v752_v13 = vadd.f32 %v3693_v5, %v728_v32  ;;  %v758_v9 = vadd.f32 %v3694_v14, %v734_v26  ;;  %v721_v12 = vadd.f32 %v719_v37, %v680_v40 }
 0x15f   : > { %v727_v17 = vadd.f32 %v725_v11, %v686_v16  ;;  %v733_v21 = vadd.f32 %v731_v22, %v692_v4  ;;  %v739_v31 = vadd.f32 %v737_v54, %v698_v18  ;;  %v764_v2 = vadd.f32 %v3695_v63, %v740_v47 }
 0x160   : > { %v3696_v58 = vstv %s3686_s9  ;;  %v3697_v39 = vstv %s2146_s10  ;;  %v3698_v35 = vstv %s3689_s3  ;;  %v3699_v19 = vstv %s3691_s20  ;;  %s3717_s10 = sld [smem:[#allocation31_spill]] }
 0x161   : > { %v768_v51 = vmul.f32 %v3696_v58, %v716_v50  ;;  %v774_v1 = vmul.f32 %v3697_v39, %v716_v50  ;;  %v780_v15 = vmul.f32 %v3698_v35, %v716_v50  ;;  %v786_v28 = vmul.f32 %v3699_v19, %v716_v50  ;;  %s3088_s9 = sld [smem:[#allocation2 + $0x1f]] }
 0x162   : > { %v745_v25 = vadd.f32 %v3700_v49, %v721_v12  ;;  %v751_v30 = vadd.f32 %v3701_v55, %v727_v17  ;;  %v757_v29 = vadd.f32 %v3702_v44, %v733_v21  ;;  %v763_v57 = vadd.f32 %v3707_v48, %v739_v31  ;;  %v3721_v17 = vld [vmem:[#allocation95_spill] sm:$0xff]  ;;  %v3722_v31 = vld [vmem:[#allocation96_spill] sm:$0xff]  ;;  %v3729_v48 = vld [vmem:[#allocation98_spill] sm:$0xff]  ;;  %s3097_s3 = sld [smem:[#allocation2 + $0x43]] }
 0x163   : > { %v770_v23 = vadd.f32 %v768_v51, %v746_v52  ;;  %v776_v10 = vadd.f32 %v774_v1, %v752_v13  ;;  %v782_v45 = vadd.f32 %v780_v15, %v758_v9  ;;  %v788_v0 = vadd.f32 %v786_v28, %v764_v2  ;;  %v3723_v2 = vld [vmem:[#allocation97_spill] sm:$0xff]  ;;  %v910_v51 = vpop.permute.xlu1 %909  ;;  %v3724_v28 = vld [vmem:[#allocation100_spill] sm:$0xff]  ;;  %s3104_s20 = sld [smem:[#allocation2 + $0x67]] }
 0x164   : > { %v715_v60 = vsel %vm243_vm3, %v710_v46, 0.0  ;;  %v826_v53 = vsel %vm234_vm2, 0.0, %v822_v62  ;;  %v825_v42 = vsel %vm234_vm2, 0.0, %v820_v7  ;;  %v3708_v8 = vmov %v3696_v58 }
 0x165   : > { %v767_v41 = vmul.f32 %v3708_v8, %v715_v60  ;;  %v3709_v59 = vmov %v3697_v39  ;;  %v3710_v56 = vmov %v3698_v35  ;;  %v3711_v40 = vmov %v3699_v19  ;;  %v908_v39 = vpop.permute.xlu0 %907 }
 0x166   : > { %v773_v20 = vmul.f32 %v3709_v59, %v715_v60  ;;  %v779_v38 = vmul.f32 %v3710_v56, %v715_v60  ;;  %v785_v16 = vmul.f32 %v3711_v40, %v715_v60  ;;  %v3712_v4 = vstv %s3703_s19  ;;  %v3733_v59 = vld [vmem:[#allocation102_spill] sm:$0xff]  ;;  %s3109_s19 = sld [smem:[#allocation2 + $0x8b]] }
 0x167   : > { %v838_v46 = vmul.f32 %v3712_v4, %v826_v53  ;;  %v3713_v18 = vstv %s3704_s2  ;;  %v3714_v32 = vstv %s3705_s29  ;;  %v3715_v47 = vstv %s3706_s15  ;;  %s3114_s2 = sld [smem:[#allocation2 + $0x20]] }
 0x168   : > { %v844_v34 = vmul.f32 %v3713_v18, %v826_v53  ;;  %v850_v26 = vmul.f32 %v3714_v32, %v826_v53  ;;  %v856_v33 = vmul.f32 %v3715_v47, %v826_v53  ;;  %v769_v37 = vadd.f32 %v767_v41, %v745_v25  ;;  %v3731_v53 = vld [vmem:[#allocation101_spill] sm:$0xff]  ;;  %s3129_s29 = sld [smem:[#allocation2 + $0x68]] }
 0x169   : > { %v775_v36 = vadd.f32 %v773_v20, %v751_v30  ;;  %v781_v11 = vadd.f32 %v779_v38, %v757_v29  ;;  %v787_v43 = vadd.f32 %v785_v16, %v763_v57  ;;  %v840_v22 = vadd.f32 %v838_v46, %v770_v23  ;;  %s3143_s15 = sld [smem:[#allocation2 + $0x69]] }
 0x16a   : > { %v846_v27 = vadd.f32 %v844_v34, %v776_v10  ;;  %v852_v54 = vadd.f32 %v850_v26, %v782_v45  ;;  %v858_v62 = vadd.f32 %v856_v33, %v788_v0  ;;  %v3716_v7 = vmov %v3712_v4  ;;  %v3730_v0 = vld [vmem:[#allocation99_spill] sm:$0xff] }
 0x16b   : > { %v837_v50 = vmul.f32 %v3716_v7, %v825_v42  ;;  %v3718_v6 = vmov %v3713_v18  ;;  %v3719_v5 = vmov %v3714_v32  ;;  %v3720_v14 = vmov %v3715_v47 }
 0x16c   : > { %v843_v52 = vmul.f32 %v3718_v6, %v825_v42  ;;  %v849_v13 = vmul.f32 %v3719_v5, %v825_v42  ;;  %v855_v9 = vmul.f32 %v3720_v14, %v825_v42  ;;  %v834_v12 = vsel %vm243_vm3, %v830_v61, 0.0 }
 0x16d   : > { %v864_v21 = vadd.f32 %v3721_v17, %v840_v22  ;;  %v870_v63 = vadd.f32 %v3722_v31, %v846_v27  ;;  %v876_v58 = vadd.f32 %v3723_v2, %v852_v54  ;;  %v839_v1 = vadd.f32 %v837_v50, %v769_v37  ;;  %v918_v37 = vpop.permute.xlu1 %917 }
 0x16e   : > { %v845_v35 = vadd.f32 %v843_v52, %v775_v36  ;;  %v851_v15 = vadd.f32 %v849_v13, %v781_v11  ;;  %v857_v19 = vadd.f32 %v855_v9, %v787_v43  ;;  %v882_v49 = vadd.f32 %v3724_v28, %v858_v62  ;;  %v916_v36 = vpop.permute.xlu0 %915 }
 0x16f   : > { %v3725_v25 = vstv %s3717_s10  ;;  %v3726_v30 = vstv %s2261_s30  ;;  %v3727_v29 = vstv %s3507_s16  ;;  %v3728_v10 = vstv %s3509_s12  ;;  %s3743_s30 = sld [smem:[#allocation46_spill]] }
 0x170   : > { %v886_v55 = vmul.f32 %v3725_v25, %v834_v12  ;;  %v892_v44 = vmul.f32 %v3726_v30, %v834_v12  ;;  %v898_v23 = vmul.f32 %v3727_v29, %v834_v12  ;;  %v904_v45 = vmul.f32 %v3728_v10, %v834_v12  ;;  %s3760_s16 = sld [smem:[#allocation59_spill]] }
 0x171   : > { %v863_v57 = vadd.f32 %v3729_v48, %v839_v1  ;;  %v869_v60 = vadd.f32 %v3730_v0, %v845_v35  ;;  %v875_v42 = vadd.f32 %v3731_v53, %v851_v15  ;;  %v881_v20 = vadd.f32 %v3733_v59, %v857_v19  ;;  %v3747_v35 = vld [vmem:[#allocation103_spill] sm:$0xff]  ;;  %v3748_v19 = vld [vmem:[#allocation104_spill] sm:$0xff]  ;;  %v3755_v59 = vld [vmem:[#allocation106_spill] sm:$0xff]  ;;  %s3761_s12 = sld [smem:[#allocation60_spill]] }
 0x172   : > { %v888_v61 = vadd.f32 %v886_v55, %v864_v21  ;;  %v894_v8 = vadd.f32 %v892_v44, %v870_v63  ;;  %v900_v41 = vadd.f32 %v898_v23, %v876_v58  ;;  %v906_v56 = vadd.f32 %v904_v45, %v882_v49  ;;  %v3749_v49 = vld [vmem:[#allocation105_spill] sm:$0xff]  ;;  %v999_v23 = vpop.permute.xlu1 %998  ;;  %v3750_v45 = vld [vmem:[#allocation108_spill] sm:$0xff]  ;;  %s3148_s10 = sld [smem:[#allocation2 + $0x8d]] }
 0x173   : > { %v833_v38 = vsel %vm243_vm3, %v828_v3, 0.0  ;;  %v914_v40 = vsel %vm234_vm2, 0.0, %v910_v51  ;;  %v913_v16 = vsel %vm234_vm2, 0.0, %v908_v39  ;;  %v3734_v4 = vmov %v3725_v25 }
 0x174   : > { %v885_v46 = vmul.f32 %v3734_v4, %v833_v38  ;;  %v3735_v18 = vmov %v3726_v30  ;;  %v3736_v32 = vmov %v3727_v29  ;;  %v3737_v47 = vmov %v3728_v10  ;;  %v997_v10 = vpop.permute.xlu0 %996 }
 0x175   : > { %v891_v34 = vmul.f32 %v3735_v18, %v833_v38  ;;  %v897_v26 = vmul.f32 %v3736_v32, %v833_v38  ;;  %v903_v33 = vmul.f32 %v3737_v47, %v833_v38  ;;  %v3738_v11 = vstv %s3511_s17  ;;  %s3774_s17 = sld [smem:[#allocation32_spill]] }
 0x176   : > { %v926_v3 = vmul.f32 %v3738_v11, %v914_v40  ;;  %v3739_v43 = vstv %s3515_s1  ;;  %v3740_v27 = vstv %s3516_s6  ;;  %v3741_v62 = vstv %s3732_s8  ;;  %s3756_s1 = sld [smem:[#allocation56_spill]] }
 0x177   : > { %v932_v22 = vmul.f32 %v3739_v43, %v914_v40  ;;  %v938_v54 = vmul.f32 %v3740_v27, %v914_v40  ;;  %v944_v7 = vmul.f32 %v3741_v62, %v914_v40  ;;  %v887_v50 = vadd.f32 %v885_v46, %v863_v57  ;;  %s3758_s6 = sld [smem:[#allocation57_spill]]  ;;  %v3759_v40 = vld [vmem:[#allocation109_spill] sm:$0xff] }
 0x178   : > { %v893_v6 = vadd.f32 %v891_v34, %v869_v60  ;;  %v899_v52 = vadd.f32 %v897_v26, %v875_v42  ;;  %v905_v5 = vadd.f32 %v903_v33, %v881_v20  ;;  %v928_v13 = vadd.f32 %v926_v3, %v888_v61  ;;  %v3762_v34 = vld [vmem:[#allocation110_spill] sm:$0xff]  ;;  %s3152_s8 = sld [smem:[#allocation2 + $0x22]] }
 0x179   : > { %v934_v14 = vadd.f32 %v932_v22, %v894_v8  ;;  %v940_v9 = vadd.f32 %v938_v54, %v900_v41  ;;  %v946_v12 = vadd.f32 %v944_v7, %v906_v56  ;;  %v3742_v17 = vmov %v3738_v11  ;;  %v3757_v56 = vld [vmem:[#allocation107_spill] sm:$0xff] }
 0x17a   : > { %v925_v21 = vmul.f32 %v3742_v17, %v913_v16  ;;  %v3744_v31 = vmov %v3739_v43  ;;  %v3745_v2 = vmov %v3740_v27  ;;  %v3746_v51 = vmov %v3741_v62  ;;  %v1005_v17 = vpop.permute.xlu0 %1004 }
 0x17b   : > { %v931_v63 = vmul.f32 %v3744_v31, %v913_v16  ;;  %v937_v58 = vmul.f32 %v3745_v2, %v913_v16  ;;  %v943_v39 = vmul.f32 %v3746_v51, %v913_v16  ;;  %v922_v1 = vsel %vm243_vm3, %v918_v37, 0.0 }
 0x17c   : > { %v952_v15 = vadd.f32 %v3747_v35, %v928_v13  ;;  %v958_v28 = vadd.f32 %v3748_v19, %v934_v14  ;;  %v964_v25 = vadd.f32 %v3749_v49, %v940_v9  ;;  %v927_v55 = vadd.f32 %v925_v21, %v887_v50 }
 0x17d   : > { %v933_v30 = vadd.f32 %v931_v63, %v893_v6  ;;  %v939_v44 = vadd.f32 %v937_v58, %v899_v52  ;;  %v945_v29 = vadd.f32 %v943_v39, %v905_v5  ;;  %v970_v48 = vadd.f32 %v3750_v45, %v946_v12  ;;  %v1007_v12 = vpop.permute.xlu1 %1006 }
 0x17e   : > { %v3751_v57 = vstv %s3743_s30  ;;  %v3752_v60 = vstv %s2379_s4  ;;  %v3753_v42 = vstv %s3526_s24  ;;  %v3754_v8 = vstv %s2401_s28  ;;  %s3771_s4 = sld [smem:[#allocation61_spill]] }
 0x17f   : > { %v974_v0 = vmul.f32 %v3751_v57, %v922_v1  ;;  %v980_v53 = vmul.f32 %v3752_v60, %v922_v1  ;;  %v986_v61 = vmul.f32 %v3753_v42, %v922_v1  ;;  %v992_v41 = vmul.f32 %v3754_v8, %v922_v1  ;;  %s3772_s28 = sld [smem:[#allocation66_spill]] }
 0x180   : > { %v951_v20 = vadd.f32 %v3755_v59, %v927_v55  ;;  %v957_v38 = vadd.f32 %v3757_v56, %v933_v30  ;;  %v963_v16 = vadd.f32 %v3759_v40, %v939_v44  ;;  %v969_v32 = vadd.f32 %v3762_v34, %v945_v29  ;;  %s3778_s24 = sld [smem:[#allocation33_spill]]  ;;  %v3779_v29 = vld [vmem:[#allocation111_spill] sm:$0xff]  ;;  %v3787_v34 = vld [vmem:[#allocation114_spill] sm:$0xff] }
 0x181   : > { %v976_v4 = vadd.f32 %v974_v0, %v952_v15  ;;  %v982_v46 = vadd.f32 %v980_v53, %v958_v28  ;;  %v988_v18 = vadd.f32 %v986_v61, %v964_v25  ;;  %v994_v26 = vadd.f32 %v992_v41, %v970_v48  ;;  %v3781_v48 = vld [vmem:[#allocation113_spill] sm:$0xff]  ;;  %v3782_v61 = vld [vmem:[#allocation116_spill] sm:$0xff]  ;;  %s3154_s30 = sld [smem:[#allocation2 + $0x46]] }
 0x182   : > { %v921_v47 = vsel %vm243_vm3, %v916_v36, 0.0  ;;  %v1003_v33 = vsel %vm234_vm2, 0.0, %v999_v23  ;;  %v1002_v37 = vsel %vm234_vm2, 0.0, %v997_v10  ;;  %v3763_v11 = vmov %v3751_v57  ;;  %v3780_v10 = vld [vmem:[#allocation112_spill] sm:$0xff] }
 0x183   : > { %v973_v3 = vmul.f32 %v3763_v11, %v921_v47  ;;  %v3764_v43 = vmov %v3752_v60  ;;  %v3765_v27 = vmov %v3753_v42  ;;  %v3766_v62 = vmov %v3754_v8 }
 0x184   : > { %v979_v22 = vmul.f32 %v3764_v43, %v921_v47  ;;  %v985_v54 = vmul.f32 %v3765_v27, %v921_v47  ;;  %v991_v7 = vmul.f32 %v3766_v62, %v921_v47  ;;  %v3767_v50 = vstv %s3756_s1  ;;  %s3157_s1 = sld [smem:[#allocation2 + $0x6a]] }
 0x185   : > { %v1015_v6 = vmul.f32 %v3767_v50, %v1003_v33  ;;  %v3768_v52 = vstv %s3758_s6  ;;  %v3769_v36 = vstv %s3760_s16  ;;  %v3770_v14 = vstv %s3761_s12  ;;  %s3159_s6 = sld [smem:[#allocation2 + $0x8e]] }
 0x186   : > { %v1021_v5 = vmul.f32 %v3768_v52, %v1003_v33  ;;  %v1027_v13 = vmul.f32 %v3769_v36, %v1003_v33  ;;  %v1033_v9 = vmul.f32 %v3770_v14, %v1003_v33  ;;  %v975_v21 = vadd.f32 %v973_v3, %v951_v20  ;;  %v3791_v33 = vld [vmem:[#allocation117_spill] sm:$0xff]  ;;  %s3163_s16 = sld [smem:[#allocation2 + $0x23]] }
 0x187   : > { %v981_v31 = vadd.f32 %v979_v22, %v957_v38  ;;  %v987_v63 = vadd.f32 %v985_v54, %v963_v16  ;;  %v993_v2 = vadd.f32 %v991_v7, %v969_v32  ;;  %v1017_v58 = vadd.f32 %v1015_v6, %v976_v4  ;;  %v1117_v16 = vpop.permute.xlu1 %1116  ;;  %v1115_v4 = vpop.permute.xlu0 %1114  ;;  %v3794_v22 = vld [vmem:[#allocation118_spill] sm:$0xff]  ;;  %s3165_s12 = sld [smem:[#allocation2 + $0x47]] }
 0x188   : > { %v1023_v51 = vadd.f32 %v1021_v5, %v982_v46  ;;  %v1029_v39 = vadd.f32 %v1027_v13, %v988_v18  ;;  %v1035_v1 = vadd.f32 %v1033_v9, %v994_v26  ;;  %v3773_v35 = vmov %v3767_v50  ;;  %v3789_v26 = vld [vmem:[#allocation115_spill] sm:$0xff] }
 0x189   : > { %v1014_v15 = vmul.f32 %v3773_v35, %v1002_v37  ;;  %v3775_v19 = vmov %v3768_v52  ;;  %v3776_v49 = vmov %v3769_v36  ;;  %v3777_v55 = vmov %v3770_v14 }
 0x18a   : > { %v1020_v28 = vmul.f32 %v3775_v19, %v1002_v37  ;;  %v1026_v25 = vmul.f32 %v3776_v49, %v1002_v37  ;;  %v1032_v30 = vmul.f32 %v3777_v55, %v1002_v37  ;;  %v1011_v44 = vsel %vm243_vm3, %v1007_v12, 0.0 }
 0x18b   : > { %v1041_v23 = vadd.f32 %v3779_v29, %v1017_v58  ;;  %v1047_v45 = vadd.f32 %v3780_v10, %v1023_v51  ;;  %v1053_v57 = vadd.f32 %v3781_v48, %v1029_v39  ;;  %v1016_v0 = vadd.f32 %v1014_v15, %v975_v21 }
 0x18c   : > { %v1022_v60 = vadd.f32 %v1020_v28, %v981_v31  ;;  %v1028_v53 = vadd.f32 %v1026_v25, %v987_v63  ;;  %v1034_v42 = vadd.f32 %v1032_v30, %v993_v2  ;;  %v1059_v8 = vadd.f32 %v3782_v61, %v1035_v1  ;;  %v1125_v28 = vpop.permute.xlu1 %1124  ;;  %v3808_v61 = vld [vmem:[#allocation120_spill] sm:$0xff] }
 0x18d   : > { %v3783_v41 = vstv %s3771_s4  ;;  %v3784_v20 = vstv %s3772_s28  ;;  %v3785_v38 = vstv %s3774_s17  ;;  %v3786_v46 = vstv %s3778_s24  ;;  %s3171_s4 = sld [smem:[#allocation2 + $0x6b]] }
 0x18e   : > { %v1063_v59 = vmul.f32 %v3783_v41, %v1011_v44  ;;  %v1069_v56 = vmul.f32 %v3784_v20, %v1011_v44  ;;  %v1075_v40 = vmul.f32 %v3785_v38, %v1011_v44  ;;  %v1081_v18 = vmul.f32 %v3786_v46, %v1011_v44  ;;  %s3173_s28 = sld [smem:[#allocation2 + $0x8f]] }
 0x18f   : > { %v1040_v32 = vadd.f32 %v3787_v34, %v1016_v0  ;;  %v1046_v47 = vadd.f32 %v3789_v26, %v1022_v60  ;;  %v1052_v37 = vadd.f32 %v3791_v33, %v1028_v53  ;;  %v1058_v27 = vadd.f32 %v3794_v22, %v1034_v42  ;;  %v3807_v53 = vld [vmem:[#allocation119_spill] sm:$0xff]  ;;  %s3824_s17 = sld [smem:[#allocation8_spill]] }
 0x190   : > { %v1065_v11 = vadd.f32 %v1063_v59, %v1041_v23  ;;  %v1071_v3 = vadd.f32 %v1069_v56, %v1047_v45  ;;  %v1077_v43 = vadd.f32 %v1075_v40, %v1053_v57  ;;  %v1083_v54 = vadd.f32 %v1081_v18, %v1059_v8 }
 0x191   : > { %v1010_v62 = vsel %vm243_vm3, %v1005_v17, 0.0  ;;  %v1121_v7 = vsel %vm234_vm2, 0.0, %v1117_v16  ;;  %v1120_v50 = vsel %vm234_vm2, 0.0, %v1115_v4  ;;  %v3795_v6 = vmov %v3783_v41  ;;  %v3809_v41 = vld [vmem:[#allocation121_spill] sm:$0xff]  ;;  %v1123_v16 = vpop.permute.xlu0 %1122 }
 0x192   : > { %v1062_v52 = vmul.f32 %v3795_v6, %v1010_v62  ;;  %v3796_v5 = vmov %v3784_v20  ;;  %v3797_v13 = vmov %v3785_v38  ;;  %v3798_v9 = vmov %v3786_v46 }
 0x193   : > { %v1068_v36 = vmul.f32 %v3796_v5, %v1010_v62  ;;  %v1074_v14 = vmul.f32 %v3797_v13, %v1010_v62  ;;  %v1080_v12 = vmul.f32 %v3798_v9, %v1010_v62  ;;  %v3799_v21 = vstv %s3788_s14  ;;  %v1205_v5 = vpop.permute.xlu1 %1204 }
 0x194   : > { %v1133_v31 = vmul.f32 %v3799_v21, %v1121_v7  ;;  %v3800_v63 = vstv %s3790_s27  ;;  %v3801_v58 = vstv %s3792_s25  ;;  %v3802_v51 = vstv %s3793_s22  ;;  %s3826_s25 = sld [smem:[#allocation127_spill]] }
 0x195   : > { %v1139_v2 = vmul.f32 %v3800_v63, %v1121_v7  ;;  %v1145_v17 = vmul.f32 %v3801_v58, %v1121_v7  ;;  %v1151_v39 = vmul.f32 %v3802_v51, %v1121_v7  ;;  %v1064_v1 = vadd.f32 %v1062_v52, %v1040_v32  ;;  %s1699_s24 = sshll.u32 %s3824_s17, 6 }
 0x196   : > { %v1070_v35 = vadd.f32 %v1068_v36, %v1046_v47  ;;  %v1076_v15 = vadd.f32 %v1074_v14, %v1052_v37  ;;  %v1082_v19 = vadd.f32 %v1080_v12, %v1058_v27  ;;  %v1135_v49 = vadd.f32 %v1133_v31, %v1065_v11  ;;  %v3814_v11 = vld [vmem:[#allocation122_spill] sm:$0xff]  ;;  %v3816_v27 = vld [vmem:[#allocation124_spill] sm:$0xff] }
 0x197   : > { %v1141_v25 = vadd.f32 %v1139_v2, %v1071_v3  ;;  %v1147_v55 = vadd.f32 %v1145_v17, %v1077_v43  ;;  %v1153_v30 = vadd.f32 %v1151_v39, %v1083_v54  ;;  %v3803_v44 = vmov %v3799_v21  ;;  %v3815_v43 = vld [vmem:[#allocation123_spill] sm:$0xff] }
 0x198   : > { %v1132_v29 = vmul.f32 %v3803_v44, %v1120_v50  ;;  %v3804_v23 = vmov %v3800_v63  ;;  %v3805_v45 = vmov %v3801_v58  ;;  %v3806_v57 = vmov %v3802_v51 }
 0x199   : > { %v1138_v10 = vmul.f32 %v3804_v23, %v1120_v50  ;;  %v1144_v48 = vmul.f32 %v3805_v45, %v1120_v50  ;;  %v1150_v0 = vmul.f32 %v3806_v57, %v1120_v50  ;;  %v1129_v60 = vsel %vm243_vm3, %v1125_v28, 0.0  ;;  %v3817_v50 = vld [vmem:[#allocation70_spill] sm:$0xff] }
 0x19a   : > { %v1159_v42 = vadd.f32 %v3807_v53, %v1135_v49  ;;  %v1165_v8 = vadd.f32 %v3808_v61, %v1141_v25  ;;  %v1171_v59 = vadd.f32 %v3809_v41, %v1147_v55  ;;  %v1134_v20 = vadd.f32 %v1132_v29, %v1064_v1  ;;  %s3193_s22 = scalar_lea.vmem %s3826_s25, %s1699_s24 }
 0x19b   : > { %v1140_v56 = vadd.f32 %v1138_v10, %v1070_v35  ;;  %v1146_v38 = vadd.f32 %v1144_v48, %v1076_v15  ;;  %v1152_v40 = vadd.f32 %v1150_v0, %v1082_v19  ;;  %v1177_v4 = vadd.f32 %v2663_v24, %v1153_v30  ;;  %v1203_v19 = vpop.permute.xlu0 %1202 }
 0x19c   : > { %v3810_v46 = vstv %s2601_s5  ;;  %v3811_v34 = vstv %s2607_s13  ;;  %v3812_v26 = vstv %s2613_s7  ;;  %v3813_v33 = vstv %s2621_s23  ;;  %s3131_s13 = sld [smem:[#allocation2 + $0x8c]] }
 0x19d   : > { %v1181_v18 = vmul.f32 %v3810_v46, %v1129_v60  ;;  %v1187_v32 = vmul.f32 %v3811_v34, %v1129_v60  ;;  %v1193_v47 = vmul.f32 %v3812_v26, %v1129_v60  ;;  %v1199_v37 = vmul.f32 %v3813_v33, %v1129_v60  ;;  %s3823_s7 = sld [smem:[#allocation11_spill]] }
 0x19e   : > { %v1158_v3 = vadd.f32 %v3814_v11, %v1134_v20  ;;  %v1164_v22 = vadd.f32 %v3815_v43, %v1140_v56  ;;  %v1170_v24 = vadd.f32 %v3816_v27, %v1146_v38  ;;  %v3818_v6 = vstv %s2589_s26  ;;  %s3122_s26 = sld [smem:[#allocation2 + $0x44]] }
 0x19f   : > { %v1183_v54 = vadd.f32 %v1181_v18, %v1159_v42  ;;  %v1189_v62 = vadd.f32 %v1187_v32, %v1165_v8  ;;  %v1195_v7 = vadd.f32 %v1193_v47, %v1171_v59  ;;  %v1174_v52 = vmul.f32 %v3818_v6, %v3817_v50  ;;  %s3137_s23 = sld [smem:[#allocation2 + $0x21]] }
 0x1a0   : > { %v1201_v36 = vadd.f32 %v1199_v37, %v1177_v4  ;;  %v1128_v13 = vsel %vm243_vm3, %v1123_v16, 0.0  ;;  %v1219_v14 = vstv %s3068_s18  ;;  %v1225_v9 = vstv %s3070_s21  ;;  %v1213_v4 = vpop.permute.xlu1 %1212  ;;  %s3141_s5 = sld [smem:[#allocation2 + $0x45]] }
 0x1a1   : > { %v1176_v12 = vadd.f32 %v1174_v52, %v1152_v40  ;;  %v3819_v21 = vmov %v3810_v46  ;;  %v3820_v63 = vmov %v3811_v34  ;;  %v3821_v58 = vmov %v3812_v26 }
 0x1a2   : > { %v1180_v31 = vmul.f32 %v3819_v21, %v1128_v13  ;;  %v1186_v2 = vmul.f32 %v3820_v63, %v1128_v13  ;;  %v1192_v17 = vmul.f32 %v3821_v58, %v1128_v13  ;;  %v3822_v51 = vmov %v3813_v33 }
 0x1a3   : > { %v1198_v39 = vmul.f32 %v3822_v51, %v1128_v13  ;;  %v1231_v1 = vstv %s3072_s11  ;;  %v1237_v35 = vstv %s3082_s0  ;;  %v1209_v15 = vsel %vm234_vm2, 0.0, %v1205_v5  ;;  %v1738_v59 = vld [vmem:[%s3823_s7 + $0xb8] sm:$0xff]  ;;  %v1739_v52 = vld [vmem:[%s3823_s7 + $0xb0] sm:$0xff] }
 0x1a4   : > { %v1182_v28 = vadd.f32 %v1180_v31, %v1158_v3  ;;  %v1188_v49 = vadd.f32 %v1186_v2, %v1164_v22  ;;  %v1194_v25 = vadd.f32 %v1192_v17, %v1170_v24  ;;  %v1221_v55 = vmul.f32 %v1219_v14, %v1209_v15  ;;  %v1294_v58 = vpop.permute.xlu1 %1293 }
 0x1a5   : > { %v1200_v30 = vadd.f32 %v1198_v39, %v1176_v12  ;;  %v1227_v44 = vmul.f32 %v1225_v9, %v1209_v15  ;;  %v1233_v29 = vmul.f32 %v1231_v1, %v1209_v15  ;;  %v1239_v23 = vmul.f32 %v1237_v35, %v1209_v15 }
 0x1a6   : > { %v1223_v10 = vadd.f32 %v1221_v55, %v1183_v54  ;;  %v1208_v45 = vsel %vm234_vm2, 0.0, %v1203_v19  ;;  %v1243_v48 = vstv %s3088_s9  ;;  %v1249_v57 = vstv %s3097_s3 }
 0x1a7   : > { %v1229_v0 = vadd.f32 %v1227_v44, %v1189_v62  ;;  %v1235_v60 = vadd.f32 %v1233_v29, %v1195_v7  ;;  %v1241_v53 = vadd.f32 %v1239_v23, %v1201_v36  ;;  %v1220_v42 = vmul.f32 %v1219_v14, %v1208_v45  ;;  %v1211_v7 = vpop.permute.xlu0 %1210 }
 0x1a8   : > { %v1226_v61 = vmul.f32 %v1225_v9, %v1208_v45  ;;  %v1232_v8 = vmul.f32 %v1231_v1, %v1208_v45  ;;  %v1238_v41 = vmul.f32 %v1237_v35, %v1208_v45  ;;  %v1245_v20 = vmul.f32 %v1738_v59, %v1243_v48 }
 0x1a9   : > { %v1222_v56 = vadd.f32 %v1220_v42, %v1182_v28  ;;  %v1251_v38 = vmul.f32 %v1738_v59, %v1249_v57  ;;  %v1255_v40 = vstv %s3104_s20  ;;  %v1261_v16 = vstv %s3109_s19 }
 0x1aa   : > { %v1228_v46 = vadd.f32 %v1226_v61, %v1188_v49  ;;  %v1234_v18 = vadd.f32 %v1232_v8, %v1194_v25  ;;  %v1240_v34 = vadd.f32 %v1238_v41, %v1200_v30  ;;  %v1257_v32 = vmul.f32 %v1738_v59, %v1255_v40 }
 0x1ab   : > { %v1263_v26 = vmul.f32 %v1738_v59, %v1261_v16  ;;  %v1267_v47 = vstv %s3114_s2  ;;  %v1273_v33 = vstv %s3122_s26  ;;  %v1279_v37 = vstv %s3129_s29  ;;  %v1292_v44 = vpop.permute.xlu0 %1291 }
 0x1ac   : > { %v1285_v11 = vstv %s3131_s13  ;;  %v1217_v3 = vsel %vm243_vm3, %v1213_v4, 0.0  ;;  %v1247_v43 = vadd.f32 %v1245_v20, %v1223_v10  ;;  %v1253_v22 = vadd.f32 %v1251_v38, %v1229_v0 }
 0x1ad   : > { %v1259_v27 = vadd.f32 %v1257_v32, %v1235_v60  ;;  %v1265_v24 = vadd.f32 %v1263_v26, %v1241_v53  ;;  %v1269_v54 = vmul.f32 %v1267_v47, %v1217_v3  ;;  %v1275_v62 = vmul.f32 %v1273_v33, %v1217_v3 }
 0x1ae   : > { %v1281_v50 = vmul.f32 %v1279_v37, %v1217_v3  ;;  %v1287_v6 = vmul.f32 %v1285_v11, %v1217_v3  ;;  %v1244_v5 = vmul.f32 %v1739_v52, %v1243_v48  ;;  %v1250_v36 = vmul.f32 %v1739_v52, %v1249_v57 }
 0x1af   : > { %v1271_v13 = vadd.f32 %v1269_v54, %v1247_v43  ;;  %v1277_v14 = vadd.f32 %v1275_v62, %v1253_v22  ;;  %v1256_v9 = vmul.f32 %v1739_v52, %v1255_v40  ;;  %v1262_v12 = vmul.f32 %v1739_v52, %v1261_v16 }
 0x1b0   : > { %v1283_v21 = vadd.f32 %v1281_v50, %v1259_v27  ;;  %v1289_v31 = vadd.f32 %v1287_v6, %v1265_v24  ;;  %v1246_v63 = vadd.f32 %v1244_v5, %v1222_v56  ;;  %v1252_v2 = vadd.f32 %v1250_v36, %v1228_v46  ;;  %v3825_v46 = vld [vmem:[#allocation21_spill] sm:$0xff] }
 0x1b1   : > { %v1258_v17 = vadd.f32 %v1256_v9, %v1234_v18  ;;  %v1264_v51 = vadd.f32 %v1262_v12, %v1240_v34  ;;  %v1216_v39 = vsel %vm243_vm3, %v1211_v7, 0.0  ;;  %v1308_v1 = vstv %s3137_s23  ;;  %v3827_v9 = vld [vmem:[#allocation75_spill] sm:$0xff] }
 0x1b2   : > { %v1268_v35 = vmul.f32 %v1267_v47, %v1216_v39  ;;  %v1274_v15 = vmul.f32 %v1273_v33, %v1216_v39  ;;  %v1280_v19 = vmul.f32 %v1279_v37, %v1216_v39  ;;  %v1286_v28 = vmul.f32 %v1285_v11, %v1216_v39  ;;  %v1302_v47 = vpop.permute.xlu1 %1301 }
 0x1b3   : > { %v1314_v49 = vstv %s3141_s5  ;;  %v1320_v25 = vstv %s3143_s15  ;;  %v1326_v55 = vstv %s3148_s10  ;;  %v1298_v30 = vsel %vm234_vm2, 0.0, %v1294_v58 }
 0x1b4   : > { %v1270_v29 = vadd.f32 %v1268_v35, %v1246_v63  ;;  %v1276_v23 = vadd.f32 %v1274_v15, %v1252_v2  ;;  %v1282_v10 = vadd.f32 %v1280_v19, %v1258_v17  ;;  %v1288_v45 = vadd.f32 %v1286_v28, %v1264_v51 }
 0x1b5   : > { %v1310_v48 = vmul.f32 %v1308_v1, %v1298_v30  ;;  %v1316_v57 = vmul.f32 %v1314_v49, %v1298_v30  ;;  %v1322_v0 = vmul.f32 %v1320_v25, %v1298_v30  ;;  %v1328_v60 = vmul.f32 %v1326_v55, %v1298_v30 }
 0x1b6   : > { %v1297_v53 = vsel %vm234_vm2, 0.0, %v1292_v44  ;;  %v1332_v42 = vstv %s3152_s8  ;;  %v1338_v61 = vstv %s3154_s30  ;;  %v1344_v8 = vstv %s3157_s1 }
 0x1b7   : > { %v1312_v41 = vadd.f32 %v1310_v48, %v1271_v13  ;;  %v1318_v59 = vadd.f32 %v1316_v57, %v1277_v14  ;;  %v1324_v20 = vadd.f32 %v1322_v0, %v1283_v21  ;;  %v1330_v56 = vadd.f32 %v1328_v60, %v1289_v31  ;;  %v1300_v21 = vpop.permute.xlu0 %1299 }
 0x1b8   : > { %v1309_v38 = vmul.f32 %v1308_v1, %v1297_v53  ;;  %v1315_v40 = vmul.f32 %v1314_v49, %v1297_v53  ;;  %v1321_v16 = vmul.f32 %v1320_v25, %v1297_v53  ;;  %v1327_v4 = vmul.f32 %v1326_v55, %v1297_v53 }
 0x1b9   : > { %v1334_v18 = vmul.f32 %v1332_v42, %v3825_v46  ;;  %v1340_v34 = vmul.f32 %v1338_v61, %v3825_v46  ;;  %v1346_v32 = vmul.f32 %v1344_v8, %v3825_v46  ;;  %v1350_v26 = vstv %s3159_s6 }
 0x1ba   : > { %v1311_v33 = vadd.f32 %v1309_v38, %v1270_v29  ;;  %v1317_v37 = vadd.f32 %v1315_v40, %v1276_v23  ;;  %v1323_v11 = vadd.f32 %v1321_v16, %v1282_v10  ;;  %v1329_v3 = vadd.f32 %v1327_v4, %v1288_v45 }
 0x1bb   : > { %v1352_v43 = vmul.f32 %v1350_v26, %v3825_v46  ;;  %v1356_v22 = vstv %s3163_s16  ;;  %v1362_v27 = vstv %s3165_s12  ;;  %v1368_v24 = vstv %s3171_s4 }
 0x1bc   : > { %v1374_v54 = vstv %s3173_s28  ;;  %v1306_v62 = vsel %vm243_vm3, %v1302_v47, 0.0  ;;  %v1336_v7 = vadd.f32 %v1334_v18, %v1312_v41  ;;  %v1342_v50 = vadd.f32 %v1340_v34, %v1318_v59 }
 0x1bd   : > { %v1348_v6 = vadd.f32 %v1346_v32, %v1324_v20  ;;  %v1354_v52 = vadd.f32 %v1352_v43, %v1330_v56  ;;  %v1358_v5 = vmul.f32 %v1356_v22, %v1306_v62  ;;  %v1364_v36 = vmul.f32 %v1362_v27, %v1306_v62 }
 0x1be   : > { %v1370_v13 = vmul.f32 %v1368_v24, %v1306_v62  ;;  %v1376_v14 = vmul.f32 %v1374_v54, %v1306_v62  ;;  %v1333_v12 = vmul.f32 %v1332_v42, %v3827_v9  ;;  %v1339_v63 = vmul.f32 %v1338_v61, %v3827_v9 }
 0x1bf   : > { %v1360_v31 = vadd.f32 %v1358_v5, %v1336_v7  ;;  %v1345_v2 = vmul.f32 %v1344_v8, %v3827_v9  ;;  %v1351_v58 = vmul.f32 %v1350_v26, %v3827_v9  ;;  %v1366_v17 = vadd.f32 %v1364_v36, %v1342_v50 }
 0x1c0   : > { %v1372_v51 = vadd.f32 %v1370_v13, %v1348_v6  ;;  %v1378_v39 = vadd.f32 %v1376_v14, %v1354_v52  ;;  %v1335_v1 = vadd.f32 %v1333_v12, %v1311_v33  ;;  %v1341_v35 = vadd.f32 %v1339_v63, %v1317_v37 }
 0x1c1   : > { %1381 = vst.msk [vmem:[%s3193_s22 + $0x8] sm:$0xff] %vm1379_vm4, %v1360_v31  ;;  %v1347_v15 = vadd.f32 %v1345_v2, %v1323_v11  ;;  %v1353_v19 = vadd.f32 %v1351_v58, %v1329_v3  ;;  %v1305_v28 = vsel %vm243_vm3, %v1300_v21, 0.0  ;;  %1692 = vst.msk [vmem:[%s3193_s22 + $0x18] sm:$0xff] %vm1379_vm4, %v1366_v17 }
 0x1c2   : > { %1694 = vst.msk [vmem:[%s3193_s22 + $0x28] sm:$0xff] %vm1379_vm4, %v1372_v51  ;;  %1696 = vst.msk [vmem:[%s3193_s22 + $0x38] sm:$0xff] %vm1379_vm4, %v1378_v39  ;;  %v1357_v49 = vmul.f32 %v1356_v22, %v1305_v28  ;;  %v1363_v25 = vmul.f32 %v1362_v27, %v1305_v28  ;;  %v1369_v55 = vmul.f32 %v1368_v24, %v1305_v28 }
 0x1c3   : > { %v1375_v30 = vmul.f32 %v1374_v54, %v1305_v28 }
 0x1c4   : > { %v1359_v44 = vadd.f32 %v1357_v49, %v1335_v1  ;;  %v1365_v29 = vadd.f32 %v1363_v25, %v1341_v35  ;;  %v1371_v23 = vadd.f32 %v1369_v55, %v1347_v15 }
 0x1c5   : > { %v1377_v10 = vadd.f32 %v1375_v30, %v1353_v19 }
 0x1c6   : > { %1380 = vst.msk [vmem:[%s3193_s22] sm:$0xff] %vm1379_vm4, %v1359_v44  ;;  %1691 = vst.msk [vmem:[%s3193_s22 + $0x10] sm:$0xff] %vm1379_vm4, %v1365_v29 }
 0x1c7   : > { %1693 = vst.msk [vmem:[%s3193_s22 + $0x20] sm:$0xff] %vm1379_vm4, %v1371_v23  ;;  %1695 = vst.msk [vmem:[%s3193_s22 + $0x30] sm:$0xff] %vm1379_vm4, %v1377_v10 }
 0x1c8 PF: > { %s3828_s18 = sld [smem:[#allocation6_spill]] }
 0x1c9   : > { %s3829_s9 = sld [smem:[#allocation5_spill]] }
 0x1ca   : > { %s3830_s10 = sld [smem:[#allocation7_spill]] }
 0x1ce   : > { %s13_s11 = sadd.s32 1, %s3828_s18  }
 0x1cf   : > { %p10_p2 = scmp.ge.s32.totalorder %s13_s11, 4  }
 0x1d1   :  { %12 = sbr.rel (!%p10_p2) target bundleno = 6 (0x6), region = 78 }
 0x1d6   :  { %1421 = vsyncpa [#allocation3], 1 }
 0x1d7   :  { %1423 = vsyncpa [#allocation3 + $0x1], 1 }

</bundles_post_ra>
